<compile_context>
chip_gen: v7x
topology: tpu7x:2x2x1
jax: 0.10.0
libtpu: 0.0.40
codegen_flags: <defaults>
</compile_context>

<pallas_src>
import math

import jax
import jax.numpy as jnp
from jax.experimental import pallas as pl
from jax.experimental.pallas import tpu as pltpu


def timestep_embedder_kernel(t_ref, freqs_ref, w1_ref, b1_ref, w2_ref, b2_ref, o_ref):
    # --- sinusoidal timestep embedding (f32, EUP transcendentals) ------------
    # args: (TM, half) = t[:, None] * freqs[None, :]
    args = t_ref[...] * freqs_ref[...]
    # Lane-dim concat of two adjacent 128-lane blocks -> single K=256 operand.
    emb = jnp.concatenate([jnp.cos(args), jnp.sin(args)], axis=-1)
    # TODO(synk): PyTorch zero-pads one lane when frequency_embedding_size is
    # odd; this kernel assumes it is even (true for the module default, 256).

    # --- Linear1: one K=256 bf16 MXU dot, f32 accumulation --------------------
    mm_dtype = w1_ref.dtype
    h = (
        jnp.dot(emb.astype(mm_dtype), w1_ref[...],
                preferred_element_type=jnp.float32)
        + b1_ref[...]
    )

    # --- SiLU: exp on EUP, approx reciprocal on EUP (keeps VALU slots free) ---
    h = h * pl.reciprocal(1.0 + jnp.exp(-h), approx=True)

    # --- Linear2 (bf16 operands, f32 accumulation) ----------------------------
    out = (
        jnp.dot(h.astype(w2_ref.dtype), w2_ref[...],
                preferred_element_type=jnp.float32)
        + b2_ref[...]
    )
    o_ref[...] = out


def prepare_params(w1, b1, w2, b2, freqs):
    """One-time conversion to the kernel's persistent storage dtypes.

    Call this once (e.g. at model init), NOT per forward call -- the whole
    point is to avoid a per-call f32->bf16 cast pass over the weights.
    """
    return (
        w1.astype(jnp.bfloat16),
        b1.astype(jnp.float32).reshape(1, -1),
        w2.astype(jnp.bfloat16),
        b2.astype(jnp.float32).reshape(1, -1),
        freqs.astype(jnp.float32),
    )


def timestep_embedder(t, freqs, w1_bf, b1, w2_bf, b2, *, tm=128):
    """Forward pass. Weights are expected already in bf16 (see prepare_params)."""
    n = t.shape[0]
    freq = w1_bf.shape[0]
    hidden = w2_bf.shape[1]
    half = freqs.shape[1]

    # Pad batch to a TM multiple so every grid step is a full tile.
    n_tiles = pl.cdiv(n, tm)
    n_pad = n_tiles * tm
    t2d = t.astype(jnp.float32).reshape(n, 1)
    if n_pad != n:
        t2d = jnp.pad(t2d, ((0, n_pad - n), (0, 0)))

    cost = pl.CostEstimate(
        flops=2 * n_pad * (freq * hidden + hidden * hidden),
        transcendentals=n_pad * (freq + 2 * hidden),   # sin + cos + exp + rcp
        bytes_accessed=(t2d.size * 4 + freqs.size * 4
                        + w1_bf.size * 2 + b1.size * 4
                        + w2_bf.size * 2 + b2.size * 4
                        + n_pad * hidden * 4),
    )

    out = pl.pallas_call(
        timestep_embedder_kernel,
        out_shape=jax.ShapeDtypeStruct((n_pad, hidden), jnp.float32),
        grid_spec=pltpu.PrefetchScalarGridSpec(
            num_scalar_prefetch=0,
            grid=(n_tiles,),
            in_specs=[
                # batch-tiled input
                pl.BlockSpec((tm, 1), lambda i: (i, 0)),
                # VMEM-resident across grid steps (constant index_map)
                pl.BlockSpec((1, half), lambda i: (0, 0)),
                pl.BlockSpec((freq, hidden), lambda i: (0, 0)),
                pl.BlockSpec((1, hidden), lambda i: (0, 0)),
                pl.BlockSpec((hidden, hidden), lambda i: (0, 0)),
                pl.BlockSpec((1, hidden), lambda i: (0, 0)),
            ],
            out_specs=pl.BlockSpec((tm, hidden), lambda i: (i, 0)),
        ),
        compiler_params=pltpu.CompilerParams(
            dimension_semantics=("parallel",),   # shards across v7x's 2 TCs
        ),
        cost_estimate=cost,
    )(t2d, freqs, w1_bf, b1, w2_bf, b2)

    return out[:n] if n_pad != n else out


def make_freqs(frequency_embedding_size=256, max_period=10000):
    half = frequency_embedding_size // 2
    k = jnp.arange(half, dtype=jnp.float32)
    return jnp.exp(-math.log(max_period) * k / half).reshape(1, half)


def reference(t, freqs, w1, b1, w2, b2):
    # Pure f32 reference matching the PyTorch module semantics.
    args = t.astype(jnp.float32)[:, None] * freqs[0][None, :]
    emb = jnp.concatenate([jnp.cos(args), jnp.sin(args)], axis=-1)
    h = emb @ w1 + b1
    h = h * jax.nn.sigmoid(h)
    return h @ w2 + b2


if __name__ == "__main__":
    N = 200                     # batch of scalar timesteps (exercises padding)
    FREQ = 256                  # frequency_embedding_size (module default)
    HIDDEN = 128                # hidden_size
    TM = 128                    # batch tile

    key = jax.random.PRNGKey(0)
    k_t, k_w1, k_b1, k_w2, k_b2 = jax.random.split(key, 5)

    # fractional timesteps, one per batch element
    t = jax.random.uniform(k_t, (N,), dtype=jnp.float32) * 1000.0

    # deterministic synthetic parameters (PyTorch Linear shapes, stored (in, out))
    w1 = jax.random.normal(k_w1, (FREQ, HIDDEN), dtype=jnp.float32) * 0.02
    b1 = jax.random.normal(k_b1, (1, HIDDEN), dtype=jnp.float32) * 0.02
    w2 = jax.random.normal(k_w2, (HIDDEN, HIDDEN), dtype=jnp.float32) * 0.02
    b2 = jax.random.normal(k_b2, (1, HIDDEN), dtype=jnp.float32) * 0.02

    freqs = make_freqs(FREQ)

    # One-time parameter preparation (bf16 weights) -- outside the per-call path.
    w1_bf, b1_p, w2_bf, b2_p, freqs_p = prepare_params(w1, b1, w2, b2, freqs)

    out = timestep_embedder(t, freqs_p, w1_bf, b1_p, w2_bf, b2_p, tm=TM)
    out = jax.block_until_ready(out)

    ref = reference(t, freqs, w1, b1, w2, b2)
    assert out.shape == (N, HIDDEN)
    # bf16 matmul operands (f32 accumulation) + approx reciprocal in SiLU ->
    # slightly looser tolerance than the pure-f32 reference.
    assert jnp.allclose(out, ref, atol=2e-2, rtol=2e-2), "mismatch vs reference"

    print("KERNEL_OK")
</pallas_src>

<mosaic_0001>
module attributes {stable_mosaic.version = 11 : i64} {
  func.func @timestep_embedder_kernel(%arg0: i32, %arg1: memref<128x1xf32, #tpu.memory_space<vmem>>, %arg2: memref<1x128xf32, #tpu.memory_space<vmem>>, %arg3: memref<256x128xbf16, #tpu.memory_space<vmem>>, %arg4: memref<1x128xf32, #tpu.memory_space<vmem>>, %arg5: memref<128x128xbf16, #tpu.memory_space<vmem>>, %arg6: memref<1x128xf32, #tpu.memory_space<vmem>>, %arg7: memref<128x128xf32, #tpu.memory_space<vmem>>) attributes {dimension_semantics = [#tpu.dimension_semantics<parallel>], iteration_bounds = array<i64: 2>, scalar_prefetch = 0 : i64, scratch_operands = 0 : i64, tpu.core_type = #tpu.core_type<tc>, window_params = [{transform_indices = @transform_0, window_bounds = array<i64: 128, 1>}, {pipeline_mode = #tpu.pipeline_mode<synchronous>, transform_indices = @transform_1, window_bounds = array<i64: 1, 128>}, {pipeline_mode = #tpu.pipeline_mode<synchronous>, transform_indices = @transform_2, window_bounds = array<i64: 256, 128>}, {pipeline_mode = #tpu.pipeline_mode<synchronous>, transform_indices = @transform_3, window_bounds = array<i64: 1, 128>}, {pipeline_mode = #tpu.pipeline_mode<synchronous>, transform_indices = @transform_4, window_bounds = array<i64: 128, 128>}, {pipeline_mode = #tpu.pipeline_mode<synchronous>, transform_indices = @transform_5, window_bounds = array<i64: 1, 128>}, {transform_indices = @transform_6, window_bounds = array<i64: 128, 128>}]} {
    %c0 = arith.constant 0 : index
    %c0_0 = arith.constant 0 : index
    %0 = vector.load %arg1[%c0, %c0_0] : memref<128x1xf32, #tpu.memory_space<vmem>>, vector<128x1xf32>
    %c0_1 = arith.constant 0 : index
    %c0_2 = arith.constant 0 : index
    %1 = vector.load %arg2[%c0_1, %c0_2] : memref<1x128xf32, #tpu.memory_space<vmem>>, vector<1x128xf32>
    %2 = vector.broadcast %0 : vector<128x1xf32> to vector<128x128xf32>
    %3 = vector.broadcast %1 : vector<1x128xf32> to vector<128x128xf32>
    %4 = arith.mulf %2, %3 : vector<128x128xf32>
    %5 = math.cos %4 : vector<128x128xf32>
    %6 = math.sin %4 : vector<128x128xf32>
    %7 = tpu.concatenate %5, %6 in 1 : vector<128x128xf32>, vector<128x128xf32> -> vector<128x256xf32>
    %8 = arith.truncf %7 : vector<128x256xf32> to vector<128x256xbf16>
    %c0_3 = arith.constant 0 : index
    %c0_4 = arith.constant 0 : index
    %9 = vector.load %arg3[%c0_3, %c0_4] : memref<256x128xbf16, #tpu.memory_space<vmem>>, vector<256x128xbf16>
    %cst = arith.constant dense<0.000000e+00> : vector<128x128xf32>
    %10 = tpu.matmul %8, %9, %cst {dimension_numbers = #tpu.dot_dimension_numbers<[1], [0], [0], [1], [0, 0, 1, 1], [], []>} : vector<128x256xbf16>, vector<256x128xbf16>, vector<128x128xf32> -> vector<128x128xf32>
    %c0_5 = arith.constant 0 : index
    %c0_6 = arith.constant 0 : index
    %11 = vector.load %arg4[%c0_5, %c0_6] : memref<1x128xf32, #tpu.memory_space<vmem>>, vector<1x128xf32>
    %12 = vector.broadcast %11 : vector<1x128xf32> to vector<128x128xf32>
    %13 = arith.addf %10, %12 : vector<128x128xf32>
    %cst_7 = arith.constant 0.000000e+00 : f32
    %14 = vector.broadcast %cst_7 : f32 to vector<128x128xf32>
    %15 = arith.subf %14, %13 : vector<128x128xf32>
    %16 = math.exp %15 : vector<128x128xf32>
    %cst_8 = arith.constant 1.000000e+00 : f32
    %17 = vector.broadcast %cst_8 : f32 to vector<128x128xf32>
    %18 = arith.addf %17, %16 : vector<128x128xf32>
    %19 = tpu.reciprocal %18 {approx = true} : vector<128x128xf32> -> vector<128x128xf32>
    %20 = arith.mulf %13, %19 : vector<128x128xf32>
    %21 = arith.truncf %20 : vector<128x128xf32> to vector<128x128xbf16>
    %c0_9 = arith.constant 0 : index
    %c0_10 = arith.constant 0 : index
    %22 = vector.load %arg5[%c0_9, %c0_10] : memref<128x128xbf16, #tpu.memory_space<vmem>>, vector<128x128xbf16>
    %cst_11 = arith.constant dense<0.000000e+00> : vector<128x128xf32>
    %23 = tpu.matmul %21, %22, %cst_11 {dimension_numbers = #tpu.dot_dimension_numbers<[1], [0], [0], [1], [0, 0, 1, 1], [], []>} : vector<128x128xbf16>, vector<128x128xbf16>, vector<128x128xf32> -> vector<128x128xf32>
    %c0_12 = arith.constant 0 : index
    %c0_13 = arith.constant 0 : index
    %24 = vector.load %arg6[%c0_12, %c0_13] : memref<1x128xf32, #tpu.memory_space<vmem>>, vector<1x128xf32>
    %25 = vector.broadcast %24 : vector<1x128xf32> to vector<128x128xf32>
    %26 = arith.addf %23, %25 : vector<128x128xf32>
    %c0_14 = arith.constant 0 : index
    %c0_15 = arith.constant 0 : index
    %27 = vector.load %arg7[%c0_14, %c0_15] : memref<128x128xf32, #tpu.memory_space<vmem>>, vector<128x128xf32>
    tpu.vector_store %arg7[%c0_14, %c0_15], %26 {strides = array<i32>} : memref<128x128xf32, #tpu.memory_space<vmem>>, vector<128x128xf32>,
    return
  }
  func.func @transform_0(%arg0: i32) -> (i32, i32) {
    %c0_i32 = arith.constant 0 : i32
    %c0_i32_0 = arith.constant 0 : i32
    return %arg0, %c0_i32 : i32, i32
  }
  func.func @transform_1(%arg0: i32) -> (i32, i32) {
    %c0_i32 = arith.constant 0 : i32
    %c0_i32_0 = arith.constant 0 : i32
    %c0_i32_1 = arith.constant 0 : i32
    return %c0_i32, %c0_i32_0 : i32, i32
  }
  func.func @transform_2(%arg0: i32) -> (i32, i32) {
    %c0_i32 = arith.constant 0 : i32
    %c0_i32_0 = arith.constant 0 : i32
    %c0_i32_1 = arith.constant 0 : i32
    return %c0_i32, %c0_i32_0 : i32, i32
  }
  func.func @transform_3(%arg0: i32) -> (i32, i32) {
    %c0_i32 = arith.constant 0 : i32
    %c0_i32_0 = arith.constant 0 : i32
    %c0_i32_1 = arith.constant 0 : i32
    return %c0_i32, %c0_i32_0 : i32, i32
  }
  func.func @transform_4(%arg0: i32) -> (i32, i32) {
    %c0_i32 = arith.constant 0 : i32
    %c0_i32_0 = arith.constant 0 : i32
    %c0_i32_1 = arith.constant 0 : i32
    return %c0_i32, %c0_i32_0 : i32, i32
  }
  func.func @transform_5(%arg0: i32) -> (i32, i32) {
    %c0_i32 = arith.constant 0 : i32
    %c0_i32_0 = arith.constant 0 : i32
    %c0_i32_1 = arith.constant 0 : i32
    return %c0_i32, %c0_i32_0 : i32, i32
  }
  func.func @transform_6(%arg0: i32) -> (i32, i32) {
    %c0_i32 = arith.constant 0 : i32
    %c0_i32_0 = arith.constant 0 : i32
    return %arg0, %c0_i32 : i32, i32
  }
}

</mosaic_0001>

<bundles_post_ra>
// kernel: tpu_custom_call.1
= control target key start
LH: loop header
LB: loop body
LE: loop exit
PB: predicated region body
PF: predicated region fallthrough
CT: control target
= control target key end

     0   :  { %11 = vsyncpa [#allocation3], 0  ;;  %s6701_s0 = inlined_call_operand.vmem [shape: f32[256,1], index: 0, kind: input, shape index: {}]   ;;  %s6702_s1 = inlined_call_operand.vmem [shape: f32[1,128], index: 1, kind: input, shape index: {}]   ;;  %s6703_s2 = inlined_call_operand.vmem [shape: bf16[256,128], index: 2, kind: input, shape index: {}]   ;;  %s6704_s3 = inlined_call_operand.vmem [shape: f32[1,128], index: 3, kind: input, shape index: {}]   ;;  %s6705_s4 = inlined_call_operand.vmem [shape: bf16[128,128], index: 4, kind: input, shape index: {}]   ;;  %s6706_s5 = inlined_call_operand.vmem [shape: f32[1,128], index: 5, kind: input, shape index: {}]   ;;  %s6707_s6 = inlined_call_operand.hbm [shape: f32[256,128], index: 6, kind: output, shape index: {}]  }
   0x1   :  { %13 = vsyncpa [#allocation3 + $0x1], 0  ;;  %s4953_s21 = smov 0   ;;  %s4955_s22 = smov 0  }
   0x2   :  { %s4957_s23 = smov 0   ;;  %s4959_s24 = smov 0  }
   0x3 LB: > { %s4974_s25 = sadd.s32 4294967295, %s4906_s24   ;;  %s4297_s26 = sadd.s32 4294967294, %s4906_s24   ;;  %s4906_s24 = sphi %s4959_s24, %s6959_s24   ;;  %s4902_s23 = sphi %s4957_s23, %s6958_s23   ;;  %s4898_s22 = sphi %s4955_s22, %s6957_s22   ;;  %s4894_s21 = sphi %s4953_s21, %s6956_s21  }
   0x4   : > { %s4978_s27 = sadd.s32 1, %s4906_s24   ;;  %s157_s28 = sadd.s32 1, %s4902_s23 }
   0x5   : > { %s154_s29 = ssub.s32 %s4906_s24, %s4978_s27  ;;  %p167_p0 = scmp.ne.s32.totalorder %s4902_s23, %s4898_s22 }
   0x6   : > { %p155_p1 = scmp.eq.s32.totalorder %s154_s29, 0  ;;  %p168_p2 = scmp.eq.s32.totalorder %s4974_s25, 1 }
   0x7   : > { %p173_p3 = scmp.ne.s32.totalorder %s4898_s22, %s4894_s21  ;;  %p174_p4 = scmp.eq.s32.totalorder %s4297_s26, 1 }
   0x8   : > { %s4989_s30 = scalar_select %p155_p1, %s4902_s23, %s157_s28  }
   0x9   : > { %p4991_p5 = por %p168_p2, %p167_p0  ;;  %p4995_p6 = por %p174_p4, %p173_p3 }
   0xa   : > { %p4300_p7 = scmp.ge.s32.totalorder %s4906_s24, 1  ;;  %p216_p8 = scmp.lt.s32.totalorder %s4906_s24, 3 }
   0xc   : > { %p217_p9 = pnand %p4300_p7, %p216_p8 }
   0xe   : > { %220 = sbr.rel (%p217_p9) target bundleno = 1096 (0x448), region = 44 }
  0x15   : > { %s4302_s9 = sshll.u32 %s4974_s25, 4  ;;  %v4908_v0 = vmov 0   ;;  %v5008_v17 = vld [vmem:[%s6702_s1] ss:$0 sm:$0xff]  ;;  %v6714_v55 = vmov 683565275  }
  0x16   : > { %4690 = vset.pattern.permute.xlu1 %v4908_v0  ;;  %4689 = vset.pattern.permute.xlu0 %v4908_v0  ;;  %p247_p10 = scmp.lt.s32.totalorder %s4302_s9, 31  ;;  %v6718_v57 = vmov 2475754826   ;;  %v6720_v59 = vmov 2131351028   ;;  %s243_s29 = sand.u32 1, %s4898_s22  }
  0x17   : > { %v6723_v61 = vmov 2102212464   ;;  %v6741_v63 = vmov 920167782   ;;  %s4915_s19 = smov [#allocation2]  }
  0x18   : > { %s6961_s9 = smov (!%p247_p10, %s4302_s9), 31  ;;  %s4848_s20 = sshll.u32 %s4915_s19, 4  ;;  %s4849_s20 = int_to_ptr.vmem [resolvable:$false] %s4848_s20 }
  0x19   : > { %s4303_s10 = sshll.u32 %s6961_s9, 3  ;;  %s4301_s9 = sshll.u32 %s243_s29, 7 }
  0x1a   : > { %s250_s13 = scalar_lea.vmem %s6701_s0, %s4303_s10  ;;  %s6631_s12 = scalar_lea.vmem [#allocation2], %s4301_s9 }
  0x1b   : > { %v256_v1 = vld [vmem:[%s250_s13 + $0x10] sm:$0xff]  ;;  %v254_v2 = vld [vmem:[%s250_s13] sm:$0xff]  ;;  %v257_v3 = vld [vmem:[%s250_s13 + $0x18] sm:$0xff]  ;;  %s4235_s14 = sshll.u32 %s6631_s12, 4  ;;  %s4850_s26 = scalar_lea.vmem %s4849_s20, 4096  ;;  %s6653_s14 = int_to_ptr.vmem [resolvable:$true] %s4235_s14 }
  0x1c   : > { %283 = vperm.xlu1 %4690, %v256_v1   ;;  %273 = vperm.xlu0 %4689, %v254_v2   ;;  %v255_v4 = vld [vmem:[%s250_s13 + $0x8] sm:$0xff]  ;;  %v258_v6 = vld [vmem:[%s250_s13 + $0x20] sm:$0xff]  ;;  %v261_v7 = vld [vmem:[%s250_s13 + $0x38] sm:$0xff]  ;;  %s4844_s18 = scalar_lea.vmem %s6653_s14, 2048  ;;  %p4851_p0 = scmp.lt.s32.totalorder %s6653_s14, %s4849_s20 }
  0x1d   : > { %v259_v5 = vld [vmem:[%s250_s13 + $0x28] sm:$0xff]  ;;  %v260_v8 = vld [vmem:[%s250_s13 + $0x30] sm:$0xff]  ;;  %v262_v10 = vld [vmem:[%s250_s13 + $0x40] sm:$0xff]  ;;  %p4845_p11 = scmp.ne.s32.totalorder %s6653_s14, %s4844_s18  ;;  %p4852_p1 = scmp.lt.s32.totalorder %s4850_s26, %s4844_s18 }
  0x1e   : > { %v263_v9 = vld [vmem:[%s250_s13 + $0x48] sm:$0xff]  ;;  %v265_v11 = vld [vmem:[%s250_s13 + $0x58] sm:$0xff]  ;;  %v264_v12 = vld [vmem:[%s250_s13 + $0x50] sm:$0xff] }
  0x1f   : > { %v267_v13 = vld [vmem:[%s250_s13 + $0x68] sm:$0xff]  ;;  %v266_v14 = vld [vmem:[%s250_s13 + $0x60] sm:$0xff]  ;;  %v269_v15 = vld [vmem:[%s250_s13 + $0x78] sm:$0xff]  ;;  %p4846_p12 = pnand %p4845_p11, %p4991_p5  ;;  %p4853_p2 = por %p4852_p1, %p4851_p0 }
  0x20   : > { %288 = vperm.xlu1 %4690, %v257_v3   ;;  %278 = vperm.xlu0 %4689, %v255_v4   ;;  %v268_v16 = vld [vmem:[%s250_s13 + $0x70] sm:$0xff]  ;;  %s4464_s13 = sshll.u32 %s4974_s25, 11  ;;  %s6660_s25 = scalar_lea.sflag [#allocation3], %s243_s29 }
  0x21   : > { %s6651_s17 = scalar_lea.hbm %s6707_s6, %s4464_s13  ;;  %p4847_p13 = pneg %p4846_p12 }
  0x23   : > { %p4854_p3 = pnand %p4853_p2, %p4847_p13 }
  0x24   : > { %298 = vperm.xlu1 %4690, %v259_v5   ;;  %293 = vperm.xlu0 %4689, %v258_v6  }
  0x28   : > { %308 = vperm.xlu1 %4690, %v261_v7   ;;  %303 = vperm.xlu0 %4689, %v260_v8   ;;  %v6716_v7 = vmov 1326507024  }
  0x2c   : > { %318 = vperm.xlu1 %4690, %v263_v9   ;;  %313 = vperm.xlu0 %4689, %v262_v10  }
  0x30   : > { %328 = vperm.xlu1 %4690, %v265_v11   ;;  %323 = vperm.xlu0 %4689, %v264_v12  }
  0x34   : > { %338 = vperm.xlu1 %4690, %v267_v13   ;;  %333 = vperm.xlu0 %4689, %v266_v14  }
  0x38   : > { %348 = vperm.xlu1 %4690, %v269_v15   ;;  %343 = vperm.xlu0 %4689, %v268_v16  }
  0x9b   : > { %v284_v18 = vpop.permute.xlu1 %283  ;;  %v274_v19 = vpop.permute.xlu0 %273 }
  0x9c   : > { %v5011_v20 = vmul.f32 %v5008_v17, %v284_v18  ;;  %v5014_v21 = vmul.f32 %v5008_v17, %v274_v19 }
  0x9e   : > { %v579_v22 = vand.u32 2147483647, %v5011_v20  ;;  %v582_v23 = vand.u32 2139095040, %v5011_v20  ;;  %v6709_v24 = vand.u32 2147483647, %v5014_v21  ;;  %v376_v25 = vand.u32 2139095040, %v5014_v21 }
  0x9f   : > { %v289_v26 = vpop.permute.xlu1 %288  ;;  %v279_v34 = vpop.permute.xlu0 %278 }
  0xa0   : > { %v583_v27 = vshrl.u32 %v582_v23, 23  ;;  %v586_v28 = vand.u32 8388607, %v579_v22  ;;  %v5023_v29 = vmul.f32 %v5008_v17, %v289_v26  ;;  %v377_v30 = vshrl.u32 %v376_v25, 23 }
  0xa1   : > { %v380_v31 = vand.u32 8388607, %v6709_v24  ;;  %v5034_v43 = vmul.f32 %v5008_v17, %v279_v34 }
  0xa2   : > { %v4313_v32 = vadd.s32 4294967169, %v583_v27  ;;  %v682_v33 = vand.u32 2147483647, %v5023_v29  ;;  %v587_v35 = vor.u32 8388608, %v586_v28  ;;  %v4305_v36 = vadd.s32 4294967169, %v377_v30 }
  0xa3   : > { %v685_v37 = vand.u32 2139095040, %v5023_v29  ;;  %v381_v39 = vor.u32 8388608, %v380_v31  ;;  %v479_v53 = vand.u32 2139095040, %v5034_v43 }
  0xa4   : > { %v589_v38 = vadd.s32 1, %v4313_v32  ;;  %v383_v40 = vadd.s32 1, %v4305_v36  ;;  %v5031_v42 = vand.u32 8388607, %v682_v33  ;;  %v5036_v45 = vshll.u32 %v587_v35, 8 }
  0xa5   : > { %v686_v41 = vshrl.u32 %v685_v37, 23  ;;  %v5038_v49 = vshll.u32 %v381_v39, 8 }
  0xa6   : > { %vm590_vm0 = vcmp.gt.s32.totalorder %v589_v38, 0  ;;  %vm384_vm1 = vcmp.gt.s32.totalorder %v383_v40, 0  ;;  %v690_v52 = vor.u32 8388608, %v5031_v42 }
  0xa7   : > { %v591_v44 = vsel %vm590_vm0, %v589_v38, 0  ;;  %v385_v48 = vsel %vm384_vm1, %v383_v40, 0  ;;  %v4317_v51 = vadd.s32 4294967169, %v686_v41 }
  0xa8   : > { %v592_v46 = vshrl.u32 %v591_v44, 5  ;;  %v593_v47 = vand.u32 31, %v591_v44  ;;  %v5040_v50 = vand.u32 31, %v385_v48  ;;  %v5049_v1 = vshrl.u32 %v385_v48, 5 }
  0xa9   : > { %v692_v15 = vadd.s32 1, %v4317_v51 }
  0xaa   : > { %v594_v54 = vsub.s32 32, %v593_v47  ;;  %v596_v56 = vshll.u32 %v6714_v55, %v593_v47  ;;  %v599_v58 = vshll.u32 %v6718_v57, %v593_v47  ;;  %v602_v60 = vshll.u32 %v6720_v59, %v593_v47 }
  0xab   : > { %v605_v62 = vshll.u32 %v6723_v61, %v593_v47  ;;  %v608_v0 = vshll.u32 %v6741_v63, %v593_v47  ;;  %vm611_vm2 = vcmp.lt.s32.totalorder %v592_v46, 1  ;;  %vm613_vm3 = vcmp.lt.s32.totalorder %v592_v46, 3 }
  0xac   : > { %v595_v2 = vshrl.u32 %v6714_v55, %v594_v54  ;;  %v597_v3 = vshrl.u32 %v6718_v57, %v594_v54  ;;  %v600_v4 = vshrl.u32 %v6720_v59, %v594_v54  ;;  %v603_v5 = vshrl.u32 %v6723_v61, %v594_v54 }
  0xad   : > { %v606_v6 = vshrl.u32 %v6741_v63, %v594_v54  ;;  %v609_v8 = vshrl.u32 %v6716_v7, %v594_v54  ;;  %vm614_vm4 = vcmp.lt.s32.totalorder %v592_v46, 4  ;;  %v388_v12 = vsub.s32 32, %v5040_v50 }
  0xae   : > { %v598_v9 = vor.u32 %v597_v3, %v596_v56  ;;  %v601_v10 = vor.u32 %v600_v4, %v599_v58  ;;  %v604_v11 = vor.u32 %v603_v5, %v602_v60  ;;  %vm612_vm5 = vcmp.lt.s32.totalorder %v592_v46, 2 }
  0xaf   : > { %v607_v13 = vor.u32 %v606_v6, %v605_v62  ;;  %v610_v14 = vor.u32 %v609_v8, %v608_v0  ;;  %v390_v28 = vshll.u32 %v6714_v55, %v5040_v50  ;;  %v391_v32 = vshrl.u32 %v6718_v57, %v388_v12 }
  0xb0   : > { %v615_v16 = vsel %vm611_vm2, %v595_v2, %v598_v9  ;;  %v616_v18 = vsel %vm614_vm4, %v604_v11, 2102212464  ;;  %v619_v19 = vsel %vm611_vm2, %v598_v9, %v601_v10  ;;  %v623_v23 = vsel %vm611_vm2, %v601_v10, %v604_v11 }
  0xb1   : > { %v617_v25 = vsel %vm613_vm3, %v601_v10, %v616_v18  ;;  %v620_v26 = vsel %vm614_vm4, %v607_v13, 920167782  ;;  %v624_v27 = vsel %vm614_vm4, %v610_v14, 1326507024  ;;  %v393_v34 = vshll.u32 %v6718_v57, %v5040_v50 }
  0xb2   : > { %v621_v30 = vsel %vm613_vm3, %v604_v11, %v620_v26  ;;  %v625_v31 = vsel %vm613_vm3, %v607_v13, %v624_v27  ;;  %v618_v35 = vsel %vm612_vm5, %v615_v16, %v617_v25  ;;  %v394_v38 = vshrl.u32 %v6720_v59, %v388_v12 }
  0xb3   : > { %v622_v36 = vsel %vm612_vm5, %v619_v19, %v621_v30  ;;  %v626_v37 = vsel %vm612_vm5, %v623_v23, %v625_v31  ;;  %v392_v47 = vor.u32 %v391_v32, %v390_v28  ;;  %v396_v51 = vshll.u32 %v6720_v59, %v5040_v50 }
  0xb4   : > { %v5074_v39 = vmul.u32.u64.low %v5036_v45, %v626_v37  ;;  %v5075_v40 = vmul.u32.u64.high %v5036_v45, %v626_v37, %v5074_v39  ;;  %v5078_v41 = vmul.u32.u64.low %v5036_v45, %v622_v36  ;;  %v5079_v44 = vmul.u32.u64.high %v5036_v45, %v622_v36, %v5078_v41 }
  0xb5   : > { %v395_v48 = vor.u32 %v394_v38, %v393_v34  ;;  %v397_v54 = vshrl.u32 %v6723_v61, %v388_v12  ;;  %v389_v46 = vshrl.u32 %v6714_v55, %v388_v12  ;;  %v399_v56 = vshll.u32 %v6723_v61, %v5040_v50 }
  0xb6   : > { %v400_v58 = vshrl.u32 %v6741_v63, %v388_v12  ;;  %v403_v60 = vshrl.u32 %v6716_v7, %v388_v12  ;;  %v634_v62 = vmul.u32 %v5036_v45, %v618_v35  ;;  %v402_v2 = vshll.u32 %v6741_v63, %v5040_v50 }
  0xb7   : > { %v398_v0 = vor.u32 %v397_v54, %v396_v51  ;;  %vm405_vm6 = vcmp.lt.s32.totalorder %v5049_v1, 1  ;;  %vm636_vm7 = vc.u32 %v5075_v40, %v5078_v41  ;;  %v637_v3 = vadd.s32 1, %v5079_v44 }
  0xb8   : > { %v401_v4 = vor.u32 %v400_v58, %v399_v56  ;;  %vm406_vm8 = vcmp.lt.s32.totalorder %v5049_v1, 2  ;;  %v404_v5 = vor.u32 %v403_v60, %v402_v2  ;;  %vm407_vm9 = vcmp.lt.s32.totalorder %v5049_v1, 3 }
  0xb9   : > { %vm408_vm10 = vcmp.lt.s32.totalorder %v5049_v1, 4  ;;  %v413_v45 = vsel %vm405_vm6, %v392_v47, %v395_v48  ;;  %v638_v6 = vsel %vm636_vm7, %v637_v3, %v5079_v44  ;;  %v417_v9 = vsel %vm405_vm6, %v395_v48, %v398_v0 }
  0xba   : > { %v410_v8 = vsel %vm408_vm10, %v398_v0, 2102212464  ;;  %v414_v50 = vsel %vm408_vm10, %v401_v4, 920167782  ;;  %v639_v10 = vadd.s32 %v638_v6, %v634_v62  ;;  %v409_v11 = vsel %vm405_vm6, %v389_v46, %v392_v47 }
  0xbb   : > { %v415_v12 = vsel %vm407_vm9, %v398_v0, %v414_v50  ;;  %v418_v13 = vsel %vm408_vm10, %v404_v5, 1326507024  ;;  %v411_v14 = vsel %vm407_vm9, %v395_v48, %v410_v8  ;;  %vm693_vm11 = vcmp.gt.s32.totalorder %v692_v15, 0 }
  0xbc   : > { %v416_v16 = vsel %vm406_vm8, %v413_v45, %v415_v12  ;;  %v419_v18 = vsel %vm407_vm9, %v401_v4, %v418_v13  ;;  %v640_v19 = vadd.s32 536870912, %v639_v10  ;;  %v694_v30 = vsel %vm693_vm11, %v692_v15, 0 }
  0xbd   : > { %v420_v23 = vsel %vm406_vm8, %v417_v9, %v419_v18  ;;  %v5106_v25 = vmul.u32.u64.low %v5038_v49, %v416_v16  ;;  %v5107_v26 = vmul.u32.u64.high %v5038_v49, %v416_v16, %v5106_v25  ;;  %v412_v32 = vsel %vm406_vm8, %v409_v11, %v411_v14 }
  0xbe   : > { %v5111_v27 = vmul.u32.u64.low %v5038_v49, %v420_v23  ;;  %v5112_v28 = vmul.u32.u64.high %v5038_v49, %v420_v23, %v5111_v27  ;;  %v5114_v31 = vshrl.u32 %v640_v19, 30  ;;  %v696_v34 = vand.u32 31, %v694_v30 }
  0xbf   : > { %v5120_v35 = vshll.u32 %v690_v52, 8  ;;  %v480_v36 = vshrl.u32 %v479_v53, 23  ;;  %v431_v38 = vadd.s32 1, %v5107_v26  ;;  %v428_v44 = vmul.u32 %v5038_v49, %v412_v32 }
  0xc0   : > { %v642_v37 = vshll.u32 %v5114_v31, 30  ;;  %v697_v39 = vsub.s32 32, %v696_v34  ;;  %v699_v15 = vshll.u32 %v6714_v55, %v696_v34  ;;  %vm430_vm12 = vc.u32 %v5112_v28, %v5106_v25 }
  0xc1   : > { %v702_v1 = vshll.u32 %v6718_v57, %v696_v34  ;;  %v705_v42 = vshll.u32 %v6720_v59, %v696_v34  ;;  %v432_v53 = vsel %vm430_vm12, %v431_v38, %v5107_v26  ;;  %v695_v47 = vshrl.u32 %v694_v30, 5 }
  0xc2   : > { %v5132_v52 = vsub.s32 %v639_v10, %v642_v37  ;;  %v700_v48 = vshrl.u32 %v6718_v57, %v697_v39  ;;  %v433_v51 = vadd.s32 %v432_v53, %v428_v44  ;;  %v703_v54 = vshrl.u32 %v6720_v59, %v697_v39 }
  0xc3   : > { %v706_v46 = vshrl.u32 %v6723_v61, %v697_v39  ;;  %v708_v49 = vshll.u32 %v6723_v61, %v696_v34  ;;  %v709_v60 = vshrl.u32 %v6741_v63, %v697_v39  ;;  %v711_v62 = vshll.u32 %v6741_v63, %v696_v34 }
  0xc4   : > { %v645_v56 = vsub.s32 0, %v5132_v52  ;;  %v701_v58 = vor.u32 %v700_v48, %v699_v15  ;;  %v434_v0 = vadd.s32 536870912, %v433_v51  ;;  %v704_v2 = vor.u32 %v703_v54, %v702_v1 }
  0xc5   : > { %v707_v3 = vor.u32 %v706_v46, %v705_v42  ;;  %v712_v4 = vshrl.u32 %v6716_v7, %v697_v39  ;;  %v698_v45 = vshrl.u32 %v6714_v55, %v697_v39  ;;  %v710_v6 = vor.u32 %v709_v60, %v708_v49  ;;  %v299_v42 = vpop.permute.xlu1 %298 }
  0xc6   : > { %v4314_v5 = vmin.u32 %v645_v56, %v5132_v52  ;;  %v4309_v8 = vadd.s32 4294967169, %v480_v36  ;;  %v5145_v50 = vshrl.u32 %v434_v0, 30  ;;  %vm714_vm13 = vcmp.lt.s32.totalorder %v695_v47, 1 }
  0xc7   : > { %v713_v9 = vor.u32 %v712_v4, %v711_v62  ;;  %vm717_vm14 = vcmp.lt.s32.totalorder %v695_v47, 4  ;;  %vm715_vm15 = vcmp.lt.s32.totalorder %v695_v47, 2  ;;  %v722_v12 = vsel %vm714_vm13, %v701_v58, %v704_v2 }
  0xc8   : > { %v647_v10 = vclz %v4314_v5  ;;  %v719_v11 = vsel %vm717_vm14, %v707_v3, 2102212464  ;;  %v436_v13 = vshll.u32 %v5145_v50, 30  ;;  %vm716_vm0 = vcmp.lt.s32.totalorder %v695_v47, 3 }
  0xc9   : > { %v723_v14 = vsel %vm717_vm14, %v710_v6, 920167782  ;;  %v726_v16 = vsel %vm714_vm13, %v704_v2, %v707_v3  ;;  %v718_v19 = vsel %vm714_vm13, %v698_v45, %v701_v58  ;;  %v727_v26 = vsel %vm717_vm14, %v713_v9, 1326507024 }
  0xca   : > { %v4315_v18 = vadd.s32 4294967294, %v647_v10  ;;  %v724_v23 = vsel %vm716_vm0, %v707_v3, %v723_v14  ;;  %v5148_v27 = vsub.s32 %v433_v51, %v436_v13  ;;  %v720_v30 = vsel %vm716_vm0, %v704_v2, %v719_v11 }
  0xcb   : > { %v725_v32 = vsel %vm715_vm15, %v722_v12, %v724_v23  ;;  %v728_v34 = vsel %vm716_vm0, %v710_v6, %v727_v26  ;;  %v721_v48 = vsel %vm715_vm15, %v718_v19, %v720_v30  ;;  %v486_v51 = vadd.s32 1, %v4309_v8 }
  0xcc   : > { %vm4316_vm1 = vcmp.lt.s32.totalorder %v4315_v18, 0  ;;  %v729_v36 = vsel %vm715_vm15, %v726_v16, %v728_v34  ;;  %v5153_v37 = vmul.u32.u64.low %v5120_v35, %v725_v32  ;;  %v5154_v38 = vmul.u32.u64.high %v5120_v35, %v725_v32, %v5153_v37 }
  0xcd   : > { %v650_v39 = vsel %vm4316_vm1, 0, %v4315_v18  ;;  %v439_v15 = vsub.s32 0, %v5148_v27  ;;  %v5159_v44 = vmul.u32.u64.low %v5120_v35, %v729_v36  ;;  %v5160_v1 = vmul.u32.u64.high %v5120_v35, %v729_v36, %v5159_v44 }
  0xce   : > { %v655_v53 = vsub.s32 4294967266, %v650_v39  ;;  %v6708_v46 = vand.u32 2147483647, %v5034_v43  ;;  %v651_v49 = vsub.s32 32, %v650_v39  ;;  %v740_v56 = vadd.s32 1, %v5154_v38 }
  0xcf   : > { %v4306_v54 = vmin.u32 %v439_v15, %v5148_v27  ;;  %vm487_vm2 = vcmp.gt.s32.totalorder %v486_v51, 0  ;;  %v5167_v58 = vmul.f32 %v5008_v17, %v299_v42  ;;  %v737_v60 = vmul.u32 %v5120_v35, %v721_v48 }
  0xd0   : > { %vm739_vm3 = vc.u32 %v5160_v1, %v5153_v37  ;;  %v488_v62 = vsel %vm487_vm2, %v486_v51, 0  ;;  %v635_v47 = vadd.s32 %v5078_v41, %v5075_v40  ;;  %v656_v0 = vadd.s32 127, %v655_v53 }
  0xd1   : > { %6803 = vst [vmem:[#allocation5_spill] sm:$0xff] %v5167_v58  ;;  %v441_v2 = vclz %v4306_v54  ;;  %v741_v3 = vsel %vm739_vm3, %v740_v56, %v5154_v38  ;;  %v483_v5 = vand.u32 8388607, %v6708_v46  ;;  %v490_v45 = vand.u32 31, %v488_v62 }
  0xd2   : > { %v742_v4 = vadd.s32 %v741_v3, %v737_v60  ;;  %v653_v6 = vshrl.u32 %v635_v47, %v651_v49  ;;  %v891_v8 = vand.u32 2139095040, %v5167_v58  ;;  %v652_v10 = vshll.u32 %v5132_v52, %v650_v39 }
  0xd3   : > { %v491_v9 = vsub.s32 32, %v490_v45  ;;  %v657_v11 = vshll.u32 %v656_v0, 23  ;;  %v4307_v12 = vadd.s32 4294967294, %v441_v2  ;;  %v484_v40 = vor.u32 8388608, %v483_v5 }
  0xd4   : > { %v743_v35 = vadd.s32 536870912, %v742_v4  ;;  %v888_v41 = vand.u32 2147483647, %v5167_v58  ;;  %v654_v14 = vor.u32 %v653_v6, %v652_v10  ;;  %v892_v19 = vshrl.u32 %v891_v8, 23 }
  0xd5   : > { %v494_v16 = vshrl.u32 %v6718_v57, %v491_v9  ;;  %v497_v18 = vshrl.u32 %v6720_v59, %v491_v9  ;;  %v493_v26 = vshll.u32 %v6714_v55, %v490_v45  ;;  %v496_v30 = vshll.u32 %v6718_v57, %v490_v45 }
  0xd6   : > { %v5179_v13 = vshrl.u32 %v743_v35, 30  ;;  %v500_v52 = vshrl.u32 %v6723_v61, %v491_v9  ;;  %v658_v32 = vor.u32 4788187, %v657_v11  ;;  %vm4308_vm4 = vcmp.lt.s32.totalorder %v4307_v12, 0 }
  0xd7   : > { %v489_v34 = vshrl.u32 %v488_v62, 5  ;;  %v499_v36 = vshll.u32 %v6720_v59, %v490_v45  ;;  %v495_v39 = vor.u32 %v494_v16, %v493_v26  ;;  %v498_v15 = vor.u32 %v497_v18, %v496_v30 }
  0xd8   : > { %v745_v23 = vshll.u32 %v5179_v13, 30  ;;  %v502_v44 = vshll.u32 %v6723_v61, %v490_v45  ;;  %v503_v53 = vshrl.u32 %v6741_v63, %v491_v9  ;;  %v505_v48 = vshll.u32 %v6741_v63, %v490_v45 }
  0xd9   : > { %v501_v42 = vor.u32 %v500_v52, %v499_v36  ;;  %v506_v51 = vshrl.u32 %v6716_v7, %v491_v9  ;;  %v661_v54 = vcvt.s32.f32 %v654_v14  ;;  %v524_v56 = vshll.u32 %v484_v40, 8 }
  0xda   : > { %v5189_v38 = vsub.s32 %v742_v4, %v745_v23  ;;  %v4325_v60 = vadd.s32 4294967169, %v892_v19  ;;  %v659_v62 = vand.u32 2147483647, %v658_v32  ;;  %v504_v47 = vor.u32 %v503_v53, %v502_v44 }
  0xdb   : > { %v507_v0 = vor.u32 %v506_v51, %v505_v48  ;;  %vm508_vm5 = vcmp.lt.s32.totalorder %v489_v34, 1  ;;  %v5197_v2 = vsel %vm4308_vm4, 0, %v4307_v12  ;;  %v492_v4 = vshrl.u32 %v6714_v55, %v491_v9 }
  0xdc   : > { %v748_v49 = vsub.s32 0, %v5189_v38  ;;  %vm511_vm6 = vcmp.lt.s32.totalorder %v489_v34, 4  ;;  %vm510_vm7 = vcmp.lt.s32.totalorder %v489_v34, 3  ;;  %v516_v45 = vsel %vm508_vm5, %v495_v39, %v498_v15 }
  0xdd   : > { %v513_v5 = vsel %vm511_vm6, %v501_v42, 2102212464  ;;  %v517_v6 = vsel %vm511_vm6, %v504_v47, 920167782  ;;  %vm509_vm8 = vcmp.lt.s32.totalorder %v489_v34, 2  ;;  %v512_v35 = vsel %vm508_vm5, %v492_v4, %v495_v39 }
  0xde   : > { %v4318_v3 = vmin.u32 %v748_v49, %v5189_v38  ;;  %v518_v10 = vsel %vm510_vm7, %v501_v42, %v517_v6  ;;  %v514_v11 = vsel %vm510_vm7, %v498_v15, %v513_v5  ;;  %v520_v14 = vsel %vm508_vm5, %v498_v15, %v501_v42  ;;  %v294_v5 = vpop.permute.xlu0 %293 }
  0xdf   : > { %v519_v40 = vsel %vm509_vm8, %v516_v45, %v518_v10  ;;  %v521_v16 = vsel %vm511_vm6, %v507_v0, 1326507024  ;;  %vm6778_vm9 = vcmp.lt.s32.totalorder %v5011_v20, 0  ;;  %v449_v12 = vsub.s32 4294967266, %v5197_v2  ;;  %v309_v45 = vpop.permute.xlu1 %308 }
  0xe0   : > { %v750_v8 = vclz %v4318_v3  ;;  %v522_v19 = vsel %vm510_vm7, %v504_v47, %v521_v16  ;;  %v662_v9 = vmul.f32 %v661_v54, %v659_v62  ;;  %v515_v52 = vsel %vm509_vm8, %v512_v35, %v514_v11 }
  0xe1   : > { %v523_v23 = vsel %vm509_vm8, %v520_v14, %v522_v19  ;;  %v5203_v26 = vmul.u32.u64.low %v524_v56, %v519_v40  ;;  %v5204_v30 = vmul.u32.u64.high %v524_v56, %v519_v40, %v5203_v26  ;;  %v738_v36 = vadd.s32 %v5153_v37, %v5160_v1 }
  0xe2   : > { %v4319_v18 = vadd.s32 4294967294, %v750_v8  ;;  %v5207_v32 = vmul.u32.u64.low %v524_v56, %v523_v23  ;;  %v5208_v34 = vmul.u32.u64.high %v524_v56, %v523_v23, %v5207_v32  ;;  %v895_v15 = vand.u32 8388607, %v888_v41 }
  0xe3   : > { %v898_v44 = vadd.s32 1, %v4325_v60  ;;  %v445_v42 = vsub.s32 32, %v5197_v2  ;;  %v5215_v53 = vadd.s32 127, %v449_v12  ;;  %v663_v54 = vxor.u32 2147483648, %v662_v9 }
  0xe4   : > { %vm4320_vm10 = vcmp.lt.s32.totalorder %v4319_v18, 0  ;;  %v531_v49 = vmul.u32 %v524_v56, %v515_v52  ;;  %v534_v62 = vadd.s32 1, %v5204_v30  ;;  %vm533_vm12 = vc.u32 %v5208_v34, %v5203_v26 }
  0xe5   : > { %v753_v39 = vsel %vm4320_vm10, 0, %v4319_v18  ;;  %vm899_vm11 = vcmp.gt.s32.totalorder %v898_v44, 0  ;;  %v429_v1 = vadd.s32 %v5106_v25, %v5112_v28  ;;  %v896_v3 = vor.u32 8388608, %v895_v15 }
  0xe6   : > { %v754_v48 = vsub.s32 32, %v753_v39  ;;  %v758_v51 = vsub.s32 4294967266, %v753_v39  ;;  %v755_v47 = vshll.u32 %v5189_v38, %v753_v39  ;;  %v535_v60 = vsel %vm533_vm12, %v534_v62, %v5204_v30 }
  0xe7   : > { %v900_v4 = vsel %vm899_vm11, %v898_v44, 0  ;;  %v446_v56 = vshll.u32 %v5148_v27, %v5197_v2  ;;  %v536_v38 = vadd.s32 %v535_v60, %v531_v49  ;;  %v5228_v35 = vsel %vm6778_vm9, %v663_v54, %v662_v9 }
  0xe8   : > { %v756_v0 = vshrl.u32 %v738_v36, %v754_v48  ;;  %v759_v37 = vadd.s32 127, %v758_v51  ;;  %v447_v10 = vshrl.u32 %v429_v1, %v445_v42  ;;  %v451_v11 = vshll.u32 %v5215_v53, 23 }
  0xe9   : > { %v902_v25 = vand.u32 31, %v900_v4  ;;  %v537_v40 = vadd.s32 536870912, %v536_v38  ;;  %v5232_v14 = vmul.f32 %v5008_v17, %v294_v5  ;;  %v5235_v16 = vmul.f32 %v5008_v17, %v309_v45 }
  0xea   : > { %v757_v6 = vor.u32 %v756_v0, %v755_v47  ;;  %v760_v8 = vshll.u32 %v759_v37, 23  ;;  %v901_v2 = vshrl.u32 %v900_v4, 5  ;;  %v5237_v18 = vshll.u32 %v896_v3, 8 }
  0xeb   : > { %6804 = vst [vmem:[#allocation6_spill] sm:$0xff] %v5232_v14  ;;  %6805 = vst [vmem:[#allocation7_spill] sm:$0xff] %v5235_v16  ;;  %v903_v12 = vsub.s32 32, %v902_v25  ;;  %v5239_v9 = vshrl.u32 %v537_v40, 30  ;;  %v905_v23 = vshll.u32 %v6714_v55, %v902_v25  ;;  %v908_v30 = vshll.u32 %v6718_v57, %v902_v25 }
  0xec   : > { %v761_v28 = vor.u32 4788187, %v760_v8  ;;  %v764_v27 = vcvt.s32.f32 %v757_v6  ;;  %v911_v36 = vshll.u32 %v6720_v59, %v902_v25  ;;  %v914_v44 = vshll.u32 %v6723_v61, %v902_v25 }
  0xed   : > { %v906_v52 = vshrl.u32 %v6718_v57, %v903_v12  ;;  %v909_v32 = vshrl.u32 %v6720_v59, %v903_v12  ;;  %v912_v39 = vshrl.u32 %v6723_v61, %v903_v12  ;;  %v539_v15 = vshll.u32 %v5239_v9, 30 }
  0xee   : > { %v762_v19 = vand.u32 2147483647, %v761_v28  ;;  %v915_v42 = vshrl.u32 %v6741_v63, %v903_v12  ;;  %v918_v53 = vshrl.u32 %v6716_v7, %v903_v12  ;;  %v917_v49 = vshll.u32 %v6741_v63, %v902_v25 }
  0xef   : > { %v907_v48 = vor.u32 %v906_v52, %v905_v23  ;;  %v910_v51 = vor.u32 %v909_v32, %v908_v30  ;;  %v913_v54 = vor.u32 %v912_v39, %v911_v36  ;;  %vm5254_vm13 = vcmp.le.f32.partialorder %v579_v22, 0.7853982 }
  0xf0   : > { %v765_v47 = vmul.f32 %v764_v27, %v762_v19  ;;  %v5258_v0 = vsub.s32 %v536_v38, %v539_v15  ;;  %v916_v37 = vor.u32 %v915_v42, %v914_v44  ;;  %vm920_vm14 = vcmp.lt.s32.totalorder %v901_v2, 1 }
  0xf1   : > { %v919_v1 = vor.u32 %v918_v53, %v917_v49  ;;  %vm923_vm15 = vcmp.lt.s32.totalorder %v901_v2, 4  ;;  %v928_v60 = vsel %vm920_vm14, %v907_v48, %v910_v51  ;;  %v6712_v3 = vand.u32 2147483647, %v5232_v14 }
  0xf2   : > { %v542_v4 = vsub.s32 0, %v5258_v0  ;;  %vm922_vm0 = vcmp.lt.s32.totalorder %v901_v2, 3  ;;  %v929_v5 = vsel %vm923_vm15, %v916_v37, 920167782  ;;  %v788_v22 = vand.u32 2139095040, %v5232_v14 }
  0xf3   : > { %v904_v45 = vshrl.u32 %v6714_v55, %v903_v12  ;;  %vm921_vm1 = vcmp.lt.s32.totalorder %v901_v2, 2  ;;  %v925_v6 = vsel %vm923_vm15, %v913_v54, 2102212464  ;;  %v930_v8 = vsel %vm922_vm0, %v913_v54, %v929_v5 }
  0xf4   : > { %v766_v38 = vxor.u32 2147483648, %v765_v47  ;;  %v4310_v25 = vmin.u32 %v542_v4, %v5258_v0  ;;  %v931_v28 = vsel %vm921_vm1, %v928_v60, %v930_v8  ;;  %v932_v40 = vsel %vm920_vm14, %v910_v51, %v913_v54  ;;  %v304_v8 = vpop.permute.xlu0 %303 }
  0xf5   : > { %v924_v27 = vsel %vm920_vm14, %v904_v45, %v907_v48  ;;  %v933_v19 = vsel %vm923_vm15, %v919_v1, 1326507024  ;;  %v5274_v23 = vmul.u32.u64.low %v5237_v18, %v931_v28  ;;  %v5275_v30 = vmul.u32.u64.high %v5237_v18, %v931_v28, %v5274_v23 }
  0xf6   : > { %v544_v12 = vclz %v4310_v25  ;;  %v926_v52 = vsel %vm922_vm0, %v910_v51, %v925_v6  ;;  %v934_v32 = vsel %vm922_vm0, %v916_v37, %v933_v19  ;;  %v789_v36 = vshrl.u32 %v788_v22, 23 }
  0xf7   : > { %v448_v39 = vor.u32 %v447_v10, %v446_v56  ;;  %v452_v15 = vor.u32 4788187, %v451_v11  ;;  %vm6771_vm2 = vcmp.lt.s32.totalorder %v5023_v29, 0  ;;  %v935_v44 = vsel %vm921_vm1, %v932_v40, %v934_v32 }
  0xf8   : > { %v5283_v42 = vmul.u32.u64.low %v5237_v18, %v935_v44  ;;  %v5284_v53 = vmul.u32.u64.high %v5237_v18, %v935_v44, %v5283_v42  ;;  %v4321_v48 = vadd.s32 4294967169, %v789_v36  ;;  %v792_v54 = vand.u32 8388607, %v6712_v3 }
  0xf9   : > { %v667_v51 = vsel %vm5254_vm13, %v5011_v20, %v5228_v35  ;;  %v767_v56 = vsel %vm6771_vm2, %v766_v38, %v765_v47  ;;  %v927_v10 = vsel %vm921_vm1, %v924_v27, %v926_v52  ;;  %v4311_v11 = vadd.s32 4294967294, %v544_v12 }
  0xfa   : > { %v946_v49 = vadd.s32 1, %v5275_v30  ;;  %v795_v37 = vadd.s32 1, %v4321_v48  ;;  %v1097_v1 = vand.u32 2139095040, %v5235_v16  ;;  %v453_v60 = vand.u32 2147483647, %v452_v15 }
  0xfb   : > { %v455_v4 = vcvt.s32.f32 %v448_v39  ;;  %vm5299_vm3 = vcmp.le.f32.partialorder %v682_v33, 0.7853982  ;;  %4715 = vcosq.f32 %v667_v51  ;;  %v793_v2 = vor.u32 8388608, %v792_v54 }
  0xfc   : > { %v770_v35 = vsel %vm5299_vm3, %v5023_v29, %v767_v56  ;;  %v6711_v47 = vand.u32 2147483647, %v5235_v16  ;;  %4717 = vsinq.f32 %v667_v51  ;;  %v943_v22 = vmul.u32 %v5237_v18, %v927_v10 }
  0xfd   : > { %vm945_vm4 = vc.u32 %v5284_v53, %v5274_v23  ;;  %vm796_vm5 = vcmp.gt.s32.totalorder %v795_v37, 0  ;;  %vm4312_vm6 = vcmp.lt.s32.totalorder %v4311_v11, 0  ;;  %v1098_v6 = vshrl.u32 %v1097_v1, 23 }
  0xfe   : > { %v947_v33 = vsel %vm945_vm4, %v946_v49, %v5275_v30  ;;  %v797_v45 = vsel %vm796_vm5, %v795_v37, 0  ;;  %v5311_v38 = vmul.f32 %v455_v4, %v453_v60  ;;  %4719 = vcosq.f32 %v770_v35 }
  0xff   : > { %v948_v25 = vadd.s32 %v947_v33, %v943_v22  ;;  %v799_v28 = vand.u32 31, %v797_v45  ;;  %4721 = vsinq.f32 %v770_v35  ;;  %v5315_v40 = vadd.s32 %v5203_v26, %v5208_v34 }
 0x100   : > { %v5317_v18 = vshll.u32 %v793_v2, 8  ;;  %v5321_v27 = vand.u32 8388607, %v6711_v47  ;;  %v5323_v19 = vsel %vm4312_vm6, 0, %v4311_v11  ;;  %v5326_v52 = vmul.f32 %v5008_v17, %v304_v8 }
 0x101   : > { %v949_v30 = vadd.s32 536870912, %v948_v25  ;;  %v800_v12 = vsub.s32 32, %v799_v28  ;;  %v798_v32 = vshrl.u32 %v797_v45, 5  ;;  %v802_v36 = vshll.u32 %v6714_v55, %v799_v28 }
 0x102   : > { %6810 = vst [vmem:[#allocation8_spill] sm:$0xff] %v5326_v52  ;;  %v805_v39 = vshll.u32 %v6718_v57, %v799_v28  ;;  %v4333_v26 = vadd.s32 4294967169, %v1098_v6  ;;  %v808_v42 = vshll.u32 %v6720_v59, %v799_v28  ;;  %v811_v54 = vshll.u32 %v6723_v61, %v799_v28 }
 0x103   : > { %v5330_v34 = vshrl.u32 %v949_v30, 30  ;;  %v803_v15 = vshrl.u32 %v6718_v57, %v800_v12  ;;  %v806_v44 = vshrl.u32 %v6720_v59, %v800_v12  ;;  %v809_v48 = vshrl.u32 %v6723_v61, %v800_v12 }
 0x104   : > { %v812_v51 = vshrl.u32 %v6741_v63, %v800_v12  ;;  %v814_v56 = vshll.u32 %v6741_v63, %v799_v28  ;;  %v815_v37 = vshrl.u32 %v6716_v7, %v800_v12  ;;  %v801_v60 = vshrl.u32 %v6714_v55, %v800_v12 }
 0x105   : > { %6811 = vst [vmem:[#allocation9_spill] sm:$0xff] %v5330_v34  ;;  %v951_v10 = vshll.u32 %v5330_v34, 30  ;;  %v804_v11 = vor.u32 %v803_v15, %v802_v36  ;;  %v807_v49 = vor.u32 %v806_v44, %v805_v39  ;;  %v5341_v1 = vpop.eup %4715  ;;  %v810_v4 = vor.u32 %v809_v48, %v808_v42 }
 0x106   : > { %v813_v35 = vor.u32 %v812_v51, %v811_v54  ;;  %v1102_v2 = vor.u32 8388608, %v5321_v27  ;;  %v5345_v22 = vpop.eup %4717  ;;  %v816_v45 = vor.u32 %v815_v37, %v814_v56  ;;  %vm817_vm7 = vcmp.lt.s32.totalorder %v798_v32, 1  ;;  %v319_v56 = vpop.permute.xlu1 %318 }
 0x107   : > { %v5347_v33 = vsub.s32 %v948_v25, %v951_v10  ;;  %v1104_v6 = vadd.s32 1, %v4333_v26  ;;  %vm819_vm8 = vcmp.lt.s32.totalorder %v798_v32, 3  ;;  %vm820_vm10 = vcmp.lt.s32.totalorder %v798_v32, 4  ;;  %v314_v10 = vpop.permute.xlu0 %313 }
 0x108   : > { %v821_v8 = vsel %vm817_vm7, %v801_v60, %v804_v11  ;;  %v825_v28 = vsel %vm817_vm7, %v804_v11, %v807_v49  ;;  %v5349_v30 = vpop.eup %4719  ;;  %v822_v12 = vsel %vm820_vm10, %v810_v4, 2102212464  ;;  %v826_v39 = vsel %vm820_vm10, %v813_v35, 920167782 }
 0x109   : > { %6812 = vst [vmem:[#allocation10_spill] sm:$0xff] %v5349_v30  ;;  %v954_v36 = vsub.s32 0, %v5347_v33  ;;  %v829_v15 = vsel %vm817_vm7, %v807_v49, %v810_v4  ;;  %v5352_v44 = vpop.eup %4721  ;;  %vm818_vm11 = vcmp.lt.s32.totalorder %v798_v32, 2  ;;  %v823_v25 = vsel %vm819_vm8, %v807_v49, %v822_v12 }
 0x10a   : > { %v827_v27 = vsel %vm819_vm8, %v810_v4, %v826_v39  ;;  %v830_v42 = vsel %vm820_vm10, %v816_v45, 1326507024  ;;  %v6710_v51 = vand.u32 2147483647, %v5326_v52  ;;  %v824_v11 = vsel %vm818_vm11, %v821_v8, %v823_v25 }
 0x10b   : > { %v4326_v26 = vmin.u32 %v954_v36, %v5347_v33  ;;  %v828_v48 = vsel %vm818_vm11, %v825_v28, %v827_v27  ;;  %v831_v54 = vsel %vm819_vm8, %v813_v35, %v830_v42  ;;  %vm1105_vm12 = vcmp.gt.s32.totalorder %v1104_v6, 0 }
 0x10c   : > { %v832_v37 = vsel %vm818_vm11, %v829_v15, %v831_v54  ;;  %v5360_v60 = vmul.u32.u64.low %v5317_v18, %v828_v48  ;;  %v5361_v46 = vmul.u32.u64.high %v5317_v18, %v828_v48, %v5360_v60  ;;  %v1106_v28 = vsel %vm1105_vm12, %v1104_v6, 0 }
 0x10d   : > { %v956_v49 = vclz %v4326_v26  ;;  %v5365_v4 = vmul.u32.u64.low %v5317_v18, %v832_v37  ;;  %v5366_v45 = vmul.u32.u64.high %v5317_v18, %v832_v37, %v5365_v4  ;;  %v994_v32 = vand.u32 2139095040, %v5326_v52 }
 0x10e   : > { %v5370_v35 = vmul.f32 %v5008_v17, %v319_v56  ;;  %v5373_v8 = vmul.f32 %v5008_v17, %v314_v10  ;;  %v552_v36 = vsub.s32 4294967266, %v5323_v19  ;;  %v944_v12 = vadd.s32 %v5274_v23, %v5284_v53 }
 0x10f   : > { %v4327_v39 = vadd.s32 4294967294, %v956_v49  ;;  %v1108_v15 = vand.u32 31, %v1106_v28  ;;  %v840_v25 = vmul.u32 %v5317_v18, %v824_v11  ;;  %v843_v27 = vadd.s32 1, %v5361_v46 }
 0x110   : > { %6813 = vst [vmem:[#allocation11_spill] sm:$0xff] %v5370_v35  ;;  %v5380_v6 = vshll.u32 %v1102_v2, 8  ;;  %v5384_v42 = vand.u32 8388607, %v6710_v51  ;;  %vm842_vm15 = vc.u32 %v5366_v45, %v5360_v60  ;;  %v1107_v17 = vshrl.u32 %v1106_v28, 5 }
 0x111   : > { %vm4328_vm14 = vcmp.lt.s32.totalorder %v4327_v39, 0  ;;  %v1109_v26 = vsub.s32 32, %v1108_v15  ;;  %v844_v23 = vsel %vm842_vm15, %v843_v27, %v5361_v46  ;;  %v1111_v53 = vshll.u32 %v6714_v55, %v1108_v15 }
 0x112   : > { %v959_v48 = vsel %vm4328_vm14, 0, %v4327_v39  ;;  %v995_v18 = vshrl.u32 %v994_v32, 23  ;;  %v845_v2 = vadd.s32 %v844_v23, %v840_v25  ;;  %v1114_v10 = vshll.u32 %v6718_v57, %v1108_v15 }
 0x113   : > { %v960_v54 = vsub.s32 32, %v959_v48  ;;  %v964_v56 = vsub.s32 4294967266, %v959_v48  ;;  %v961_v11 = vshll.u32 %v5347_v33, %v959_v48  ;;  %v1112_v37 = vshrl.u32 %v6718_v57, %v1109_v26 }
 0x114   : > { %v1115_v49 = vshrl.u32 %v6720_v59, %v1109_v26  ;;  %v1117_v4 = vshll.u32 %v6720_v59, %v1108_v15  ;;  %v846_v24 = vadd.s32 536870912, %v845_v2  ;;  %v1118_v46 = vshrl.u32 %v6723_v61, %v1109_v26 }
 0x115   : > { %v962_v28 = vshrl.u32 %v944_v12, %v960_v54  ;;  %v965_v39 = vadd.s32 127, %v964_v56  ;;  %v1113_v27 = vor.u32 %v1112_v37, %v1111_v53  ;;  %v1120_v51 = vshll.u32 %v6723_v61, %v1108_v15 }
 0x116   : > { %v1116_v32 = vor.u32 %v1115_v49, %v1114_v10  ;;  %v1121_v25 = vshrl.u32 %v6741_v63, %v1109_v26  ;;  %v5398_v33 = vshrl.u32 %v846_v24, 30  ;;  %v1119_v48 = vor.u32 %v1118_v46, %v1117_v4 }
 0x117   : > { %v963_v23 = vor.u32 %v962_v28, %v961_v11  ;;  %v966_v47 = vshll.u32 %v965_v39, 23  ;;  %vm6762_vm0 = vcmp.lt.s32.totalorder %v5167_v58, 0  ;;  %v1110_v3 = vshrl.u32 %v6714_v55, %v1109_v26 }
 0x118   : > { %6814 = vst [vmem:[#allocation12_spill] sm:$0xff] %v5398_v33  ;;  %v1122_v12 = vor.u32 %v1121_v25, %v1120_v51  ;;  %v1123_v54 = vshll.u32 %v6741_v63, %v1108_v15  ;;  %v1124_v56 = vshrl.u32 %v6716_v7, %v1109_v26  ;;  %v848_v37 = vshll.u32 %v5398_v33, 30 }
 0x119   : > { %v967_v53 = vor.u32 4788187, %v966_v47  ;;  %v970_v10 = vcvt.s32.f32 %v963_v23  ;;  %vm1126_vm1 = vcmp.lt.s32.totalorder %v1107_v17, 1  ;;  %vm1128_vm4 = vcmp.lt.s32.totalorder %v1107_v17, 3 }
 0x11a   : > { %v1125_v49 = vor.u32 %v1124_v56, %v1123_v54  ;;  %vm1129_vm5 = vcmp.lt.s32.totalorder %v1107_v17, 4  ;;  %v1130_v24 = vsel %vm1126_vm1, %v1110_v3, %v1113_v27  ;;  %vm5407_vm6 = vcmp.le.f32.partialorder %v888_v41, 0.7853982 }
 0x11b   : > { %v6815_v11 = vmov 0  ;;  %v968_v51 = vand.u32 2147483647, %v967_v53  ;;  %v5411_v4 = vsub.s32 %v845_v2, %v848_v37  ;;  %v1131_v15 = vsel %vm1129_vm5, %v1119_v48, 2102212464 }
 0x11c   : > { %v6816_v11 = vsel %vm5407_vm6, 4294967295, %v6815_v11  ;;  %v1134_v26 = vsel %vm1126_vm1, %v1113_v27, %v1116_v32  ;;  %v1132_v47 = vsel %vm1128_vm4, %v1116_v32, %v1131_v15  ;;  %v1135_v28 = vsel %vm1129_vm5, %v1122_v12, 920167782 }
 0x11d   : > { %6817 = vst [vmem:[#allocation13_spill] sm:$0xff] %v6816_v11  ;;  %v1138_v39 = vsel %vm1126_vm1, %v1116_v32, %v1119_v48  ;;  %v1139_v46 = vsel %vm1129_vm5, %v1125_v49, 1326507024  ;;  %v971_v25 = vmul.f32 %v970_v10, %v968_v51  ;;  %v851_v23 = vsub.s32 0, %v5411_v4 }
 0x11e   : > { %vm1127_vm7 = vcmp.lt.s32.totalorder %v1107_v17, 2  ;;  %v1136_v3 = vsel %vm1128_vm4, %v1119_v48, %v1135_v28  ;;  %v1140_v54 = vsel %vm1128_vm4, %v1122_v12, %v1139_v46  ;;  %v4329_v56 = vadd.s32 4294967169, %v995_v18 }
 0x11f   : > { %v1137_v41 = vsel %vm1127_vm7, %v1134_v26, %v1136_v3  ;;  %v999_v2 = vor.u32 8388608, %v5384_v42  ;;  %v972_v53 = vxor.u32 2147483648, %v971_v25  ;;  %v4322_v27 = vmin.u32 %v851_v23, %v5411_v4 }
 0x120   : > { %v1133_v37 = vsel %vm1127_vm7, %v1130_v24, %v1132_v47  ;;  %v1141_v15 = vsel %vm1127_vm7, %v1138_v39, %v1140_v54  ;;  %v5424_v10 = vmul.u32.u64.low %v5380_v6, %v1137_v41  ;;  %v5425_v51 = vmul.u32.u64.high %v5380_v6, %v1137_v41, %v5424_v10 }
 0x121   : > { %v5420_v32 = vmul.u32.u64.low %v5380_v6, %v1141_v15  ;;  %v5421_v49 = vmul.u32.u64.high %v5380_v6, %v1141_v15, %v5420_v32  ;;  %v973_v17 = vsel %vm6762_vm0, %v972_v53, %v971_v25  ;;  %v853_v18 = vclz %v4322_v27 }
 0x122   : > { %v1001_v48 = vadd.s32 1, %v4329_v56  ;;  %v6713_v42 = vand.u32 2147483647, %v5370_v35  ;;  %v5436_v26 = vadd.s32 127, %v552_v36  ;;  %v1303_v47 = vand.u32 2139095040, %v5370_v35 }
 0x123   : > { %v841_v28 = vadd.s32 %v5360_v60, %v5366_v45  ;;  %v4323_v39 = vadd.s32 4294967294, %v853_v18  ;;  %v1149_v46 = vmul.u32 %v5380_v6, %v1133_v37  ;;  %v5445_v25 = vsel %vm5407_vm6, %v5167_v58, %v973_v17 }
 0x124   : > { %vm1002_vm8 = vcmp.gt.s32.totalorder %v1001_v48, 0  ;;  %vm1151_vm10 = vc.u32 %v5421_v49, %v5424_v10  ;;  %v1152_v36 = vadd.s32 1, %v5425_v51  ;;  %v5450_v23 = vshll.u32 %v999_v2, 8 }
 0x125   : > { %vm4324_vm11 = vcmp.lt.s32.totalorder %v4323_v39, 0  ;;  %v1003_v3 = vsel %vm1002_vm8, %v1001_v48, 0  ;;  %v1304_v41 = vshrl.u32 %v1303_v47, 23  ;;  %v5454_v60 = vand.u32 8388607, %v6713_v42 }
 0x126   : > { %v856_v45 = vsel %vm4324_vm11, 0, %v4323_v39  ;;  %v1153_v6 = vsel %vm1151_vm10, %v1152_v36, %v5425_v51  ;;  %v1004_v54 = vshrl.u32 %v1003_v3, 5  ;;  %v1005_v56 = vand.u32 31, %v1003_v3 }
 0x127   : > { %v857_v53 = vsub.s32 32, %v856_v45  ;;  %v858_v27 = vshll.u32 %v5411_v4, %v856_v45  ;;  %v861_v37 = vsub.s32 4294967266, %v856_v45  ;;  %v1154_v15 = vadd.s32 %v1153_v6, %v1149_v46 }
 0x128   : > { %v1006_v32 = vsub.s32 32, %v1005_v56  ;;  %v1008_v2 = vshll.u32 %v6714_v55, %v1005_v56  ;;  %v1011_v17 = vshll.u32 %v6718_v57, %v1005_v56  ;;  %v1014_v18 = vshll.u32 %v6720_v59, %v1005_v56 }
 0x129   : > { %v859_v48 = vshrl.u32 %v841_v28, %v857_v53  ;;  %v862_v47 = vadd.s32 127, %v861_v37  ;;  %v1155_v42 = vadd.s32 536870912, %v1154_v15  ;;  %v1017_v39 = vshll.u32 %v6723_v61, %v1005_v56 }
 0x12a   : > { %v1007_v51 = vshrl.u32 %v6714_v55, %v1006_v32  ;;  %v1009_v36 = vshrl.u32 %v6718_v57, %v1006_v32  ;;  %v1012_v4 = vshrl.u32 %v6720_v59, %v1006_v32  ;;  %v1015_v46 = vshrl.u32 %v6723_v61, %v1006_v32 }
 0x12b   : > { %v860_v3 = vor.u32 %v859_v48, %v858_v27  ;;  %v863_v45 = vshll.u32 %v862_v47, 23  ;;  %v5466_v6 = vshrl.u32 %v1155_v42, 30  ;;  %v1018_v24 = vshrl.u32 %v6741_v63, %v1006_v32 }
 0x12c   : > { %vm6763_vm12 = vcmp.lt.s32.totalorder %v5232_v14, 0  ;;  %v1010_v28 = vor.u32 %v1009_v36, %v1008_v2  ;;  %v1013_v53 = vor.u32 %v1012_v4, %v1011_v17  ;;  %v1016_v37 = vor.u32 %v1015_v46, %v1014_v18 }
 0x12d   : > { %6818 = vst [vmem:[#allocation14_spill] sm:$0xff] %v5466_v6  ;;  %v1020_v12 = vshll.u32 %v6741_v63, %v1005_v56  ;;  %v864_v55 = vor.u32 4788187, %v863_v45  ;;  %v867_v7 = vcvt.s32.f32 %v860_v3  ;;  %v1157_v57 = vshll.u32 %v5466_v6, 30 }
 0x12e   : > { %v1019_v59 = vor.u32 %v1018_v24, %v1017_v39  ;;  %v6819_v11 = vmov 1326507024   ;;  %vm1023_vm14 = vcmp.lt.s32.totalorder %v1004_v54, 1  ;;  %vm1024_vm15 = vcmp.lt.s32.totalorder %v1004_v54, 2 }
 0x12f   : > { %v1021_v61 = vshrl.u32 %v6819_v11, %v1006_v32  ;;  %vm1025_vm1 = vcmp.lt.s32.totalorder %v1004_v54, 3  ;;  %v6820_v42 = vand.u32 2147483647, %v5232_v14  ;;  %v6821_v27 = vmov 0 }
 0x130   : > { %v865_v2 = vand.u32 2147483647, %v864_v55  ;;  %v5479_v17 = vsub.s32 %v1154_v15, %v1157_v57  ;;  %vm1026_vm5 = vcmp.lt.s32.totalorder %v1004_v54, 4  ;;  %v1027_v56 = vsel %vm1023_vm14, %v1007_v51, %v1010_v28 }
 0x131   : > { %vm5475_vm4 = vcmp.le.f32.partialorder %v6820_v42, 0.7853982  ;;  %v1022_v18 = vor.u32 %v1021_v61, %v1020_v12  ;;  %v1028_v48 = vsel %vm1026_vm5, %v1016_v37, 2102212464  ;;  %v1031_v24 = vsel %vm1023_vm14, %v1010_v28, %v1013_v53 }
 0x132   : > { %v6822_v27 = vsel %vm5475_vm4, 4294967295, %v6821_v27  ;;  %v1032_v32 = vsel %vm1026_vm5, %v1019_v59, 920167782  ;;  %v868_v47 = vmul.f32 %v867_v7, %v865_v2  ;;  %v1160_v39 = vsub.s32 0, %v5479_v17 }
 0x133   : > { %6823 = vst [vmem:[#allocation15_spill] sm:$0xff] %v6822_v27  ;;  %v1029_v36 = vsel %vm1025_vm1, %v1013_v53, %v1028_v48  ;;  %v1033_v4 = vsel %vm1025_vm1, %v1016_v37, %v1032_v32  ;;  %v1035_v55 = vsel %vm1023_vm14, %v1013_v53, %v1016_v37  ;;  %v1036_v57 = vsel %vm1026_vm5, %v1022_v18, 1326507024 }
 0x134   : > { %v1034_v46 = vsel %vm1024_vm15, %v1031_v24, %v1033_v4  ;;  %v1308_v15 = vor.u32 8388608, %v5454_v60  ;;  %v869_v51 = vxor.u32 2147483648, %v868_v47  ;;  %v4334_v61 = vmin.u32 %v1160_v39, %v5479_v17 }
 0x135   : > { %v1030_v12 = vsel %vm1024_vm15, %v1027_v56, %v1029_v36  ;;  %v1037_v7 = vsel %vm1025_vm1, %v1019_v59, %v1036_v57  ;;  %v5494_v45 = vmul.u32.u64.low %v5450_v23, %v1034_v46  ;;  %v5495_v28 = vmul.u32.u64.high %v5450_v23, %v1034_v46, %v5494_v45 }
 0x136   : > { %v1038_v3 = vsel %vm1024_vm15, %v1035_v55, %v1037_v7  ;;  %v4341_v42 = vadd.s32 4294967169, %v1304_v41  ;;  %v870_v53 = vsel %vm6763_vm12, %v869_v51, %v868_v47  ;;  %v1162_v37 = vclz %v4334_v61 }
 0x137   : > { %v5501_v60 = vmul.u32.u64.low %v5450_v23, %v1038_v3  ;;  %v5502_v2 = vmul.u32.u64.high %v5450_v23, %v1038_v3, %v5501_v60  ;;  %v6824_v56 = vsub.s32 32, %v5323_v19  ;;  %4723 = vcosq.f32 %v5445_v25 }
 0x138   : > { %v1310_v18 = vadd.s32 1, %v4341_v42  ;;  %v1150_v41 = vadd.s32 %v5424_v10, %v5421_v49  ;;  %v4335_v24 = vadd.s32 4294967294, %v1162_v37  ;;  %v1046_v32 = vmul.u32 %v5450_v23, %v1030_v12 }
 0x139   : > { %v5507_v59 = vshrl.u32 %v5315_v40, %v6824_v56  ;;  %v5518_v47 = vsel %vm5475_vm4, %v5232_v14, %v870_v53  ;;  %v1049_v40 = vadd.s32 1, %v5495_v28  ;;  %v5521_v39 = vshll.u32 %v1308_v15, 8 }
 0x13a   : > { %vm1311_vm7 = vcmp.gt.s32.totalorder %v1310_v18, 0  ;;  %vm4336_vm8 = vcmp.lt.s32.totalorder %v4335_v24, 0  ;;  %vm1048_vm10 = vc.u32 %v5502_v2, %v5494_v45  ;;  %v1200_v49 = vand.u32 2139095040, %v5373_v8 }
 0x13b   : > { %v1312_v36 = vsel %vm1311_vm7, %v1310_v18, 0  ;;  %v1165_v10 = vsel %vm4336_vm8, 0, %v4335_v24  ;;  %v1050_v23 = vsel %vm1048_vm10, %v1049_v40, %v5495_v28  ;;  %v6825_v15 = vmov 683565275  }
 0x13c   : > { %v1313_v4 = vshrl.u32 %v1312_v36, 5  ;;  %v1314_v46 = vand.u32 31, %v1312_v36  ;;  %v1166_v55 = vsub.s32 32, %v1165_v10  ;;  %v1167_v57 = vshll.u32 %v5479_v17, %v1165_v10 }
 0x13d   : > { %v1170_v51 = vsub.s32 4294967266, %v1165_v10  ;;  %v1051_v61 = vadd.s32 %v1050_v23, %v1046_v32  ;;  %v6826_v3 = vmov 2475754826   ;;  %v6827_v53 = vmov 2131351028  }
 0x13e   : > { %v1315_v12 = vsub.s32 32, %v1314_v46  ;;  %v1317_v7 = vshll.u32 %v6825_v15, %v1314_v46  ;;  %v1320_v42 = vshll.u32 %v6826_v3, %v1314_v46  ;;  %v1323_v37 = vshll.u32 %v6827_v53, %v1314_v46 }
 0x13f   : > { %v1168_v60 = vshrl.u32 %v1150_v41, %v1166_v55  ;;  %v1171_v56 = vadd.s32 127, %v1170_v51  ;;  %v1052_v18 = vadd.s32 536870912, %v1051_v61  ;;  %v6828_v24 = vmov 2102212464  }
 0x140   : > { %v1326_v54 = vshll.u32 %v6828_v24, %v1314_v46  ;;  %v1316_v28 = vshrl.u32 %v6825_v15, %v1315_v12  ;;  %v1318_v40 = vshrl.u32 %v6826_v3, %v1315_v12  ;;  %v1321_v17 = vshrl.u32 %v6827_v53, %v1315_v12 }
 0x141   : > { %v1324_v32 = vshrl.u32 %v6828_v24, %v1315_v12  ;;  %v1169_v36 = vor.u32 %v1168_v60, %v1167_v57  ;;  %v1172_v10 = vshll.u32 %v1171_v56, 23  ;;  %v5536_v23 = vshrl.u32 %v1052_v18, 30  ;;  %v5540_v58 = vpop.eup %4723  ;;  %v329_v18 = vpop.permute.xlu1 %328 }
 0x142   : > { %v1327_v48 = vshrl.u32 %v6741_v63, %v1315_v12  ;;  %v1319_v6 = vor.u32 %v1318_v40, %v1317_v7  ;;  %v1322_v41 = vor.u32 %v1321_v17, %v1320_v42  ;;  %v1329_v51 = vshll.u32 %v6741_v63, %v1314_v46  ;;  %6830 = vst [vmem:[#allocation17_spill] sm:$0xff] %v5540_v58 }
 0x143   : > { %6829 = vst [vmem:[#allocation16_spill] sm:$0xff] %v5536_v23  ;;  %v1325_v55 = vor.u32 %v1324_v32, %v1323_v37  ;;  %v1173_v34 = vor.u32 4788187, %v1172_v10  ;;  %v1176_v27 = vcvt.s32.f32 %v1169_v36  ;;  %v1054_v14 = vshll.u32 %v5536_v23, 30  ;;  %v5561_v32 = vld [vmem:[%s6702_s1] ss:$0 sm:$0xff] }
 0x144   : > { %v1328_v33 = vor.u32 %v1327_v48, %v1326_v54  ;;  %v1330_v30 = vshrl.u32 %v6819_v11, %v1315_v12  ;;  %vm1332_vm11 = vcmp.lt.s32.totalorder %v1313_v4, 1  ;;  %vm1333_vm14 = vcmp.lt.s32.totalorder %v1313_v4, 2 }
 0x145   : > { %vm1334_vm15 = vcmp.lt.s32.totalorder %v1313_v4, 3  ;;  %v1174_v57 = vand.u32 2147483647, %v1173_v34  ;;  %v5544_v60 = vsub.s32 %v1051_v61, %v1054_v14  ;;  %vm1335_vm1 = vcmp.lt.s32.totalorder %v1313_v4, 4 }
 0x146   : > { %v1336_v7 = vsel %vm1332_vm11, %v1316_v28, %v1319_v6  ;;  %v1331_v42 = vor.u32 %v1330_v30, %v1329_v51  ;;  %v1337_v46 = vsel %vm1335_vm1, %v1325_v55, 2102212464  ;;  %v1340_v37 = vsel %vm1332_vm11, %v1319_v6, %v1322_v41 }
 0x147   : > { %v1341_v56 = vsel %vm1335_vm1, %v1328_v33, 920167782  ;;  %v1177_v40 = vmul.f32 %v1176_v27, %v1174_v57  ;;  %v1057_v54 = vsub.s32 0, %v5544_v60  ;;  %v1338_v48 = vsel %vm1334_vm15, %v1322_v41, %v1337_v46 }
 0x148   : > { %v1342_v12 = vsel %vm1334_vm15, %v1325_v55, %v1341_v56  ;;  %v1344_v14 = vsel %vm1332_vm11, %v1322_v41, %v1325_v55  ;;  %v1345_v61 = vsel %vm1335_vm1, %v1331_v42, 1326507024  ;;  %v6831_v28 = vand.u32 2147483647, %v5373_v8 }
 0x149   : > { %v1343_v34 = vsel %vm1333_vm14, %v1340_v37, %v1342_v12  ;;  %v4330_v17 = vmin.u32 %v1057_v54, %v5544_v60  ;;  %v1339_v6 = vsel %vm1333_vm14, %v1336_v7, %v1338_v48  ;;  %v1346_v27 = vsel %vm1334_vm15, %v1328_v33, %v1345_v61 }
 0x14a   : > { %v1204_v30 = vand.u32 8388607, %v6831_v28  ;;  %v5564_v36 = vmul.f32 %v5561_v32, %v329_v18  ;;  %v1347_v10 = vsel %vm1333_vm14, %v1344_v14, %v1346_v27  ;;  %v1201_v51 = vshrl.u32 %v1200_v49, 23 }
 0x14b   : > { %v5568_v41 = vmul.u32.u64.low %v5521_v39, %v1343_v34  ;;  %v5569_v55 = vmul.u32.u64.high %v5521_v39, %v1343_v34, %v5568_v41  ;;  %v6833_v57 = vand.u32 2147483647, %v5235_v16  ;;  %v6834_v33 = vmov 0 }
 0x14c   : > { %6832 = vst [vmem:[#allocation18_spill] sm:$0xff] %v5564_v36  ;;  %v1178_v7 = vxor.u32 2147483648, %v1177_v40  ;;  %v1059_v42 = vclz %v4330_v17  ;;  %v5579_v46 = vmul.u32.u64.low %v5521_v39, %v1347_v10  ;;  %v5580_v37 = vmul.u32.u64.high %v5521_v39, %v1347_v10, %v5579_v46 }
 0x14d   : > { %vm5574_vm5 = vcmp.le.f32.partialorder %v6833_v57, 0.7853982  ;;  %v6837_v4 = vshll.u32 %v5258_v0, %v5323_v19  ;;  %4725 = vsinq.f32 %v5445_v25  ;;  %vm6745_vm7 = vcmp.lt.s32.totalorder %v5235_v16, 0 }
 0x14e   : > { %v6835_v33 = vsel %vm5574_vm5, 4294967295, %v6834_v33  ;;  %v4337_v49 = vadd.s32 4294967169, %v1201_v51  ;;  %v6838_v18 = vshll.u32 %v5436_v26, 23  ;;  %4727 = vcosq.f32 %v5518_v47 }
 0x14f   : > { %6836 = vst [vmem:[#allocation19_spill] sm:$0xff] %v6835_v33  ;;  %v5586_v56 = vor.u32 %v5507_v59, %v6837_v4  ;;  %v4331_v48 = vadd.s32 4294967294, %v1059_v42  ;;  %v1509_v12 = vand.u32 2139095040, %v5564_v36  ;;  %v1047_v0 = vadd.s32 %v5494_v45, %v5502_v2 }
 0x150   : > { %v5592_v54 = vor.u32 4788187, %v6838_v18  ;;  %v1355_v19 = vmul.u32 %v5521_v39, %v1339_v6  ;;  %v1358_v59 = vadd.s32 1, %v5569_v55  ;;  %v1207_v25 = vadd.s32 1, %v4337_v49 }
 0x151   : > { %v1179_v34 = vsel %vm6745_vm7, %v1178_v7, %v1177_v40  ;;  %vm4332_vm8 = vcmp.lt.s32.totalorder %v4331_v48, 0  ;;  %vm1357_vm10 = vc.u32 %v5580_v37, %v5568_v41  ;;  %v1205_v26 = vor.u32 8388608, %v1204_v30 }
 0x152   : > { %v1062_v14 = vsel %vm4332_vm8, 0, %v4331_v48  ;;  %v1359_v61 = vsel %vm1357_vm10, %v1358_v59, %v5569_v55  ;;  %vm1208_vm11 = vcmp.gt.s32.totalorder %v1207_v25, 0  ;;  %v1510_v28 = vshrl.u32 %v1509_v12, 23 }
 0x153   : > { %v1063_v17 = vsub.s32 32, %v1062_v14  ;;  %v1067_v45 = vsub.s32 4294967266, %v1062_v14  ;;  %v1360_v2 = vadd.s32 %v1359_v61, %v1355_v19  ;;  %v6737_v39 = vand.u32 2147483647, %v5564_v36 }
 0x154   : > { %4729 = vsinq.f32 %v5518_v47  ;;  %v1209_v40 = vsel %vm1208_vm11, %v1207_v25, 0  ;;  %v1064_v10 = vshll.u32 %v5544_v60, %v1062_v14  ;;  %v5613_v55 = vsel %vm5574_vm5, %v5235_v16, %v1179_v34 }
 0x155   : > { %v1065_v30 = vshrl.u32 %v1047_v0, %v1063_v17  ;;  %v1068_v51 = vadd.s32 127, %v1067_v45  ;;  %v1361_v57 = vadd.s32 536870912, %v1360_v2  ;;  %v1211_v7 = vand.u32 31, %v1209_v40 }
 0x156   : > { %v5615_v42 = vshll.u32 %v1205_v26, 8  ;;  %v4349_v46 = vadd.s32 4294967169, %v1510_v28  ;;  %v5621_v47 = vand.u32 8388607, %v6737_v39  ;;  %v1210_v48 = vshrl.u32 %v1209_v40, 5 }
 0x157   : > { %v1066_v4 = vor.u32 %v1065_v30, %v1064_v10  ;;  %v1069_v49 = vshll.u32 %v1068_v51, 23  ;;  %v5617_v18 = vshrl.u32 %v1361_v57, 30  ;;  %v5623_v60 = vpop.eup %4725  ;;  %v1212_v12 = vsub.s32 32, %v1211_v7 }
 0x158   : > { %6840 = vst [vmem:[#allocation21_spill] sm:$0xff] %v5623_v60  ;;  %v1214_v0 = vshll.u32 %v6825_v15, %v1211_v7  ;;  %v1217_v19 = vshll.u32 %v6826_v3, %v1211_v7  ;;  %v5627_v59 = vpop.eup %4727  ;;  %v1220_v14 = vshll.u32 %v6827_v53, %v1211_v7  ;;  %v1223_v45 = vshll.u32 %v6828_v24, %v1211_v7 }
 0x159   : > { %6839 = vst [vmem:[#allocation20_spill] sm:$0xff] %v5617_v18  ;;  %v1070_v25 = vor.u32 4788187, %v1069_v49  ;;  %v1073_v34 = vcvt.s32.f32 %v1066_v4  ;;  %v1363_v26 = vshll.u32 %v5617_v18, 30  ;;  %v1215_v61 = vshrl.u32 %v6826_v3, %v1212_v12 }
 0x15a   : > { %v1218_v28 = vshrl.u32 %v6827_v53, %v1212_v12  ;;  %v1221_v17 = vshrl.u32 %v6828_v24, %v1212_v12  ;;  %v1224_v30 = vshrl.u32 %v6741_v63, %v1212_v12  ;;  %v1226_v51 = vshll.u32 %v6741_v63, %v1211_v7 }
 0x15b   : > { %v1071_v40 = vand.u32 2147483647, %v1070_v25  ;;  %v5635_v10 = vsub.s32 %v1360_v2, %v1363_v26  ;;  %v1216_v57 = vor.u32 %v1215_v61, %v1214_v0  ;;  %v1227_v39 = vshrl.u32 %v6819_v11, %v1212_v12 }
 0x15c   : > { %v1219_v4 = vor.u32 %v1218_v28, %v1217_v19  ;;  %v1222_v49 = vor.u32 %v1221_v17, %v1220_v14  ;;  %vm6746_vm14 = vcmp.lt.s32.totalorder %v5326_v52, 0  ;;  %v1225_v6 = vor.u32 %v1224_v30, %v1223_v45  ;;  %v324_v14 = vpop.permute.xlu0 %323 }
 0x15d   : > { %v1366_v27 = vsub.s32 0, %v5635_v10  ;;  %vm1229_vm15 = vcmp.lt.s32.totalorder %v1210_v48, 1  ;;  %v1516_v18 = vadd.s32 1, %v4349_v46  ;;  %v1074_v2 = vmul.f32 %v1073_v34, %v1071_v40 }
 0x15e   : > { %v5642_v33 = vpop.eup %4729  ;;  %v1213_v25 = vshrl.u32 %v6825_v15, %v1212_v12  ;;  %v1228_v26 = vor.u32 %v1227_v39, %v1226_v51  ;;  %vm1232_vm1 = vcmp.lt.s32.totalorder %v1210_v48, 4  ;;  %vm1230_vm8 = vcmp.lt.s32.totalorder %v1210_v48, 2 }
 0x15f   : > { %v4342_v7 = vmin.u32 %v1366_v27, %v5635_v10  ;;  %v1234_v0 = vsel %vm1232_vm1, %v1222_v49, 2102212464  ;;  %v1237_v19 = vsel %vm1229_vm15, %v1216_v57, %v1219_v4  ;;  %vm1231_vm10 = vcmp.lt.s32.totalorder %v1210_v48, 3 }
 0x160   : > { %v1238_v61 = vsel %vm1232_vm1, %v1225_v6, 920167782  ;;  %v1241_v28 = vsel %vm1229_vm15, %v1219_v4, %v1222_v49  ;;  %v1242_v17 = vsel %vm1232_vm1, %v1228_v26, 1326507024  ;;  %v1233_v45 = vsel %vm1229_vm15, %v1213_v25, %v1216_v57 }
 0x161   : > { %v1368_v46 = vclz %v4342_v7  ;;  %v1235_v34 = vsel %vm1231_vm10, %v1219_v4, %v1234_v0  ;;  %v1239_v40 = vsel %vm1231_vm10, %v1222_v49, %v1238_v61  ;;  %v1075_v12 = vxor.u32 2147483648, %v1074_v2 }
 0x162   : > { %v1240_v39 = vsel %vm1230_vm8, %v1237_v19, %v1239_v40  ;;  %v1243_v30 = vsel %vm1231_vm10, %v1225_v6, %v1242_v17  ;;  %v5651_v27 = vmul.f32 %v5561_v32, %v324_v14  ;;  %v1514_v16 = vor.u32 8388608, %v5621_v47  ;;  %v4692_v17 = vld [vmem:[%s6703_s2] sm:$0xff]  }
 0x163   : > { %v4343_v51 = vadd.s32 4294967294, %v1368_v46  ;;  %v1244_v63 = vsel %vm1230_vm8, %v1241_v28, %v1243_v30  ;;  %vm1517_vm11 = vcmp.gt.s32.totalorder %v1516_v18, 0  ;;  %v1236_v26 = vsel %vm1230_vm8, %v1233_v45, %v1235_v34 }
 0x164   : > { %v5657_v7 = vmul.u32.u64.low %v5615_v42, %v1244_v63  ;;  %v5658_v57 = vmul.u32.u64.high %v5615_v42, %v1244_v63, %v5657_v7  ;;  %v1518_v4 = vsel %vm1517_vm11, %v1516_v18, 0  ;;  %v1356_v49 = vadd.s32 %v5568_v41, %v5580_v37  ;;  %v4691_v41 = vld [vmem:[%s6703_s2 + $0x40] sm:$0xff]  }
 0x165   : > { %vm4344_vm15 = vcmp.lt.s32.totalorder %v4343_v51, 0  ;;  %v5663_v6 = vmul.u32.u64.low %v5615_v42, %v1240_v39  ;;  %v5664_v25 = vmul.u32.u64.high %v5615_v42, %v1240_v39, %v5663_v6  ;;  %v5669_v47 = vsel %vm6746_vm14, %v1075_v12, %v1074_v2  ;;  %4465 = vmatprep.subr.bf16.mxu0 %v4691_v41  ;;  %v4693_v7 = vld [vmem:[%s6703_s2 + $0x48] sm:$0xff]  }
 0x166   : > { %v1371_v48 = vsel %vm4344_vm15, 0, %v4343_v51  ;;  %v1520_v0 = vand.u32 31, %v1518_v4  ;;  %v6747_v19 = vand.u32 2147483647, %v5651_v27  ;;  %v1252_v18 = vmul.u32 %v5615_v42, %v1236_v26  ;;  %4466 = vmatpush3.bf16.msra.mxu0 %v4692_v17 }
 0x167   : > { %v1372_v63 = vsub.s32 32, %v1371_v48  ;;  %v1376_v14 = vsub.s32 4294967266, %v1371_v48  ;;  %v5673_v61 = vshrl.u32 %v1518_v4, 5  ;;  %v1373_v37 = vshll.u32 %v5635_v10, %v1371_v48  ;;  %4467 = vmatprep.subr.bf16.mxu0 %v4693_v7 }
 0x168   : > { %vm1254_vm1 = vc.u32 %v5658_v57, %v5663_v6  ;;  %v1521_v2 = vsub.s32 32, %v1520_v0  ;;  %v5681_v28 = vshll.u32 %v1514_v16, 8  ;;  %v1255_v45 = vadd.s32 1, %v5664_v25 }
 0x169   : > { %v1374_v46 = vshrl.u32 %v1356_v49, %v1372_v63  ;;  %v1377_v42 = vadd.s32 127, %v1376_v14  ;;  %v1523_v34 = vshll.u32 %v6825_v15, %v1520_v0  ;;  %v1526_v10 = vshll.u32 %v6826_v3, %v1520_v0 }
 0x16a   : > { %v1524_v40 = vshrl.u32 %v6826_v3, %v1521_v2  ;;  %v1527_v12 = vshrl.u32 %v6827_v53, %v1521_v2  ;;  %v1529_v16 = vshll.u32 %v6827_v53, %v1520_v0  ;;  %v1256_v51 = vsel %vm1254_vm1, %v1255_v45, %v5664_v25  ;;  %v4694_v25 = vld [vmem:[%s6703_s2 + $0x8] sm:$0xff]  }
 0x16b   : > { %v1375_v39 = vor.u32 %v1374_v46, %v1373_v37  ;;  %v1378_v30 = vshll.u32 %v1377_v42, 23  ;;  %v1530_v26 = vshrl.u32 %v6828_v24, %v1521_v2  ;;  %v6841_v4 = vand.u32 2147483647, %v5326_v52  ;;  %4468 = vmatpush3.bf16.msra.mxu0 %v4694_v25 }
 0x16c   : > { %v6842_v49 = vmov 0  ;;  %v1257_v48 = vadd.s32 %v1256_v51, %v1252_v18  ;;  %v1525_v63 = vor.u32 %v1524_v40, %v1523_v34  ;;  %v1528_v14 = vor.u32 %v1527_v12, %v1526_v10 }
 0x16d   : > { %vm5702_vm8 = vcmp.le.f32.partialorder %v6841_v4, 0.7853982  ;;  %vm1538_vm10 = vcmp.lt.s32.totalorder %v5673_v61, 1  ;;  %v1379_v41 = vor.u32 4788187, %v1378_v30  ;;  %v1531_v37 = vor.u32 %v1530_v26, %v1529_v16  ;;  %v4695_v16 = vld [vmem:[%s6703_s2 + $0x50] sm:$0xff]  }
 0x16e   : > { %v6843_v49 = vsel %vm5702_vm8, 4294967295, %v6842_v49  ;;  %v1532_v17 = vshll.u32 %v6828_v24, %v1520_v0  ;;  %v6845_v46 = vmov 920167782   ;;  %vm6761_vm11 = vcmp.lt.s32.totalorder %v5370_v35, 0  ;;  %4469 = vmatprep.subr.bf16.mxu0 %v4695_v16 }
 0x16f   : > { %6844 = vst [vmem:[#allocation22_spill] sm:$0xff] %v6843_v49  ;;  %v1533_v42 = vshrl.u32 %v6845_v46, %v1521_v2  ;;  %v1258_v45 = vadd.s32 536870912, %v1257_v48  ;;  %v1522_v18 = vshrl.u32 %v6825_v15, %v1521_v2  ;;  %v1535_v34 = vshll.u32 %v6845_v46, %v1520_v0 }
 0x170   : > { %v1536_v40 = vshrl.u32 %v6819_v11, %v1521_v2  ;;  %v1380_v10 = vand.u32 2147483647, %v1379_v41  ;;  %v1382_v12 = vcvt.s32.f32 %v1375_v39  ;;  %vm1541_vm15 = vcmp.lt.s32.totalorder %v5673_v61, 4  ;;  %v4696_v2 = vld [vmem:[%s6703_s2 + $0x10] sm:$0xff]  }
 0x171   : > { %v1534_v51 = vor.u32 %v1533_v42, %v1532_v17  ;;  %v5720_v30 = vshrl.u32 %v1258_v45, 30  ;;  %vm1539_vm1 = vcmp.lt.s32.totalorder %v5673_v61, 2  ;;  %v1543_v0 = vsel %vm1541_vm15, %v1531_v37, 2102212464  ;;  %4470 = vmatpush3.bf16.msra.mxu0 %v4696_v2 }
 0x172   : > { %v1537_v26 = vor.u32 %v1536_v40, %v1535_v34  ;;  %v1383_v39 = vmul.f32 %v1382_v12, %v1380_v10  ;;  %vm1540_vm7 = vcmp.lt.s32.totalorder %v5673_v61, 3  ;;  %v1546_v7 = vsel %vm1538_vm10, %v1525_v63, %v1528_v14  ;;  %v4699_v61 = vld [vmem:[%s6703_s2 + $0x60] sm:$0xff]  }
 0x173   : > { %6846 = vst [vmem:[#allocation23_spill] sm:$0xff] %v5720_v30  ;;  %v1547_v4 = vsel %vm1541_vm15, %v1534_v51, 920167782  ;;  %v1260_v25 = vshll.u32 %v5720_v30, 30  ;;  %v1542_v41 = vsel %vm1538_vm10, %v1522_v18, %v1525_v63  ;;  %v1550_v42 = vsel %vm1538_vm10, %v1528_v14, %v1531_v37  ;;  %v4697_v63 = vld [vmem:[%s6703_s2 + $0x58] sm:$0xff]  }
 0x174   : > { %v1548_v17 = vsel %vm1540_vm7, %v1531_v37, %v1547_v4  ;;  %vm375_vm14 = vcmp.lt.s32.totalorder %v5014_v21, 0  ;;  %v1384_v45 = vxor.u32 2147483648, %v1383_v39  ;;  %v1544_v34 = vsel %vm1540_vm7, %v1528_v14, %v1543_v0  ;;  %v339_v14 = vpop.permute.xlu1 %338  ;;  %v4698_v0 = vld [vmem:[%s6703_s2 + $0x18] sm:$0xff]   ;;  %4471 = vmatprep.subr.bf16.mxu0 %v4697_v63 }
 0x175   : > { %v1549_v40 = vsel %vm1539_vm1, %v1546_v7, %v1548_v17  ;;  %v1551_v10 = vsel %vm1541_vm15, %v1537_v26, 1326507024  ;;  %v5750_v18 = vsub.s32 %v1257_v48, %v1260_v25  ;;  %4731 = vcosq.f32 %v5613_v55  ;;  %4472 = vmatpush3.bf16.msra.mxu0 %v4698_v0 }
 0x176   : > { %v1552_v37 = vsel %vm1540_vm7, %v1534_v51, %v1551_v10  ;;  %v5755_v12 = vmul.u32.u64.low %v5681_v28, %v1549_v40  ;;  %v5756_v16 = vmul.u32.u64.high %v5681_v28, %v1549_v40, %v5755_v12  ;;  %v1079_v48 = vsel %vm5702_vm8, %v5326_v52, %v5669_v47  ;;  %4473 = vmatprep.subr.bf16.mxu0 %v4699_v61 }
 0x177   : > { %v1553_v51 = vsel %vm1539_vm1, %v1550_v42, %v1552_v37  ;;  %v1406_v26 = vand.u32 2139095040, %v5651_v27  ;;  %v1263_v2 = vsub.s32 0, %v5750_v18  ;;  %v1545_v7 = vsel %vm1539_vm1, %v1542_v41, %v1544_v34 }
 0x178   : > { %v5774_v4 = vmul.u32.u64.low %v5681_v28, %v1553_v51  ;;  %v5775_v25 = vmul.u32.u64.high %v5681_v28, %v1553_v51, %v5774_v4  ;;  %v1385_v17 = vsel %vm6761_vm11, %v1384_v45, %v1383_v39  ;;  %v1410_v42 = vand.u32 8388607, %v6747_v19  ;;  %v4700_v39 = vld [vmem:[%s6703_s2 + $0x20] sm:$0xff]  }
 0x179   : > { %v1407_v47 = vshrl.u32 %v1406_v26, 23  ;;  %v5782_v40 = vmul.f32 %v5561_v32, %v339_v14  ;;  %v457_v41 = vxor.u32 2147483648, %v5311_v38  ;;  %4733 = vsinq.f32 %v5613_v55  ;;  %4474 = vmatpush3.bf16.msra.mxu0 %v4700_v39 }
 0x17a   : > { %v4338_v34 = vmin.u32 %v1263_v2, %v5750_v18  ;;  %v1564_v10 = vadd.s32 1, %v5756_v16  ;;  %v6847_v45 = vand.u32 2147483647, %v5592_v54  ;;  %v6848_v63 = vcvt.s32.f32 %v5586_v56 }
 0x17b   : > { %4735 = vcosq.f32 %v1079_v48  ;;  %v6849_v14 = vand.u32 2147483647, %v5370_v35  ;;  %v6850_v0 = vmov 0  ;;  %v4345_v55 = vadd.s32 4294967169, %v1407_v47  ;;  %v4701_v47 = vld [vmem:[%s6703_s2 + $0x68] sm:$0xff]  }
 0x17c   : > { %v5798_v37 = vmul.f32 %v6848_v63, %v6847_v45  ;;  %v1265_v26 = vclz %v4338_v34  ;;  %v1561_v54 = vmul.u32 %v5681_v28, %v1545_v7  ;;  %vm1563_vm10 = vc.u32 %v5775_v25, %v5755_v12  ;;  %4475 = vmatprep.subr.bf16.mxu0 %v4701_v47 }
 0x17d   : > { %vm5802_vm7 = vcmp.le.f32.partialorder %v6849_v14, 0.7853982  ;;  %v1565_v56 = vsel %vm1563_vm10, %v1564_v10, %v5756_v16  ;;  %v1411_v2 = vor.u32 8388608, %v1410_v42  ;;  %v1413_v4 = vadd.s32 1, %v4345_v55  ;;  %v4702_v16 = vld [vmem:[%s6703_s2 + $0x28] sm:$0xff]   ;;  %v4703_v55 = vld [vmem:[%s6703_s2 + $0x70] sm:$0xff]  }
 0x17e   : > { %v6851_v0 = vsel %vm5802_vm7, 4294967295, %v6850_v0  ;;  %v5809_v51 = vsel %vm5802_vm7, %v5370_v35, %v1385_v17  ;;  %v1715_v45 = vand.u32 2139095040, %v5782_v40  ;;  %v5822_v17 = vsel %vm375_vm14, %v457_v41, %v5311_v38  ;;  %4476 = vmatpush3.bf16.msra.mxu0 %v4702_v16 }
 0x17f   : > { %6852 = vst [vmem:[#allocation24_spill] sm:$0xff] %v6851_v0  ;;  %4737 = vsinq.f32 %v1079_v48  ;;  %v4339_v28 = vadd.s32 4294967294, %v1265_v26  ;;  %v1566_v7 = vadd.s32 %v1565_v56, %v1561_v54  ;;  %v1253_v61 = vadd.s32 %v5663_v6, %v5658_v57  ;;  %v5832_v41 = vpop.eup %4731  ;;  %v4704_v56 = vld [vmem:[%s6703_s2 + $0x30] sm:$0xff]   ;;  %4477 = vmatprep.subr.bf16.mxu0 %v4703_v55 }
 0x180   : > { %4739 = vcosq.f32 %v5809_v51  ;;  %vm1414_vm15 = vcmp.gt.s32.totalorder %v1413_v4, 0  ;;  %6853 = vst [vmem:[#allocation25_spill] sm:$0xff] %v5832_v41  ;;  %v5834_v63 = vshll.u32 %v1411_v2, 8  ;;  %v1716_v14 = vshrl.u32 %v1715_v45, 23 }
 0x181   : > { %vm4340_vm1 = vcmp.lt.s32.totalorder %v4339_v28, 0  ;;  %v1567_v34 = vadd.s32 536870912, %v1566_v7  ;;  %v1415_v38 = vsel %vm1414_vm15, %v1413_v4, 0  ;;  %vm6770_vm0 = vcmp.lt.s32.totalorder %v5373_v8, 0 }
 0x182   : > { %v1268_v10 = vsel %vm4340_vm1, 0, %v4339_v28  ;;  %v1417_v39 = vand.u32 31, %v1415_v38  ;;  %v5841_v54 = vshrl.u32 %v1415_v38, 5  ;;  %4478 = vmatpush3.bf16.msra.mxu0 %v4704_v56  ;;  %4741 = vsinq.f32 %v5809_v51 }
 0x183   : > { %v1269_v57 = vsub.s32 32, %v1268_v10  ;;  %v1273_v6 = vsub.s32 4294967266, %v1268_v10  ;;  %v5839_v26 = vshrl.u32 %v1567_v34, 30  ;;  %v1270_v4 = vshll.u32 %v5750_v18, %v1268_v10  ;;  %v5849_v28 = vpop.eup %4733 }
 0x184   : > { %v1418_v47 = vsub.s32 32, %v1417_v39  ;;  %v1420_v2 = vshll.u32 %v6825_v15, %v1417_v39  ;;  %v1423_v45 = vshll.u32 %v6826_v3, %v1417_v39  ;;  %6855 = vst [vmem:[#allocation27_spill] sm:$0xff] %v5849_v28  ;;  %v1426_v38 = vshll.u32 %v6827_v53, %v1417_v39 }
 0x185   : > { %6854 = vst [vmem:[#allocation26_spill] sm:$0xff] %v5839_v26  ;;  %v1271_v16 = vshrl.u32 %v1253_v61, %v1269_v57  ;;  %v1274_v19 = vadd.s32 127, %v1273_v6  ;;  %v1569_v34 = vshll.u32 %v5839_v26, 30  ;;  %v5853_v42 = vpop.eup %4735  ;;  %v1429_v0 = vshll.u32 %v6828_v24, %v1417_v39  ;;  %v4705_v61 = vld [vmem:[%s6703_s2 + $0x78] sm:$0xff]  }
 0x186   : > { %6856 = vst [vmem:[#allocation28_spill] sm:$0xff] %v5853_v42  ;;  %v1421_v48 = vshrl.u32 %v6826_v3, %v1418_v47  ;;  %v1424_v18 = vshrl.u32 %v6827_v53, %v1418_v47  ;;  %v1427_v10 = vshrl.u32 %v6828_v24, %v1418_v47  ;;  %v1430_v56 = vshrl.u32 %v6845_v46, %v1418_v47  ;;  %v4706_v26 = vld [vmem:[%s6703_s2 + $0x38] sm:$0xff]  }
 0x187   : > { %v1272_v55 = vor.u32 %v1271_v16, %v1270_v4  ;;  %v1275_v57 = vshll.u32 %v1274_v19, 23  ;;  %v5862_v6 = vsub.s32 %v1566_v7, %v1569_v34  ;;  %v4357_v28 = vadd.s32 4294967169, %v1716_v14  ;;  %4479 = vmatprep.subr.bf16.mxu0 %v4705_v61 }
 0x188   : > { %v1422_v35 = vor.u32 %v1421_v48, %v1420_v2  ;;  %v1425_v30 = vor.u32 %v1424_v18, %v1423_v45  ;;  %v1428_v41 = vor.u32 %v1427_v10, %v1426_v38  ;;  %v1419_v19 = vshrl.u32 %v6825_v15, %v1418_v47  ;;  %4480 = vmatpush3.bf16.msra.mxu0 %v4706_v26  ;;  %v334_v18 = vpop.permute.xlu0 %333 }
 0x189   : > { %v5868_v42 = vpop.eup %4737  ;;  %v1276_v49 = vor.u32 4788187, %v1275_v57  ;;  %v1572_v52 = vsub.s32 0, %v5862_v6  ;;  %v1431_v7 = vor.u32 %v1430_v56, %v1429_v0  ;;  %v1279_v16 = vcvt.s32.f32 %v1272_v55 }
 0x18a   : > { %6857 = vst [vmem:[#allocation29_spill] sm:$0xff] %v5868_v42  ;;  %v5872_v4 = vpop.eup %4739  ;;  %v1432_v34 = vshll.u32 %v6845_v46, %v1417_v39  ;;  %v1433_v48 = vshrl.u32 %v6819_v11, %v1418_v47  ;;  %vm1435_vm10 = vcmp.lt.s32.totalorder %v5841_v54, 1  ;;  %vm1437_vm15 = vcmp.lt.s32.totalorder %v5841_v54, 3 }
 0x18b   : > { %6858 = vst [vmem:[#allocation30_spill] sm:$0xff] %v5872_v4  ;;  %v1277_v14 = vand.u32 2147483647, %v1276_v49  ;;  %v4350_v2 = vmin.u32 %v1572_v52, %v5862_v6  ;;  %vm1438_vm1 = vcmp.lt.s32.totalorder %v5841_v54, 4  ;;  %v1443_v0 = vsel %vm1435_vm10, %v1422_v35, %v1425_v30 }
 0x18c   : > { %v1434_v45 = vor.u32 %v1433_v48, %v1432_v34  ;;  %v1440_v38 = vsel %vm1438_vm1, %v1428_v41, 2102212464  ;;  %v1444_v26 = vsel %vm1438_vm1, %v1431_v7, 920167782  ;;  %vm1436_vm11 = vcmp.lt.s32.totalorder %v5841_v54, 2 }
 0x18d   : > { %v1574_v10 = vclz %v4350_v2  ;;  %v1439_v39 = vsel %vm1435_vm10, %v1419_v19, %v1422_v35  ;;  %v1445_v52 = vsel %vm1437_vm15, %v1428_v41, %v1444_v26  ;;  %v1441_v49 = vsel %vm1437_vm15, %v1425_v30, %v1440_v38 }
 0x18e   : > { %v1446_v47 = vsel %vm1436_vm11, %v1443_v0, %v1445_v52  ;;  %v1447_v61 = vsel %vm1435_vm10, %v1425_v30, %v1428_v41  ;;  %v1448_v55 = vsel %vm1438_vm1, %v1434_v45, 1326507024  ;;  %v1280_v57 = vmul.f32 %v1279_v16, %v1277_v14 }
 0x18f   : > { %v4351_v56 = vadd.s32 4294967294, %v1574_v10  ;;  %v1449_v35 = vsel %vm1437_vm15, %v1431_v7, %v1448_v55  ;;  %v5897_v19 = vmul.f32 %v5561_v32, %v334_v18  ;;  %v1722_v38 = vadd.s32 1, %v4357_v28 }
 0x190   : > { %v1450_v34 = vsel %vm1436_vm11, %v1447_v61, %v1449_v35  ;;  %v5902_v48 = vmul.u32.u64.low %v5834_v63, %v1446_v47  ;;  %v5903_v2 = vmul.u32.u64.high %v5834_v63, %v1446_v47, %v5902_v48  ;;  %v1442_v30 = vsel %vm1436_vm11, %v1439_v39, %v1441_v49 }
 0x191   : > { %vm4352_vm12 = vcmp.lt.s32.totalorder %v4351_v56, 0  ;;  %v5909_v41 = vmul.u32.u64.low %v5834_v63, %v1450_v34  ;;  %v5910_v16 = vmul.u32.u64.high %v5834_v63, %v1450_v34, %v5909_v41  ;;  %v6859_v14 = vand.u32 2147483647, %v5782_v40 }
 0x192   : > { %v1577_v7 = vsel %vm4352_vm12, 0, %v4351_v56  ;;  %vm1723_vm10 = vcmp.gt.s32.totalorder %v1722_v38, 0  ;;  %v1281_v0 = vxor.u32 2147483648, %v1280_v57  ;;  %v1562_v26 = vadd.s32 %v5755_v12, %v5775_v25 }
 0x193   : > { %v1719_v45 = vand.u32 8388607, %v6859_v14  ;;  %v1578_v28 = vsub.s32 32, %v1577_v7  ;;  %v1582_v18 = vsub.s32 4294967266, %v1577_v7  ;;  %v1458_v54 = vmul.u32 %v5834_v63, %v1442_v30 }
 0x194   : > { %v1461_v10 = vadd.s32 1, %v5903_v2  ;;  %v1724_v39 = vsel %vm1723_vm10, %v1722_v38, 0  ;;  %v1579_v51 = vshll.u32 %v5862_v6, %v1577_v7  ;;  %vm1460_vm12 = vc.u32 %v5910_v16, %v5902_v48 }
 0x195   : > { %v1580_v49 = vshrl.u32 %v1562_v26, %v1578_v28  ;;  %v1583_v47 = vadd.s32 127, %v1582_v18  ;;  %v1720_v55 = vor.u32 8388608, %v1719_v45  ;;  %v1726_v12 = vand.u32 31, %v1724_v39 }
 0x196   : > { %v1462_v61 = vsel %vm1460_vm12, %v1461_v10, %v5903_v2  ;;  %v1612_v25 = vand.u32 2139095040, %v5897_v19  ;;  %v1282_v63 = vsel %vm6770_vm0, %v1281_v0, %v1280_v57  ;;  %v1725_v38 = vshrl.u32 %v1724_v39, 5 }
 0x197   : > { %v1581_v56 = vor.u32 %v1580_v49, %v1579_v51  ;;  %v1584_v35 = vshll.u32 %v1583_v47, 23  ;;  %v1463_v34 = vadd.s32 %v1462_v61, %v1458_v54  ;;  %v1727_v30 = vsub.s32 32, %v1726_v12  ;;  %v5945_v47 = vpop.eup %4741 }
 0x198   : > { %v1729_v6 = vshll.u32 %v6825_v15, %v1726_v12  ;;  %v1732_v41 = vshll.u32 %v6826_v3, %v1726_v12  ;;  %v1735_v2 = vshll.u32 %v6827_v53, %v1726_v12  ;;  %v6860_v45 = vand.u32 2147483647, %v5373_v8 }
 0x199   : > { %v1585_v7 = vor.u32 4788187, %v1584_v35  ;;  %v1588_v14 = vcvt.s32.f32 %v1581_v56  ;;  %v1464_v26 = vadd.s32 536870912, %v1463_v34  ;;  %v1730_v57 = vshrl.u32 %v6826_v3, %v1727_v30 }
 0x19a   : > { %vm5932_vm11 = vcmp.le.f32.partialorder %v6860_v45, 0.7853982  ;;  %v1733_v0 = vshrl.u32 %v6827_v53, %v1727_v30  ;;  %v1736_v18 = vshrl.u32 %v6828_v24, %v1727_v30  ;;  %v1738_v54 = vshll.u32 %v6828_v24, %v1726_v12 }
 0x19b   : > { %vm6777_vm15 = vcmp.lt.s32.totalorder %v5564_v36, 0  ;;  %v1586_v10 = vand.u32 2147483647, %v1585_v7  ;;  %v5941_v39 = vshrl.u32 %v1464_v26, 30  ;;  %v1739_v51 = vshrl.u32 %v6845_v46, %v1727_v30 }
 0x19c   : > { %v1741_v49 = vshll.u32 %v6845_v46, %v1726_v12  ;;  %v1731_v61 = vor.u32 %v1730_v57, %v1729_v6  ;;  %v1734_v56 = vor.u32 %v1733_v0, %v1732_v41  ;;  %v1737_v35 = vor.u32 %v1736_v18, %v1735_v2 }
 0x19d   : > { %6863 = vst [vmem:[#allocation31_spill] sm:$0xff] %v5941_v39  ;;  %v1742_v45 = vshrl.u32 %v6819_v11, %v1727_v30  ;;  %vm6788_vm1 = vcmp.lt.s32.totalorder %v5034_v43, 0  ;;  %v1589_v52 = vmul.f32 %v1588_v14, %v1586_v10  ;;  %v1466_v4 = vshll.u32 %v5941_v39, 30 }
 0x19e   : > { %v1740_v42 = vor.u32 %v1739_v51, %v1738_v54  ;;  %v1760_v7 = vshll.u32 %v1720_v55, 8  ;;  %vm1747_vm10 = vcmp.lt.s32.totalorder %v1725_v38, 4  ;;  %v1613_v23 = vshrl.u32 %v1612_v25, 23 }
 0x19f   : > { %v1743_v26 = vor.u32 %v1742_v45, %v1741_v49  ;;  %v6864_v58 = vand.u32 2147483647, %v5897_v19  ;;  %v5952_v60 = vsub.s32 %v1463_v34, %v1466_v4  ;;  %v1728_v6 = vshrl.u32 %v6825_v15, %v1727_v30 }
 0x1a0   : > { %vm1744_vm12 = vcmp.lt.s32.totalorder %v1725_v38, 1  ;;  %v1749_v41 = vsel %vm1747_vm10, %v1737_v35, 2102212464  ;;  %v1590_v2 = vxor.u32 2147483648, %v1589_v52  ;;  %vm1746_vm0 = vcmp.lt.s32.totalorder %v1725_v38, 3 }
 0x1a1   : > { %v1616_v12 = vand.u32 8388607, %v6864_v58  ;;  %v1752_v14 = vsel %vm1744_vm12, %v1731_v61, %v1734_v56  ;;  %v1753_v57 = vsel %vm1747_vm10, %v1740_v42, 920167782  ;;  %v1469_v55 = vsub.s32 0, %v5952_v60 }
 0x1a2   : > { %vm1745_vm2 = vcmp.lt.s32.totalorder %v1725_v38, 2  ;;  %v1754_v0 = vsel %vm1746_vm0, %v1737_v35, %v1753_v57  ;;  %v1756_v25 = vsel %vm1744_vm12, %v1734_v56, %v1737_v35  ;;  %v1748_v18 = vsel %vm1744_vm12, %v1728_v6, %v1731_v61 }
 0x1a3   : > { %v1750_v54 = vsel %vm1746_vm0, %v1734_v56, %v1749_v41  ;;  %v1755_v58 = vsel %vm1745_vm2, %v1752_v14, %v1754_v0  ;;  %v1757_v4 = vsel %vm1747_vm10, %v1743_v26, 1326507024  ;;  %v1285_v34 = vsel %vm5932_vm11, %v5373_v8, %v1282_v63  ;;  %v349_v26 = vpop.permute.xlu1 %348 }
 0x1a4   : > { %v4346_v30 = vmin.u32 %v1469_v55, %v5952_v60  ;;  %v1758_v10 = vsel %vm1746_vm0, %v1740_v42, %v1757_v4  ;;  %v4353_v51 = vadd.s32 4294967169, %v1613_v23  ;;  %v1591_v49 = vsel %vm6777_vm15, %v1590_v2, %v1589_v52 }
 0x1a5   : > { %v1759_v45 = vsel %vm1745_vm2, %v1756_v25, %v1758_v10  ;;  %v5965_v39 = vmul.u32.u64.low %v1760_v7, %v1755_v58  ;;  %v5966_v57 = vmul.u32.u64.high %v1760_v7, %v1755_v58, %v5965_v39  ;;  %v1751_v56 = vsel %vm1745_vm2, %v1748_v18, %v1750_v54 }
 0x1a6   : > { %v1471_v61 = vclz %v4346_v30  ;;  %v5969_v38 = vmul.u32.u64.low %v1760_v7, %v1759_v45  ;;  %v5970_v35 = vmul.u32.u64.high %v1760_v7, %v1759_v45, %v5969_v38  ;;  %v6865_v63 = vxor.u32 2147483648, %v5798_v37 }
 0x1a7   : > { %4743 = vcosq.f32 %v1285_v34  ;;  %v1617_v23 = vor.u32 8388608, %v1616_v12  ;;  %v1619_v52 = vadd.s32 1, %v4353_v51  ;;  %v6866_v6 = vand.u32 2147483647, %v5564_v36 }
 0x1a8   : > { %v5977_v42 = vsel %vm6788_vm1, %v6865_v63, %v5798_v37  ;;  %4745 = vsinq.f32 %v1285_v34  ;;  %v6867_v41 = vmov 0  ;;  %v1459_v2 = vadd.s32 %v5902_v48, %v5910_v16 }
 0x1a9   : > { %vm5981_vm0 = vcmp.le.f32.partialorder %v6866_v6, 0.7853982  ;;  %v4347_v14 = vadd.s32 4294967294, %v1471_v61  ;;  %v1767_v55 = vmul.u32 %v1760_v7, %v1751_v56  ;;  %v1770_v12 = vadd.s32 1, %v5966_v57 }
 0x1aa   : > { %v6868_v41 = vsel %vm5981_vm0, 4294967295, %v6867_v41  ;;  %v5990_v37 = vsel %vm5981_vm0, %v5564_v36, %v1591_v49  ;;  %vm1620_vm2 = vcmp.gt.s32.totalorder %v1619_v52, 0  ;;  %vm1769_vm12 = vc.u32 %v5970_v35, %v5965_v39 }
 0x1ab   : > { %6869 = vst [vmem:[#allocation32_spill] sm:$0xff] %v6868_v41  ;;  %vm4348_vm10 = vcmp.lt.s32.totalorder %v4347_v14, 0  ;;  %v1621_v0 = vsel %vm1620_vm2, %v1619_v52, 0  ;;  %v5996_v25 = vmul.f32 %v5561_v32, %v349_v26  ;;  %v1771_v48 = vsel %vm1769_vm12, %v1770_v12, %v5966_v57 }
 0x1ac   : > { %v1474_v18 = vsel %vm4348_vm10, 0, %v4347_v14  ;;  %v1623_v16 = vand.u32 31, %v1621_v0  ;;  %v5999_v54 = vshll.u32 %v1617_v23, 8  ;;  %v1772_v7 = vadd.s32 %v1771_v48, %v1767_v55 }
 0x1ad   : > { %v1475_v58 = vsub.s32 32, %v1474_v18  ;;  %v1479_v4 = vsub.s32 4294967266, %v1474_v18  ;;  %v1622_v34 = vshrl.u32 %v1621_v0, 5  ;;  %v1476_v30 = vshll.u32 %v5952_v60, %v1474_v18 }
 0x1ae   : > { %v1624_v10 = vsub.s32 32, %v1623_v16  ;;  %v1626_v51 = vshll.u32 %v6825_v15, %v1623_v16  ;;  %v1629_v49 = vshll.u32 %v6826_v3, %v1623_v16  ;;  %v1773_v56 = vadd.s32 536870912, %v1772_v7 }
 0x1af   : > { %v1477_v45 = vshrl.u32 %v1459_v2, %v1475_v58  ;;  %v1480_v61 = vadd.s32 127, %v1479_v4  ;;  %v1632_v38 = vshll.u32 %v6827_v53, %v1623_v16  ;;  %v1635_v52 = vshll.u32 %v6828_v24, %v1623_v16 }
 0x1b0   : > { %v1627_v57 = vshrl.u32 %v6826_v3, %v1624_v10  ;;  %v1630_v63 = vshrl.u32 %v6827_v53, %v1624_v10  ;;  %v1633_v23 = vshrl.u32 %v6828_v24, %v1624_v10  ;;  %v6009_v6 = vshrl.u32 %v1773_v56, 30 }
 0x1b1   : > { %v1478_v26 = vor.u32 %v1477_v45, %v1476_v30  ;;  %v1481_v60 = vshll.u32 %v1480_v61, 23  ;;  %v1636_v14 = vshrl.u32 %v6845_v46, %v1624_v10  ;;  %v6012_v55 = vpop.eup %4743  ;;  %v1625_v2 = vshrl.u32 %v6825_v15, %v1624_v10 }
 0x1b2   : > { %6870 = vst [vmem:[#allocation33_spill] sm:$0xff] %v6009_v6  ;;  %v1628_v12 = vor.u32 %v1627_v57, %v1626_v51  ;;  %v1631_v0 = vor.u32 %v1630_v63, %v1629_v49  ;;  %v1634_v18 = vor.u32 %v1633_v23, %v1632_v38  ;;  %v6015_v48 = vpop.eup %4745  ;;  %vm6782_vm2 = vcmp.lt.s32.totalorder %v5651_v27, 0  ;;  %v344_v63 = vpop.permute.xlu0 %343 }
 0x1b3   : > { %v1482_v58 = vor.u32 4788187, %v1481_v60  ;;  %v1775_v4 = vshll.u32 %v6009_v6, 30  ;;  %v1637_v30 = vor.u32 %v1636_v14, %v1635_v52  ;;  %v1638_v45 = vshll.u32 %v6845_v46, %v1623_v16 }
 0x1b4   : > { %v1485_v61 = vcvt.s32.f32 %v1478_v26  ;;  %v1639_v56 = vshrl.u32 %v6819_v11, %v1624_v10  ;;  %vm1641_vm10 = vcmp.lt.s32.totalorder %v1622_v34, 1  ;;  %vm1642_vm12 = vcmp.lt.s32.totalorder %v1622_v34, 2 }
 0x1b5   : > { %v1483_v41 = vand.u32 2147483647, %v1482_v58  ;;  %v6021_v36 = vsub.s32 %v1772_v7, %v1775_v4  ;;  %vm1643_vm15 = vcmp.lt.s32.totalorder %v1622_v34, 3  ;;  %vm1644_vm9 = vcmp.lt.s32.totalorder %v1622_v34, 4 }
 0x1b6   : > { %v1640_v51 = vor.u32 %v1639_v56, %v1638_v45  ;;  %v1646_v49 = vsel %vm1644_vm9, %v1634_v18, 2102212464  ;;  %v1649_v38 = vsel %vm1641_vm10, %v1628_v12, %v1631_v0  ;;  %v1650_v57 = vsel %vm1644_vm9, %v1637_v30, 920167782 }
 0x1b7   : > { %v1486_v23 = vmul.f32 %v1485_v61, %v1483_v41  ;;  %v1778_v52 = vsub.s32 0, %v6021_v36  ;;  %v1645_v16 = vsel %vm1641_vm10, %v1625_v2, %v1628_v12  ;;  %v1651_v10 = vsel %vm1643_vm15, %v1634_v18, %v1650_v57 }
 0x1b8   : > { %v1647_v26 = vsel %vm1643_vm15, %v1631_v0, %v1646_v49  ;;  %v1652_v7 = vsel %vm1642_vm12, %v1649_v38, %v1651_v10  ;;  %v1653_v60 = vsel %vm1641_vm10, %v1631_v0, %v1634_v18  ;;  %v1654_v14 = vsel %vm1644_vm9, %v1640_v51, 1326507024 }
 0x1b9   : > { %v1487_v58 = vxor.u32 2147483648, %v1486_v23  ;;  %v4358_v4 = vmin.u32 %v1778_v52, %v6021_v36  ;;  %v1655_v45 = vsel %vm1643_vm15, %v1637_v30, %v1654_v14  ;;  %v6033_v41 = vmul.f32 %v5561_v32, %v344_v63 }
 0x1ba   : > { %v1656_v61 = vsel %vm1642_vm12, %v1653_v60, %v1655_v45  ;;  %v6037_v2 = vmul.u32.u64.low %v5999_v54, %v1652_v7  ;;  %v6038_v12 = vmul.u32.u64.high %v5999_v54, %v1652_v7, %v6037_v2  ;;  %v6779_v56 = vand.u32 2147483647, %v5996_v25 }
 0x1bb   : > { %v1780_v49 = vclz %v4358_v4  ;;  %v1648_v0 = vsel %vm1642_vm12, %v1645_v16, %v1647_v26  ;;  %v6043_v18 = vmul.u32.u64.low %v5999_v54, %v1656_v61  ;;  %v6044_v51 = vmul.u32.u64.high %v5999_v54, %v1656_v61, %v6043_v18 }
 0x1bc   : > { %4747 = vcosq.f32 %v5990_v37  ;;  %v6871_v32 = vand.u32 2147483647, %v5651_v27  ;;  %v6872_v30 = vmov 0  ;;  %v1488_v38 = vsel %vm6782_vm2, %v1487_v58, %v1486_v23 }
 0x1bd   : > { %v1921_v57 = vand.u32 2139095040, %v5996_v25  ;;  %4749 = vsinq.f32 %v5990_v37  ;;  %v4359_v34 = vadd.s32 4294967294, %v1780_v49  ;;  %v6875_v63 = vand.u32 2147483647, %v5014_v21 }
 0x1be   : > { %vm6049_vm9 = vcmp.le.f32.partialorder %v6871_v32, 0.7853982  ;;  %v459_v16 = vsub.s32 4, %v5145_v50  ;;  %v1664_v10 = vmul.u32 %v5999_v54, %v1648_v0  ;;  %v1667_v26 = vadd.s32 1, %v6038_v12 }
 0x1bf   : > { %v6873_v30 = vsel %vm6049_vm9, 4294967295, %v6872_v30  ;;  %vm6059_vm15 = vcmp.le.f32.partialorder %v6875_v63, 0.7853982  ;;  %v1922_v7 = vshrl.u32 %v1921_v57, 23  ;;  %v1925_v23 = vand.u32 8388607, %v6779_v56 }
 0x1c0   : > { %6874 = vst [vmem:[#allocation34_spill] sm:$0xff] %v6873_v30  ;;  %v1491_v37 = vsel %vm6049_vm9, %v5651_v27, %v1488_v38  ;;  %vm4360_vm10 = vcmp.lt.s32.totalorder %v4359_v34, 0  ;;  %vm1666_vm12 = vc.u32 %v6044_v51, %v6037_v2  ;;  %v1818_v60 = vand.u32 2139095040, %v6033_v41 }
 0x1c1   : > { %v1768_v14 = vadd.s32 %v5965_v39, %v5970_v35  ;;  %v1783_v58 = vsel %vm4360_vm10, 0, %v4359_v34  ;;  %v1668_v54 = vsel %vm1666_vm12, %v1667_v26, %v6038_v12  ;;  %v4365_v4 = vadd.s32 4294967169, %v1922_v7 }
 0x1c2   : > { %v1784_v45 = vsub.s32 32, %v1783_v58  ;;  %v1788_v61 = vsub.s32 4294967266, %v1783_v58  ;;  %v1669_v49 = vadd.s32 %v1668_v54, %v1664_v10  ;;  %v6783_v0 = vand.u32 2147483647, %v6033_v41 }
 0x1c3   : > { %4751 = vcosq.f32 %v1491_v37  ;;  %v1785_v18 = vshll.u32 %v6021_v36, %v1783_v58  ;;  %v1926_v32 = vor.u32 8388608, %v1925_v23  ;;  %v1928_v38 = vadd.s32 1, %v4365_v4 }
 0x1c4   : > { %v1786_v57 = vshrl.u32 %v1768_v14, %v1784_v45  ;;  %v1789_v63 = vadd.s32 127, %v1788_v61  ;;  %v1670_v56 = vadd.s32 536870912, %v1669_v49  ;;  %v1819_v6 = vshrl.u32 %v1818_v60, 23 }
 0x1c5   : > { %4753 = vsinq.f32 %v1491_v37  ;;  %vm1929_vm2 = vcmp.gt.s32.totalorder %v1928_v38, 0  ;;  %v460_v39 = vsel %vm375_vm14, %v459_v16, %v5145_v50  ;;  %v6085_v35 = vsel %vm6059_vm15, %v5014_v21, %v5822_v17 }
 0x1c6   : > { %v1787_v12 = vor.u32 %v1786_v57, %v1785_v18  ;;  %v1790_v36 = vshll.u32 %v1789_v63, 23  ;;  %v6087_v34 = vshrl.u32 %v1670_v56, 30  ;;  %v1930_v10 = vsel %vm1929_vm2, %v1928_v38, 0  ;;  %v6089_v26 = vpop.eup %4747 }
 0x1c7   : > { %6879 = vst [vmem:[#allocation36_spill] sm:$0xff] %v6089_v26  ;;  %v6092_v7 = vadd.s32 %v6037_v2, %v6044_v51  ;;  %v1932_v23 = vand.u32 31, %v1930_v10  ;;  %v6094_v37 = vshll.u32 %v1926_v32, 8  ;;  %v6098_v50 = vand.u32 8388607, %v6783_v0  ;;  %v6100_v16 = vpop.eup %4749 }
 0x1c8   : > { %6878 = vst [vmem:[#allocation35_spill] sm:$0xff] %v6087_v34  ;;  %6880 = vst [vmem:[#allocation37_spill] sm:$0xff] %v6100_v16  ;;  %v1791_v17 = vor.u32 4788187, %v1790_v36  ;;  %v1672_v60 = vshll.u32 %v6087_v34, 30  ;;  %v4361_v56 = vadd.s32 4294967169, %v1819_v6  ;;  %v1794_v58 = vcvt.s32.f32 %v1787_v12 }
 0x1c9   : > { %v6105_v14 = vsel %vm6059_vm15, 0, %v460_v39  ;;  %v1931_v2 = vshrl.u32 %v1930_v10, 5  ;;  %v1933_v51 = vsub.s32 32, %v1932_v23  ;;  %v1935_v54 = vshll.u32 %v6825_v15, %v1932_v23 }
 0x1ca   : > { %vm6794_vm14 = vcmp.lt.s32.totalorder %v5782_v40, 0  ;;  %v1792_v4 = vand.u32 2147483647, %v1791_v17  ;;  %v6109_v45 = vsub.s32 %v1669_v49, %v1672_v60  ;;  %v1938_v61 = vshll.u32 %v6826_v3, %v1932_v23 }
 0x1cb   : > { %v1941_v18 = vshll.u32 %v6827_v53, %v1932_v23  ;;  %v1936_v6 = vshrl.u32 %v6826_v3, %v1933_v51  ;;  %v1939_v52 = vshrl.u32 %v6827_v53, %v1933_v51  ;;  %v1942_v32 = vshrl.u32 %v6828_v24, %v1933_v51 }
 0x1cc   : > { %v1944_v38 = vshll.u32 %v6828_v24, %v1932_v23  ;;  %v1795_v57 = vmul.f32 %v1794_v58, %v1792_v4  ;;  %v1675_v63 = vsub.s32 0, %v6109_v45  ;;  %v1945_v39 = vshrl.u32 %v6845_v46, %v1933_v51 }
 0x1cd   : > { %v1948_v49 = vshrl.u32 %v6819_v11, %v1933_v51  ;;  %v6120_v12 = vpop.eup %4751  ;;  %v1937_v36 = vor.u32 %v1936_v6, %v1935_v54  ;;  %v1940_v10 = vor.u32 %v1939_v52, %v1938_v61  ;;  %v1943_v17 = vor.u32 %v1942_v32, %v1941_v18 }
 0x1ce   : > { %6881 = vst [vmem:[#allocation38_spill] sm:$0xff] %v6120_v12  ;;  %v1947_v60 = vshll.u32 %v6845_v46, %v1932_v23  ;;  %v6882_v0 = vand.u32 2147483647, %v5782_v40  ;;  %v6883_v34 = vmov 0  ;;  %v4354_v58 = vmin.u32 %v1675_v63, %v6109_v45 }
 0x1cf   : > { %v1946_v4 = vor.u32 %v1945_v39, %v1944_v38  ;;  %4755 = vcosq.f32 %v6085_v35  ;;  %v6132_v16 = vpop.eup %4753  ;;  %v1796_v54 = vxor.u32 2147483648, %v1795_v57  ;;  %vm1950_vm15 = vcmp.lt.s32.totalorder %v1931_v2, 1 }
 0x1d0   : > { %vm6125_vm2 = vcmp.le.f32.partialorder %v6882_v0, 0.7853982  ;;  %6885 = vst [vmem:[#allocation39_spill] sm:$0xff] %v6132_v16  ;;  %v1949_v61 = vor.u32 %v1948_v49, %v1947_v60  ;;  %vm1953_vm10 = vcmp.lt.s32.totalorder %v1931_v2, 4  ;;  %v1677_v23 = vclz %v4354_v58 }
 0x1d1   : > { %v6884_v34 = vsel %vm6125_vm2, 4294967295, %v6883_v34  ;;  %v1934_v18 = vshrl.u32 %v6825_v15, %v1933_v51  ;;  %v1955_v0 = vsel %vm1953_vm10, %v1943_v17, 2102212464  ;;  %v1958_v6 = vsel %vm1950_vm15, %v1937_v36, %v1940_v10 }
 0x1d2   : > { %vm1951_vm12 = vcmp.lt.s32.totalorder %v1931_v2, 2  ;;  %vm1952_vm1 = vcmp.lt.s32.totalorder %v1931_v2, 3  ;;  %v1959_v52 = vsel %vm1953_vm10, %v1946_v4, 920167782  ;;  %v1825_v32 = vadd.s32 1, %v4361_v56 }
 0x1d3   : > { %v4355_v38 = vadd.s32 4294967294, %v1677_v23  ;;  %v1954_v63 = vsel %vm1950_vm15, %v1934_v18, %v1937_v36  ;;  %v1960_v39 = vsel %vm1952_vm1, %v1943_v17, %v1959_v52  ;;  %v1962_v26 = vsel %vm1950_vm15, %v1940_v10, %v1943_v17 }
 0x1d4   : > { %v1797_v49 = vsel %vm6794_vm14, %v1796_v54, %v1795_v57  ;;  %v1956_v60 = vsel %vm1952_vm1, %v1940_v10, %v1955_v0  ;;  %v1961_v58 = vsel %vm1951_vm12, %v1958_v6, %v1960_v39  ;;  %v1963_v51 = vsel %vm1953_vm10, %v1949_v61, 1326507024 }
 0x1d5   : > { %vm4356_vm0 = vcmp.lt.s32.totalorder %v4355_v38, 0  ;;  %v1964_v12 = vsel %vm1952_vm1, %v1946_v4, %v1963_v51  ;;  %v6142_v16 = vmul.u32.u64.low %v6094_v37, %v1961_v58  ;;  %v6143_v30 = vmul.u32.u64.high %v6094_v37, %v1961_v58, %v6142_v16 }
 0x1d6   : > { %v1680_v56 = vsel %vm4356_vm0, 0, %v4355_v38  ;;  %v1965_v36 = vsel %vm1951_vm12, %v1962_v26, %v1964_v12  ;;  %vm1826_vm9 = vcmp.gt.s32.totalorder %v1825_v32, 0  ;;  %4757 = vsinq.f32 %v6085_v35 }
 0x1d7   : > { %v1681_v17 = vsub.s32 32, %v1680_v56  ;;  %v1685_v57 = vsub.s32 4294967266, %v1680_v56  ;;  %v1957_v10 = vsel %vm1951_vm12, %v1954_v63, %v1956_v60  ;;  %v1827_v54 = vsel %vm1826_vm9, %v1825_v32, 0 }
 0x1d8   : > { %v1800_v4 = vsel %vm6125_vm2, %v5782_v40, %v1797_v49  ;;  %v6153_v61 = vmul.u32.u64.low %v6094_v37, %v1965_v36  ;;  %v6154_v23 = vmul.u32.u64.high %v6094_v37, %v1965_v36, %v6153_v61  ;;  %v1829_v18 = vand.u32 31, %v1827_v54 }
 0x1d9   : > { %v6156_v0 = vpop.eup %4755  ;;  %v1682_v26 = vshll.u32 %v6109_v45, %v1680_v56  ;;  %v1683_v35 = vshrl.u32 %v6092_v7, %v1681_v17  ;;  %v1686_v12 = vadd.s32 127, %v1685_v57  ;;  %v1976_v2 = vadd.s32 1, %v6143_v30 }
 0x1da   : > { %v1973_v6 = vmul.u32 %v6094_v37, %v1957_v10  ;;  %v1828_v52 = vshrl.u32 %v1827_v54, 5  ;;  %v1830_v32 = vsub.s32 32, %v1829_v18  ;;  %v1832_v38 = vshll.u32 %v6825_v15, %v1829_v18 }
 0x1db   : > { %v1684_v63 = vor.u32 %v1683_v35, %v1682_v26  ;;  %v1687_v39 = vshll.u32 %v1686_v12, 23  ;;  %v1835_v49 = vshll.u32 %v6826_v3, %v1829_v18  ;;  %v1838_v60 = vshll.u32 %v6827_v53, %v1829_v18 }
 0x1dc   : > { %vm1975_vm1 = vc.u32 %v6154_v23, %v6142_v16  ;;  %v1833_v7 = vshrl.u32 %v6826_v3, %v1830_v32  ;;  %v1841_v45 = vshll.u32 %v6828_v24, %v1829_v18  ;;  %v1844_v58 = vshll.u32 %v6845_v46, %v1829_v18 }
 0x1dd   : > { %v1688_v37 = vor.u32 4788187, %v1687_v39  ;;  %v1977_v51 = vsel %vm1975_vm1, %v1976_v2, %v6143_v30  ;;  %v1831_v56 = vshrl.u32 %v6825_v15, %v1830_v32  ;;  %v1836_v36 = vshrl.u32 %v6827_v53, %v1830_v32 }
 0x1de   : > { %v1978_v17 = vadd.s32 %v1977_v51, %v1973_v6  ;;  %v1834_v57 = vor.u32 %v1833_v7, %v1832_v38  ;;  %v1839_v10 = vshrl.u32 %v6828_v24, %v1830_v32  ;;  %v1842_v54 = vshrl.u32 %v6845_v46, %v1830_v32 }
 0x1df   : > { %vm6795_vm0 = vcmp.lt.s32.totalorder %v5897_v19, 0  ;;  %v1689_v3 = vand.u32 2147483647, %v1688_v37  ;;  %v1691_v61 = vcvt.s32.f32 %v1684_v63  ;;  %v1837_v26 = vor.u32 %v1836_v36, %v1835_v49 }
 0x1e0   : > { %v1845_v18 = vshrl.u32 %v6819_v11, %v1830_v32  ;;  %v6177_v35 = vpop.eup %4757  ;;  %v1979_v30 = vadd.s32 536870912, %v1978_v17  ;;  %v1840_v12 = vor.u32 %v1839_v10, %v1838_v60  ;;  %v1843_v15 = vor.u32 %v1842_v54, %v1841_v45 }
 0x1e1   : > { %vm1847_vm9 = vcmp.lt.s32.totalorder %v1828_v52, 1  ;;  %v1692_v53 = vmul.f32 %v1691_v61, %v1689_v3  ;;  %vm1848_vm15 = vcmp.lt.s32.totalorder %v1828_v52, 2  ;;  %vm1850_vm10 = vcmp.lt.s32.totalorder %v1828_v52, 4 }
 0x1e2   : > { %v1846_v2 = vor.u32 %v1845_v18, %v1844_v58  ;;  %v6179_v24 = vshrl.u32 %v1979_v30, 30  ;;  %vm1849_vm12 = vcmp.lt.s32.totalorder %v1828_v52, 3  ;;  %v1852_v46 = vsel %vm1850_vm10, %v1840_v12, 2102212464 }
 0x1e3   : > { %v1855_v6 = vsel %vm1847_vm9, %v1834_v57, %v1837_v26  ;;  %v1693_v38 = vxor.u32 2147483648, %v1692_v53  ;;  %v1851_v63 = vsel %vm1847_vm9, %v1831_v56, %v1834_v57  ;;  %v1856_v39 = vsel %vm1850_vm10, %v1843_v15, 920167782 }
 0x1e4   : > { %v1859_v49 = vsel %vm1847_vm9, %v1837_v26, %v1840_v12  ;;  %v1981_v11 = vshll.u32 %v6179_v24, 30  ;;  %v1853_v32 = vsel %vm1849_vm12, %v1837_v26, %v1852_v46  ;;  %v1857_v7 = vsel %vm1849_vm12, %v1840_v12, %v1856_v39 }
 0x1e5   : > { %v1860_v60 = vsel %vm1850_vm10, %v1846_v2, 1326507024  ;;  %4759 = vcosq.f32 %v1800_v4  ;;  %v1858_v45 = vsel %vm1848_vm15, %v1855_v6, %v1857_v7  ;;  %v6886_v37 = vor.u32 8388608, %v6098_v50 }
 0x1e6   : > { %v1861_v58 = vsel %vm1849_vm12, %v1843_v15, %v1860_v60  ;;  %4761 = vsinq.f32 %v1800_v4  ;;  %v6887_v36 = vand.u32 2147483647, %v5897_v19  ;;  %v6888_v10 = vmov 0 }
 0x1e7   : > { %v1863_v51 = vshll.u32 %v6886_v37, 8  ;;  %v6191_v56 = vsub.s32 %v1978_v17, %v1981_v11  ;;  %v1862_v57 = vsel %vm1848_vm15, %v1859_v49, %v1861_v58  ;;  %v1854_v54 = vsel %vm1848_vm15, %v1851_v63, %v1853_v32 }
 0x1e8   : > { %vm6187_vm1 = vcmp.le.f32.partialorder %v6887_v36, 0.7853982  ;;  %v466_v26 = vand.u32 3, %v6105_v14  ;;  %v1694_v50 = vsel %vm6795_vm0, %v1693_v38, %v1692_v53  ;;  %v1974_v17 = vadd.s32 %v6142_v16, %v6154_v23 }
 0x1e9   : > { %v6889_v10 = vsel %vm6187_vm1, 4294967295, %v6888_v10  ;;  %v6195_v3 = vmul.u32.u64.low %v1863_v51, %v1862_v57  ;;  %v6196_v61 = vmul.u32.u64.high %v1863_v51, %v1862_v57, %v6195_v3  ;;  %v1984_v4 = vsub.s32 0, %v6191_v56 }
 0x1ea   : > { %v6202_v18 = vmul.u32.u64.low %v1863_v51, %v1858_v45  ;;  %v6203_v30 = vmul.u32.u64.high %v1863_v51, %v1858_v45, %v6202_v18  ;;  %v469_v12 = vxor.u32 2147483648, %v6177_v35  ;;  %v472_v52 = vxor.u32 2147483648, %v6156_v0 }
 0x1eb   : > { %v6890_v15 = vand.u32 2147483647, %v5034_v43  ;;  %v4366_v53 = vmin.u32 %v1984_v4, %v6191_v56  ;;  %v1870_v46 = vmul.u32 %v1863_v51, %v1854_v54  ;;  %v562_v6 = vsub.s32 4, %v5239_v9 }
 0x1ec   : > { %v6224_v23 = vsel %vm6187_vm1, %v5897_v19, %v1694_v50  ;;  %vm1872_vm15 = vc.u32 %v6196_v61, %v6202_v18  ;;  %vm468_vm10 = vcmp.eq.s32.totalorder %v466_v26, 0  ;;  %vm471_vm12 = vcmp.eq.s32.totalorder %v466_v26, 2 }
 0x1ed   : > { %vm6211_vm9 = vcmp.le.f32.partialorder %v6890_v15, 0.7853982  ;;  %v1986_v38 = vclz %v4366_v53  ;;  %v1873_v63 = vadd.s32 1, %v6203_v30  ;;  %vm465_vm14 = vweird.f32 %v5014_v21 }
 0x1ee   : > { %v564_v16 = vsel %vm6211_vm9, %v5034_v43, %v5977_v42  ;;  %v470_v39 = vsel %vm468_vm10, %v6156_v0, %v469_v12  ;;  %vm6893_vm0 = vcmp.lt.s32.totalorder %v5034_v43, 0  ;;  %v473_v49 = vsel %vm471_vm12, %v472_v52, %v6177_v35 }
 0x1ef   : > { %v563_v42 = vsel %vm6893_vm0, %v562_v6, %v5239_v9  ;;  %4763 = vcosq.f32 %v564_v16  ;;  %v2114_v32 = vadd.s32 3, %v6105_v14  ;;  %v4367_v7 = vadd.s32 4294967294, %v1986_v38  ;;  %v6238_v45 = vpop.eup %4759 }
 0x1f0   : > { %v565_v11 = vsel %vm6211_vm9, 0, %v563_v42  ;;  %v1874_v60 = vsel %vm1872_vm15, %v1873_v63, %v6203_v30  ;;  %vm467_vm2 = vcmp.lt.s32.totalorder %v466_v26, 2  ;;  %4765 = vsinq.f32 %v564_v16  ;;  %v6241_v51 = vpop.eup %4761 }
 0x1f1   : > { %4767 = vcosq.f32 %v6224_v23  ;;  %v1875_v58 = vadd.s32 %v1874_v60, %v1870_v46  ;;  %v2115_v37 = vand.u32 3, %v2114_v32  ;;  %v2218_v9 = vadd.s32 3, %v565_v11 }
 0x1f2   : > { %vm4368_vm0 = vcmp.lt.s32.totalorder %v4367_v7, 0  ;;  %v6244_v36 = vadd.s32 %v6202_v18, %v6196_v61  ;;  %v474_v57 = vsel %vm467_vm2, %v470_v39, %v473_v49  ;;  %v665_v14 = vsub.s32 4, %v5114_v31 }
 0x1f3   : > { %v1989_v54 = vsel %vm4368_vm0, 0, %v4367_v7  ;;  %v1876_v3 = vadd.s32 536870912, %v1875_v58  ;;  %v569_v26 = vand.u32 3, %v565_v11  ;;  %vm2117_vm9 = vcmp.eq.s32.totalorder %v2115_v37, 0 }
 0x1f4   : > { %v1990_v50 = vsub.s32 32, %v1989_v54  ;;  %v1994_v4 = vsub.s32 4294967266, %v1989_v54  ;;  %vm2116_vm15 = vcmp.lt.s32.totalorder %v2115_v37, 2  ;;  %v2119_v30 = vsel %vm2117_vm9, %v6156_v0, %v469_v12 }
 0x1f5   : > { %v1991_v15 = vshll.u32 %v6191_v56, %v1989_v54  ;;  %v6249_v2 = vshrl.u32 %v1876_v3, 30  ;;  %vm2120_vm10 = vcmp.eq.s32.totalorder %v2115_v37, 2  ;;  %v2219_v53 = vand.u32 3, %v2218_v9 }
 0x1f6   : > { %v1992_v61 = vshrl.u32 %v1974_v17, %v1990_v50  ;;  %v1995_v18 = vadd.s32 127, %v1994_v4  ;;  %v2122_v46 = vsel %vm2120_vm10, %v472_v52, %v6177_v35  ;;  %vm6894_vm12 = vcmp.lt.s32.totalorder %v5011_v20, 0 }
 0x1f7   : > { %v666_v6 = vsel %vm6894_vm12, %v665_v14, %v5114_v31  ;;  %v1878_v16 = vshll.u32 %v6249_v2, 30  ;;  %v475_v0 = vsel %vm465_vm14, nan, %v474_v57  ;;  %vm570_vm0 = vcmp.lt.s32.totalorder %v569_v26, 2 }
 0x1f8   : > { %v2123_v56 = vsel %vm2116_vm15, %v2119_v30, %v2122_v46  ;;  %v1993_v12 = vor.u32 %v1992_v61, %v1991_v15  ;;  %v1996_v38 = vshll.u32 %v1995_v18, 23  ;;  %vm571_vm9 = vcmp.eq.s32.totalorder %v569_v26, 0 }
 0x1f9   : > { %vm574_vm1 = vcmp.eq.s32.totalorder %v569_v26, 2  ;;  %v4764_v17 = vpop.eup %4763  ;;  %vm6799_vm2 = vcmp.lt.s32.totalorder %v5996_v25, 0  ;;  %v6260_v63 = vsub.s32 %v1875_v58, %v1878_v16  ;;  %vm2220_vm10 = vcmp.lt.s32.totalorder %v2219_v53, 2 }
 0x1fa   : > { %vm2221_vm7 = vcmp.eq.s32.totalorder %v2219_v53, 0  ;;  %v668_v31 = vsel %vm5254_vm13, 0, %v666_v6  ;;  %v4766_v35 = vpop.eup %4765  ;;  %v1997_v52 = vor.u32 4788187, %v1996_v38  ;;  %v575_v39 = vxor.u32 2147483648, %v4764_v17 }
 0x1fb   : > { %v2124_v42 = vsel %vm465_vm14, nan, %v2123_v56  ;;  %v768_v49 = vsub.s32 4, %v5179_v13  ;;  %v6267_v11 = vpop.eup %4767  ;;  %v6895_v32 = vand.u32 2147483647, %v5996_v25  ;;  %v2000_v60 = vcvt.s32.f32 %v1993_v12 }
 0x1fc   : > { %v1881_v62 = vsub.s32 0, %v6260_v63  ;;  %v572_v58 = vxor.u32 2147483648, %v4766_v35  ;;  %vm2224_vm13 = vcmp.eq.s32.totalorder %v2219_v53, 2  ;;  %v1998_v37 = vand.u32 2147483647, %v1997_v52 }
 0x1fd   : > { %vm6271_vm15 = vcmp.le.f32.partialorder %v6895_v32, 0.7853982  ;;  %v576_v9 = vsel %vm574_vm1, %v575_v39, %v4766_v35  ;;  %v2226_v21 = vsel %vm2224_vm13, %v575_v39, %v4766_v35  ;;  %vm6898_vm14 = vcmp.lt.s32.totalorder %v5023_v29, 0  ;;  %v6901_v35 = vld [vmem:[#allocation10_spill] sm:$0xff] }
 0x1fe   : > { %v769_v57 = vsel %vm6898_vm14, %v768_v49, %v5179_v13  ;;  %v4362_v14 = vmin.u32 %v1881_v62, %v6260_v63  ;;  %v573_v54 = vsel %vm571_vm9, %v4764_v17, %v572_v58  ;;  %v2223_v3 = vsel %vm2221_vm7, %v4764_v17, %v572_v58  ;;  %v6902_v62 = vld [vmem:[#allocation12_spill] sm:$0xff] }
 0x1ff   : > { %v771_v50 = vsel %vm5299_vm3, 0, %v769_v57  ;;  %v2001_v4 = vmul.f32 %v2000_v60, %v1998_v37  ;;  %v577_v30 = vsel %vm570_vm0, %v573_v54, %v576_v9  ;;  %v2227_v15 = vsel %vm2220_vm10, %v2223_v3, %v2226_v21 }
 0x200   : > { %v675_v61 = vxor.u32 2147483648, %v5345_v22  ;;  %v1883_v18 = vclz %v4362_v14  ;;  %vm6899_vm1 = vweird.f32 %v5034_v43  ;;  %vm671_vm9 = vweird.f32 %v5011_v20  ;;  %v6910_v20 = vld [vmem:[#allocation21_spill] sm:$0xff] }
 0x201   : > { %v578_v13 = vsel %vm6899_vm1, nan, %v577_v30  ;;  %vm6900_vm12 = vmmov %vm6899_vm1  ;;  %v2322_v6 = vadd.s32 3, %v668_v31  ;;  %v2002_v16 = vxor.u32 2147483648, %v2001_v4  ;;  %v2426_v12 = vadd.s32 3, %v771_v50 }
 0x202   : > { %v2228_v46 = vsel %vm6900_vm12, nan, %v2227_v15  ;;  %v3685_v56 = vpack.c.bf16 %v578_v13, %v475_v0  ;;  %v4363_v26 = vadd.s32 4294967294, %v1883_v18  ;;  %v678_v53 = vxor.u32 2147483648, %v5341_v1 }
 0x203   : > { %v3686_v5 = vpack.c.bf16 %v2228_v46, %v2124_v42  ;;  %vm774_vm3 = vweird.f32 %v5023_v29  ;;  %v2323_v38 = vand.u32 3, %v2322_v6  ;;  %v2003_v17 = vsel %vm6799_vm2, %v2002_v16, %v2001_v4 }
 0x204   : > { %v778_v43 = vxor.u32 2147483648, %v5352_v44  ;;  %v781_v52 = vxor.u32 2147483648, %v6901_v35  ;;  %v2427_v39 = vand.u32 3, %v2426_v12  ;;  %vm4364_vm7 = vcmp.lt.s32.totalorder %v4363_v26, 0 }
 0x205   : > { %3868 = vmatprep.mubr.bf16.mxu0 %v3686_v5  ;;  %vm2325_vm0 = vcmp.eq.s32.totalorder %v2323_v38, 0  ;;  %v672_v0 = vand.u32 3, %v668_v31  ;;  %v775_v42 = vand.u32 3, %v771_v50  ;;  %v6302_v49 = vsel %vm6271_vm15, %v5996_v25, %v2003_v17 }
 0x206   : > { %3869 = vmatmul.mubr.bf16.vlgmr.msra.gmra.mrb[0].mxu0 %v3685_v56  ;;  %v1886_v32 = vsel %vm4364_vm7, 0, %v4363_v26  ;;  %v2327_v60 = vsel %vm2325_vm0, %v5341_v1, %v675_v61  ;;  %v871_v58 = vsub.s32 4, %v6902_v62  ;;  %vm2324_vm10 = vcmp.lt.s32.totalorder %v2323_v38, 2  ;;  %v6903_v56 = vld [vmem:[#allocation6_spill] sm:$0xff] }
 0x207   : > { %v1887_v37 = vsub.s32 32, %v1886_v32  ;;  %v1891_v9 = vsub.s32 4294967266, %v1886_v32  ;;  %vm2328_vm13 = vcmp.eq.s32.totalorder %v2323_v38, 2  ;;  %v1888_v21 = vshll.u32 %v6260_v63, %v1886_v32 }
 0x208   : > { %v2330_v57 = vsel %vm2328_vm13, %v678_v53, %v5345_v22  ;;  %vm2429_vm14 = vcmp.eq.s32.totalorder %v2427_v39, 0  ;;  %vm2432_vm1 = vcmp.eq.s32.totalorder %v2427_v39, 2  ;;  %vm2428_vm12 = vcmp.lt.s32.totalorder %v2427_v39, 2 }
 0x209   : > { %v1889_v31 = vshrl.u32 %v6244_v36, %v1887_v37  ;;  %v1892_v14 = vadd.s32 127, %v1891_v9  ;;  %v2331_v54 = vsel %vm2324_vm10, %v2327_v60, %v2330_v57  ;;  %v2431_v3 = vsel %vm2429_vm14, %v6901_v35, %v778_v43 }
 0x20a   : > { %v2332_v50 = vsel %vm671_vm9, nan, %v2331_v54  ;;  %v2434_v4 = vsel %vm2432_vm1, %v781_v52, %v5352_v44  ;;  %vm674_vm7 = vcmp.eq.s32.totalorder %v672_v0, 0  ;;  %vm6800_vm0 = vcmp.lt.s32.totalorder %v6033_v41, 0 }
 0x20b   : > { %v1890_v30 = vor.u32 %v1889_v31, %v1888_v21  ;;  %v1893_v15 = vshll.u32 %v1892_v14, 23  ;;  %v2435_v63 = vsel %vm2428_vm12, %v2431_v3, %v2434_v4  ;;  %v676_v18 = vsel %vm674_vm7, %v5341_v1, %v675_v61  ;;  %v6914_v3 = vld [vmem:[#allocation17_spill] sm:$0xff] }
 0x20c   : > { %v2436_v36 = vsel %vm774_vm3, nan, %v2435_v63  ;;  %vm673_vm10 = vcmp.lt.s32.totalorder %v672_v0, 2  ;;  %vm677_vm13 = vcmp.eq.s32.totalorder %v672_v0, 2  ;;  %vm776_vm14 = vcmp.lt.s32.totalorder %v775_v42, 2 }
 0x20d   : > { %v1894_v13 = vor.u32 4788187, %v1893_v15  ;;  %v3688_v46 = vpack.c.bf16 %v2436_v36, %v2332_v50  ;;  %v679_v6 = vsel %vm677_vm13, %v678_v53, %v5345_v22  ;;  %vm777_vm2 = vcmp.eq.s32.totalorder %v775_v42, 0  ;;  %v6906_v53 = vld [vmem:[#allocation9_spill] sm:$0xff] }
 0x20e   : > { %v680_v16 = vsel %vm673_vm10, %v676_v18, %v679_v6  ;;  %v779_v5 = vsel %vm777_vm2, %v6901_v35, %v778_v43  ;;  %vm780_vm1 = vcmp.eq.s32.totalorder %v775_v42, 2  ;;  %vm6904_vm12 = vcmp.lt.s32.totalorder %v6903_v56, 0  ;;  %v6907_v42 = vld [vmem:[#allocation5_spill] sm:$0xff] }
 0x20f   : > { %v872_v1 = vsel %vm6904_vm12, %v871_v58, %v6902_v62  ;;  %v1895_v61 = vand.u32 2147483647, %v1894_v13  ;;  %v1897_v12 = vcvt.s32.f32 %v1890_v30  ;;  %3876 = vmatprep.mubr.bf16.mxu0 %v3688_v46  ;;  %v782_v26 = vsel %vm780_vm1, %v781_v52, %v5352_v44  ;;  %v6915_v30 = vld [vmem:[#allocation16_spill] sm:$0xff] }
 0x210   : > { %v874_v17 = vsel %vm5475_vm4, 0, %v872_v1  ;;  %4769 = vsinq.f32 %v6224_v23  ;;  %v783_v22 = vsel %vm776_vm14, %v779_v5, %v782_v26  ;;  %vm877_vm7 = vweird.f32 %v6903_v56  ;;  %v6921_v58 = vld [vmem:[#allocation28_spill] sm:$0xff] }
 0x211   : > { %v974_v43 = vsub.s32 4, %v6906_v53  ;;  %4771 = vcosq.f32 %v6302_v49  ;;  %v1898_v35 = vmul.f32 %v1897_v12, %v1895_v61  ;;  %v681_v39 = vsel %vm671_vm9, nan, %v680_v16 }
 0x212   : > { %v784_v0 = vsel %vm774_vm3, nan, %v783_v22  ;;  %v881_v52 = vxor.u32 2147483648, %v5642_v33  ;;  %vm6908_vm4 = vcmp.lt.s32.totalorder %v6907_v42, 0  ;;  %v2530_v32 = vadd.s32 3, %v874_v17 }
 0x213   : > { %v3687_v44 = vpack.c.bf16 %v784_v0, %v681_v39  ;;  %v975_v23 = vsel %vm6908_vm4, %v974_v43, %v6906_v53  ;;  %v1899_v60 = vxor.u32 2147483648, %v1898_v35  ;;  %v884_v62 = vxor.u32 2147483648, %v5627_v59  ;;  %v6916_v53 = vld [vmem:[#allocation8_spill] sm:$0xff] }
 0x214   : > { %v977_v37 = vsel %vm5407_vm6, 0, %v975_v23  ;;  %v878_v9 = vand.u32 3, %v874_v17  ;;  %vm980_vm2 = vweird.f32 %v6907_v42  ;;  %v984_v29 = vxor.u32 2147483648, %v6910_v20  ;;  %v6919_v23 = vld [vmem:[#allocation14_spill] sm:$0xff] }
 0x215   : > { %3877 = vmatmul.mubr.bf16.gmra.mrb[4].mxu0 %v3687_v44  ;;  %v2531_v21 = vand.u32 3, %v2530_v32  ;;  %v2634_v57 = vadd.s32 3, %v977_v37  ;;  %v6911_v31 = vand.u32 2147483647, %v6033_v41  ;;  %v1900_v54 = vsel %vm6800_vm0, %v1899_v60, %v1898_v35 }
 0x216   : > { %v987_v50 = vxor.u32 2147483648, %v6914_v3  ;;  %v981_v4 = vand.u32 3, %v977_v37  ;;  %v1077_v15 = vsub.s32 4, %v6915_v30  ;;  %vm880_vm10 = vcmp.eq.s32.totalorder %v878_v9, 0 }
 0x217   : > { %vm6344_vm9 = vcmp.le.f32.partialorder %v6911_v31, 0.7853982  ;;  %vm2533_vm6 = vcmp.eq.s32.totalorder %v2531_v21, 0  ;;  %vm2536_vm3 = vcmp.eq.s32.totalorder %v2531_v21, 2  ;;  %vm883_vm13 = vcmp.eq.s32.totalorder %v878_v9, 2  ;;  %v6934_v31 = vld [vmem:[#allocation31_spill] sm:$0xff] }
 0x218   : > { %vm2532_vm14 = vcmp.lt.s32.totalorder %v2531_v21, 2  ;;  %v2535_v63 = vsel %vm2533_vm6, %v5627_v59, %v881_v52  ;;  %v2538_v18 = vsel %vm2536_vm3, %v884_v62, %v5642_v33  ;;  %v2635_v36 = vand.u32 3, %v2634_v57  ;;  %v6924_v21 = vld [vmem:[#allocation27_spill] sm:$0xff] }
 0x219   : > { %v2539_v13 = vsel %vm2532_vm14, %v2535_v63, %v2538_v18  ;;  %vm879_vm1 = vcmp.lt.s32.totalorder %v878_v9, 2  ;;  %v882_v46 = vsel %vm880_vm10, %v5627_v59, %v881_v52  ;;  %v885_v6 = vsel %vm883_vm13, %v884_v62, %v5642_v33 }
 0x21a   : > { %v2540_v16 = vsel %vm877_vm7, nan, %v2539_v13  ;;  %vm2636_vm12 = vcmp.lt.s32.totalorder %v2635_v36, 2  ;;  %vm2637_vm4 = vcmp.eq.s32.totalorder %v2635_v36, 0  ;;  %vm2640_vm0 = vcmp.eq.s32.totalorder %v2635_v36, 2  ;;  %v6358_v5 = vpop.eup %4769 }
 0x21b   : > { %v2639_v1 = vsel %vm2637_vm4, %v6914_v3, %v984_v29  ;;  %v2642_v61 = vsel %vm2640_vm0, %v987_v50, %v6910_v20  ;;  %v886_v12 = vsel %vm879_vm1, %v882_v46, %v885_v6  ;;  %vm982_vm6 = vcmp.lt.s32.totalorder %v981_v4, 2  ;;  %v6362_v26 = vpop.eup %4771 }
 0x21c   : > { %v2643_v38 = vsel %vm2636_vm12, %v2639_v1, %v2642_v61  ;;  %v887_v33 = vsel %vm877_vm7, nan, %v886_v12  ;;  %vm983_vm3 = vcmp.eq.s32.totalorder %v981_v4, 0  ;;  %vm986_vm10 = vcmp.eq.s32.totalorder %v981_v4, 2 }
 0x21d   : > { %v2644_v59 = vsel %vm980_vm2, nan, %v2643_v38  ;;  %v985_v17 = vsel %vm983_vm3, %v6914_v3, %v984_v29  ;;  %v988_v22 = vsel %vm986_vm10, %v987_v50, %v6910_v20  ;;  %vm6917_vm0 = vcmp.lt.s32.totalorder %v6916_v53, 0  ;;  %v6922_v20 = vld [vmem:[#allocation7_spill] sm:$0xff]  ;;  %v6926_v3 = vld [vmem:[#allocation25_spill] sm:$0xff] }
 0x21e   : > { %v1078_v43 = vsel %vm6917_vm0, %v1077_v15, %v6915_v30  ;;  %4773 = vsinq.f32 %v6302_v49  ;;  %v3690_v35 = vpack.c.bf16 %v2644_v59, %v2540_v16  ;;  %v989_v39 = vsel %vm982_vm6, %v985_v17, %v988_v22  ;;  %v6920_v49 = vld [vmem:[#allocation29_spill] sm:$0xff]  ;;  %v6927_v30 = vld [vmem:[#allocation23_spill] sm:$0xff] }
 0x21f   : > { %v1080_v56 = vsel %vm5702_vm8, 0, %v1078_v43  ;;  %v6379_v44 = vsel %vm6344_vm9, %v6033_v41, %v1900_v54  ;;  %v990_v52 = vsel %vm980_vm2, nan, %v989_v39  ;;  %vm1083_vm7 = vweird.f32 %v6916_v53 }
 0x220   : > { %v1180_v32 = vsub.s32 4, %v6919_v23  ;;  %3884 = vmatprep.mubr.bf16.mxu0 %v3690_v35  ;;  %v3689_v60 = vpack.c.bf16 %v990_v52, %v887_v33  ;;  %v1087_v62 = vxor.u32 2147483648, %v6920_v49  ;;  %v1090_v37 = vxor.u32 2147483648, %v6921_v58  ;;  %v6929_v52 = vld [vmem:[#allocation20_spill] sm:$0xff] }
 0x221   : > { %v2738_v9 = vadd.s32 3, %v1080_v56  ;;  %vm6923_vm8 = vcmp.lt.s32.totalorder %v6922_v20, 0  ;;  %vm1186_vm13 = vweird.f32 %v6922_v20  ;;  %v1190_v42 = vxor.u32 2147483648, %v6924_v21 }
 0x222   : > { %v1181_v29 = vsel %vm6923_vm8, %v1180_v32, %v6919_v23  ;;  %v1084_v57 = vand.u32 3, %v1080_v56  ;;  %3885 = vmatmul.mubr.bf16.gmra.mrb[8].mxu0 %v3689_v60  ;;  %v1193_v50 = vxor.u32 2147483648, %v6926_v3  ;;  %v1283_v15 = vsub.s32 4, %v6927_v30 }
 0x223   : > { %v1183_v54 = vsel %vm5574_vm5, 0, %v1181_v29  ;;  %v2739_v4 = vand.u32 3, %v2738_v9  ;;  %vm6928_vm5 = vcmp.lt.s32.totalorder %v5373_v8, 0  ;;  %v1386_v23 = vsub.s32 4, %v6929_v52 }
 0x224   : > { %v2842_v63 = vadd.s32 3, %v1183_v54  ;;  %vm1085_vm2 = vcmp.lt.s32.totalorder %v1084_v57, 2  ;;  %vm1086_vm14 = vcmp.eq.s32.totalorder %v1084_v57, 0  ;;  %vm1089_vm1 = vcmp.eq.s32.totalorder %v1084_v57, 2 }
 0x225   : > { %vm2740_vm12 = vcmp.lt.s32.totalorder %v2739_v4, 2  ;;  %vm2741_vm4 = vcmp.eq.s32.totalorder %v2739_v4, 0  ;;  %vm2744_vm6 = vcmp.eq.s32.totalorder %v2739_v4, 2  ;;  %v1088_v18 = vsel %vm1086_vm14, %v6921_v58, %v1087_v62 }
 0x226   : > { %v2743_v36 = vsel %vm2741_vm4, %v6921_v58, %v1087_v62  ;;  %v2746_v13 = vsel %vm2744_vm6, %v1090_v37, %v6920_v49  ;;  %v2843_v46 = vand.u32 3, %v2842_v63  ;;  %v1091_v6 = vsel %vm1089_vm1, %v1090_v37, %v6920_v49  ;;  %v6930_v62 = vld [vmem:[#allocation11_spill] sm:$0xff] }
 0x227   : > { %v2747_v16 = vsel %vm2740_vm12, %v2743_v36, %v2746_v13  ;;  %v1092_v1 = vsel %vm1085_vm2, %v1088_v18, %v1091_v6  ;;  %v1187_v61 = vand.u32 3, %v1183_v54  ;;  %v1284_v12 = vsel %vm6928_vm5, %v1283_v15, %v6927_v30 }
 0x228   : > { %v2748_v38 = vsel %vm1083_vm7, nan, %v2747_v16  ;;  %vm2844_vm3 = vcmp.lt.s32.totalorder %v2843_v46, 2  ;;  %vm2845_vm10 = vcmp.eq.s32.totalorder %v2843_v46, 0  ;;  %vm2848_vm0 = vcmp.eq.s32.totalorder %v2843_v46, 2  ;;  %v6405_v33 = vpop.eup %4773 }
 0x229   : > { %v2847_v59 = vsel %vm2845_vm10, %v6926_v3, %v1190_v42  ;;  %v2850_v17 = vsel %vm2848_vm0, %v1193_v50, %v6924_v21  ;;  %v1093_v22 = vsel %vm1083_vm7, nan, %v1092_v1  ;;  %vm1188_vm8 = vcmp.lt.s32.totalorder %v1187_v61, 2 }
 0x22a   : > { %v2851_v43 = vsel %vm2844_vm3, %v2847_v59, %v2850_v17  ;;  %vm1189_vm2 = vcmp.eq.s32.totalorder %v1187_v61, 0  ;;  %vm1192_vm14 = vcmp.eq.s32.totalorder %v1187_v61, 2  ;;  %v1286_v35 = vsel %vm5932_vm11, 0, %v1284_v12  ;;  %v6937_v59 = vld [vmem:[#allocation34_spill] sm:$0xff] }
 0x22b   : > { %v2852_v39 = vsel %vm1186_vm13, nan, %v2851_v43  ;;  %v1191_v0 = vsel %vm1189_vm2, %v6926_v3, %v1190_v42  ;;  %v1194_v56 = vsel %vm1192_vm14, %v1193_v50, %v6924_v21  ;;  %vm1289_vm1 = vweird.f32 %v5373_v8  ;;  %v6932_v21 = vld [vmem:[#allocation24_spill] sm:$0xff]  ;;  %v6935_v3 = vld [vmem:[#allocation30_spill] sm:$0xff] }
 0x22c   : > { %v3692_v53 = vpack.c.bf16 %v2852_v39, %v2748_v38  ;;  %v1195_v32 = vsel %vm1188_vm8, %v1191_v0, %v1194_v56  ;;  %v1293_v60 = vxor.u32 2147483648, %v6015_v48  ;;  %v1296_v49 = vxor.u32 2147483648, %v6012_v55  ;;  %v6939_v0 = vld [vmem:[#allocation39_spill] sm:$0xff] }
 0x22d   : > { %v1196_v28 = vsel %vm1186_vm13, nan, %v1195_v32  ;;  %vm6931_vm11 = vcmp.lt.s32.totalorder %v6930_v62, 0  ;;  %v1396_v37 = vxor.u32 2147483648, %v5945_v47  ;;  %v2946_v9 = vadd.s32 3, %v1286_v35 }
 0x22e   : > { %v1387_v58 = vsel %vm6931_vm11, %v1386_v23, %v6929_v52  ;;  %3892 = vmatprep.mubr.bf16.mxu0 %v3692_v53  ;;  %v3691_v29 = vpack.c.bf16 %v1196_v28, %v1093_v22  ;;  %vm6933_vm7 = vnez %v6932_v21  ;;  %v1290_v57 = vand.u32 3, %v1286_v35  ;;  %v6940_v52 = vld [vmem:[#allocation38_spill] sm:$0xff] }
 0x22f   : > { %v1389_v42 = vsel %vm6933_vm7, 0, %v1387_v58  ;;  %v1489_v54 = vsub.s32 4, %v6934_v31  ;;  %v1399_v50 = vxor.u32 2147483648, %v6935_v3  ;;  %v2947_v4 = vand.u32 3, %v2946_v9  ;;  %v6941_v53 = vld [vmem:[#allocation26_spill] sm:$0xff] }
 0x230   : > { %v3050_v20 = vadd.s32 3, %v1389_v42  ;;  %v1393_v30 = vand.u32 3, %v1389_v42  ;;  %3893 = vmatmul.mubr.bf16.gmra.mrb[12].mxu0 %v3691_v29  ;;  %vm1291_vm13 = vcmp.lt.s32.totalorder %v1290_v57, 2  ;;  %vm1292_vm12 = vcmp.eq.s32.totalorder %v1290_v57, 0  ;;  %v6943_v9 = vld [vmem:[#allocation18_spill] sm:$0xff]  ;;  %v6945_v29 = vld [vmem:[#allocation36_spill] sm:$0xff] }
 0x231   : > { %vm1295_vm4 = vcmp.eq.s32.totalorder %v1290_v57, 2  ;;  %vm6936_vm6 = vcmp.lt.s32.totalorder %v5651_v27, 0  ;;  %vm2948_vm5 = vcmp.lt.s32.totalorder %v2947_v4, 2  ;;  %vm2949_vm3 = vcmp.eq.s32.totalorder %v2947_v4, 0  ;;  %v6946_v42 = vld [vmem:[#allocation35_spill] sm:$0xff] }
 0x232   : > { %v1490_v15 = vsel %vm6936_vm6, %v1489_v54, %v6934_v31  ;;  %vm2952_vm10 = vcmp.eq.s32.totalorder %v2947_v4, 2  ;;  %v3051_v63 = vand.u32 3, %v3050_v20  ;;  %v2951_v18 = vsel %vm2949_vm3, %v6012_v55, %v1293_v60  ;;  %v6947_v31 = vld [vmem:[#allocation32_spill] sm:$0xff] }
 0x233   : > { %v2954_v36 = vsel %vm2952_vm10, %v1296_v49, %v6015_v48  ;;  %v1294_v13 = vsel %vm1292_vm12, %v6012_v55, %v1293_v60  ;;  %v1297_v46 = vsel %vm1295_vm4, %v1296_v49, %v6015_v48  ;;  %4775 = vcosq.f32 %v6379_v44  ;;  %v6942_v49 = vld [vmem:[#allocation37_spill] sm:$0xff] }
 0x234   : > { %v2955_v6 = vsel %vm2948_vm5, %v2951_v18, %v2954_v36  ;;  %vm3052_vm0 = vcmp.lt.s32.totalorder %v3051_v63, 2  ;;  %vm3053_vm8 = vcmp.eq.s32.totalorder %v3051_v63, 0  ;;  %vm3056_vm2 = vcmp.eq.s32.totalorder %v3051_v63, 2 }
 0x235   : > { %v2956_v16 = vsel %vm1289_vm1, nan, %v2955_v6  ;;  %v3055_v1 = vsel %vm3053_vm8, %v6935_v3, %v1396_v37  ;;  %v3058_v61 = vsel %vm3056_vm2, %v1399_v50, %v5945_v47  ;;  %v1298_v12 = vsel %vm1291_vm13, %v1294_v13, %v1297_v46 }
 0x236   : > { %vm1392_vm14 = vweird.f32 %v6930_v62  ;;  %v3059_v55 = vsel %vm3052_vm0, %v3055_v1, %v3058_v61  ;;  %vm1395_vm11 = vcmp.eq.s32.totalorder %v1393_v30, 0  ;;  %vm1398_vm7 = vcmp.eq.s32.totalorder %v1393_v30, 2 }
 0x237   : > { %v3060_v48 = vsel %vm1392_vm14, nan, %v3059_v55  ;;  %v1397_v38 = vsel %vm1395_vm11, %v6935_v3, %v1396_v37  ;;  %vm6938_vm12 = vnez %v6937_v59  ;;  %vm1495_vm4 = vweird.f32 %v5651_v27 }
 0x238   : > { %v1492_v17 = vsel %vm6938_vm12, 0, %v1490_v15  ;;  %v3694_v22 = vpack.c.bf16 %v3060_v48, %v2956_v16  ;;  %v1299_v43 = vsel %vm1289_vm1, nan, %v1298_v12  ;;  %vm1394_vm13 = vcmp.lt.s32.totalorder %v1393_v30, 2 }
 0x239   : > { %v1400_v35 = vsel %vm1398_vm7, %v1399_v50, %v5945_v47  ;;  %v1499_v56 = vxor.u32 2147483648, %v6939_v0  ;;  %v1502_v23 = vxor.u32 2147483648, %v6940_v52  ;;  %v1592_v32 = vsub.s32 4, %v6941_v53 }
 0x23a   : > { %v1401_v39 = vsel %vm1394_vm13, %v1397_v38, %v1400_v35  ;;  %3900 = vmatprep.mubr.bf16.mxu0 %v3694_v22  ;;  %v1602_v28 = vxor.u32 2147483648, %v6942_v49  ;;  %v3154_v58 = vadd.s32 3, %v1492_v17  ;;  %v1496_v37 = vand.u32 3, %v1492_v17 }
 0x23b   : > { %v1402_v60 = vsel %vm1392_vm14, nan, %v1401_v39  ;;  %vm6944_vm1 = vcmp.lt.s32.totalorder %v6943_v9, 0  ;;  %v1605_v21 = vxor.u32 2147483648, %v6945_v29  ;;  %v1695_v57 = vsub.s32 4, %v6946_v42 }
 0x23c   : > { %v3693_v8 = vpack.c.bf16 %v1402_v60, %v1299_v43  ;;  %v1593_v47 = vsel %vm6944_vm1, %v1592_v32, %v6941_v53  ;;  %vm6948_vm6 = vnez %v6947_v31  ;;  %v3155_v3 = vand.u32 3, %v3154_v58  ;;  %v6951_v43 = vld [vmem:[#allocation33_spill] sm:$0xff] }
 0x23d   : > { %v1595_v54 = vsel %vm6948_vm6, 0, %v1593_v47  ;;  %vm1497_vm5 = vcmp.lt.s32.totalorder %v1496_v37, 2  ;;  %vm1498_vm3 = vcmp.eq.s32.totalorder %v1496_v37, 0  ;;  %vm1501_vm10 = vcmp.eq.s32.totalorder %v1496_v37, 2  ;;  %v6471_v36 = vpop.eup %4775 }
 0x23e   : > { %3901 = vmatmul.mubr.bf16.gmra.mrb[16].mxu0 %v3693_v8  ;;  %v3258_v62 = vadd.s32 3, %v1595_v54  ;;  %v1500_v50 = vsel %vm1498_vm3, %v6940_v52, %v1499_v56  ;;  %v1599_v4 = vand.u32 3, %v1595_v54  ;;  %vm3156_vm0 = vcmp.lt.s32.totalorder %v3155_v3, 2 }
 0x23f   : > { %vm3157_vm8 = vcmp.eq.s32.totalorder %v3155_v3, 0  ;;  %vm3160_vm2 = vcmp.eq.s32.totalorder %v3155_v3, 2  ;;  %v1503_v20 = vsel %vm1501_vm10, %v1502_v23, %v6939_v0  ;;  %vm1598_vm14 = vweird.f32 %v6943_v9 }
 0x240   : > { %v3159_v30 = vsel %vm3157_vm8, %v6940_v52, %v1499_v56  ;;  %v3162_v15 = vsel %vm3160_vm2, %v1502_v23, %v6939_v0  ;;  %v3259_v63 = vand.u32 3, %v3258_v62  ;;  %v1504_v18 = vsel %vm1497_vm5, %v1500_v50, %v1503_v20 }
 0x241   : > { %v3163_v13 = vsel %vm3156_vm0, %v3159_v30, %v3162_v15  ;;  %v1505_v46 = vsel %vm1495_vm4, nan, %v1504_v18  ;;  %vm1601_vm11 = vcmp.eq.s32.totalorder %v1599_v4, 0  ;;  %vm1604_vm1 = vcmp.eq.s32.totalorder %v1599_v4, 2 }
 0x242   : > { %v3164_v6 = vsel %vm1495_vm4, nan, %v3163_v13  ;;  %vm3260_vm7 = vcmp.lt.s32.totalorder %v3259_v63, 2  ;;  %vm3261_vm12 = vcmp.eq.s32.totalorder %v3259_v63, 0  ;;  %vm3264_vm13 = vcmp.eq.s32.totalorder %v3259_v63, 2 }
 0x243   : > { %v3263_v16 = vsel %vm3261_vm12, %v6945_v29, %v1602_v28  ;;  %v3266_v1 = vsel %vm3264_vm13, %v1605_v21, %v6942_v49  ;;  %v1603_v61 = vsel %vm1601_vm11, %v6945_v29, %v1602_v28  ;;  %vm1600_vm6 = vcmp.lt.s32.totalorder %v1599_v4, 2 }
 0x244   : > { %v3267_v12 = vsel %vm3260_vm7, %v3263_v16, %v3266_v1  ;;  %v1606_v55 = vsel %vm1604_vm1, %v1605_v21, %v6942_v49  ;;  %vm6949_vm5 = vcmp.lt.s32.totalorder %v5897_v19, 0  ;;  %4777 = vsinq.f32 %v6379_v44 }
 0x245   : > { %v1696_v48 = vsel %vm6949_vm5, %v1695_v57, %v6946_v42  ;;  %v3268_v27 = vsel %vm1598_vm14, nan, %v3267_v12  ;;  %v1607_v38 = vsel %vm1600_vm6, %v1603_v61, %v1606_v55  ;;  %vm6950_vm4 = vnez %v6889_v10 }
 0x246   : > { %v1698_v59 = vsel %vm6950_vm4, 0, %v1696_v48  ;;  %v3696_v17 = vpack.c.bf16 %v3268_v27, %v3164_v6  ;;  %v1608_v22 = vsel %vm1598_vm14, nan, %v1607_v38  ;;  %vm1701_vm3 = vweird.f32 %v5897_v19 }
 0x247   : > { %v1798_v35 = vsub.s32 4, %v6951_v43  ;;  %v3695_v39 = vpack.c.bf16 %v1608_v22, %v1505_v46  ;;  %v1705_v0 = vxor.u32 2147483648, %v6358_v5  ;;  %v1708_v44 = vxor.u32 2147483648, %v6267_v11 }
 0x248   : > { %v3362_v56 = vadd.s32 3, %v1698_v59  ;;  %3908 = vmatprep.mubr.bf16.mxu0 %v3696_v17  ;;  %vm6952_vm10 = vcmp.lt.s32.totalorder %v5782_v40, 0  ;;  %vm1804_vm0 = vweird.f32 %v5782_v40  ;;  %v1808_v52 = vxor.u32 2147483648, %v6241_v51 }
 0x249   : > { %v1799_v10 = vsel %vm6952_vm10, %v1798_v35, %v6951_v43  ;;  %v1702_v23 = vand.u32 3, %v1698_v59  ;;  %3909 = vmatmul.mubr.bf16.gmra.mrb[20].mxu0 %v3695_v39  ;;  %vm6953_vm8 = vnez %v6884_v34  ;;  %v1811_v32 = vxor.u32 2147483648, %v6238_v45 }
 0x24a   : > { %v1801_v53 = vsel %vm6953_vm8, 0, %v1799_v10  ;;  %v3363_v60 = vand.u32 3, %v3362_v56  ;;  %v1901_v49 = vsub.s32 4, %v6249_v2  ;;  %vm6954_vm1 = vcmp.lt.s32.totalorder %v6033_v41, 0 }
 0x24b   : > { %v3466_v28 = vadd.s32 3, %v1801_v53  ;;  %vm1703_vm2 = vcmp.lt.s32.totalorder %v1702_v23, 2  ;;  %vm1704_vm14 = vcmp.eq.s32.totalorder %v1702_v23, 0  ;;  %vm1707_vm11 = vcmp.eq.s32.totalorder %v1702_v23, 2  ;;  %v4711_v23 = vld [vmem:[%s6705_s4 + $0x20] sm:$0xff]  }
 0x24c   : > { %vm3364_vm7 = vcmp.lt.s32.totalorder %v3363_v60, 2  ;;  %vm3365_vm12 = vcmp.eq.s32.totalorder %v3363_v60, 0  ;;  %vm3368_vm13 = vcmp.eq.s32.totalorder %v3363_v60, 2  ;;  %v1706_v58 = vsel %vm1704_vm14, %v6267_v11, %v1705_v0  ;;  %v4714_v60 = vld [vmem:[%s6705_s4 + $0x38] sm:$0xff]  }
 0x24d   : > { %v3367_v37 = vsel %vm3365_vm12, %v6267_v11, %v1705_v0  ;;  %v3370_v8 = vsel %vm3368_vm13, %v1708_v44, %v6358_v5  ;;  %v3467_v34 = vand.u32 3, %v3466_v28  ;;  %v1709_v9 = vsel %vm1707_vm11, %v1708_v44, %v6358_v5  ;;  %v6575_v28 = vld [vmem:[%s6704_s3] ss:$0 sm:$0xff] }
 0x24e   : > { %v3371_v47 = vsel %vm3364_vm7, %v3367_v37, %v3370_v8  ;;  %v1710_v29 = vsel %vm1703_vm2, %v1706_v58, %v1709_v9  ;;  %v1805_v21 = vand.u32 3, %v1801_v53  ;;  %v1902_v42 = vsel %vm6954_vm1, %v1901_v49, %v6249_v2  ;;  %v4778_v31 = vpop.eup %4777  ;;  %v4712_v53 = vld [vmem:[%s6705_s4 + $0x28] sm:$0xff]  }
 0x24f   : > { %v3372_v57 = vsel %vm1701_vm3, nan, %v3371_v47  ;;  %vm3468_vm6 = vcmp.lt.s32.totalorder %v3467_v34, 2  ;;  %vm3469_vm5 = vcmp.eq.s32.totalorder %v3467_v34, 0  ;;  %vm3472_vm4 = vcmp.eq.s32.totalorder %v3467_v34, 2 }
 0x250   : > { %v3471_v11 = vsel %vm3469_vm5, %v6238_v45, %v1808_v52  ;;  %v3474_v54 = vsel %vm3472_vm4, %v1811_v32, %v6241_v51  ;;  %v1711_v5 = vsel %vm1701_vm3, nan, %v1710_v29  ;;  %vm1806_vm10 = vcmp.lt.s32.totalorder %v1805_v21, 2 }
 0x251   : > { %v3475_v3 = vsel %vm3468_vm6, %v3471_v11, %v3474_v54  ;;  %vm1807_vm8 = vcmp.eq.s32.totalorder %v1805_v21, 0  ;;  %vm1810_vm2 = vcmp.eq.s32.totalorder %v1805_v21, 2  ;;  %v1904_v2 = vsel %vm6344_vm9, 0, %v1902_v42 }
 0x252   : > { %v3476_v62 = vsel %vm1804_vm0, nan, %v3475_v3  ;;  %v1809_v50 = vsel %vm1807_vm8, %v6238_v45, %v1808_v52  ;;  %v1812_v4 = vsel %vm1810_vm2, %v1811_v32, %v6241_v51  ;;  %v2004_v20 = vsub.s32 4, %v6179_v24  ;;  %v4713_v32 = vld [vmem:[%s6705_s4 + $0x30] sm:$0xff]  }
 0x253   : > { %v3698_v30 = vpack.c.bf16 %v3476_v62, %v3372_v57  ;;  %v1813_v15 = vsel %vm1806_vm10, %v1809_v50, %v1812_v4  ;;  %vm1907_vm3 = vweird.f32 %v6033_v41  ;;  %v1911_v63 = vxor.u32 2147483648, %v4778_v31  ;;  %v4709_v41 = vld [vmem:[%s6705_s4 + $0x10] sm:$0xff]  }
 0x254   : > { %v1814_v19 = vsel %vm1804_vm0, nan, %v1813_v15  ;;  %vm6955_vm9 = vcmp.lt.s32.totalorder %v5996_v25, 0  ;;  %v3570_v18 = vadd.s32 3, %v1904_v2  ;;  %v1914_v45 = vxor.u32 2147483648, %v6471_v36 }
 0x255   : > { %v2005_v14 = vsel %vm6955_vm9, %v2004_v20, %v6179_v24  ;;  %3916 = vmatprep.mubr.bf16.mxu0 %v3698_v30  ;;  %v3697_v13 = vpack.c.bf16 %v1814_v19, %v1711_v5  ;;  %v1908_v46 = vand.u32 3, %v1904_v2  ;;  %v2014_v6 = vxor.u32 2147483648, %v6405_v33 }
 0x256   : > { %v2007_v51 = vsel %vm6271_vm15, 0, %v2005_v14  ;;  %v2017_v16 = vxor.u32 2147483648, %v6362_v26  ;;  %v3571_v40 = vand.u32 3, %v3570_v18  ;;  %vm2010_vm5 = vweird.f32 %v5996_v25  ;;  %v4707_v25 = vld [vmem:[%s6705_s4] sm:$0xff]  }
 0x257   : > { %v3674_v1 = vadd.s32 3, %v2007_v51  ;;  %3917 = vmatmul.mubr.bf16.gmra.mrb[24].mxu0 %v3697_v13  ;;  %vm1909_vm0 = vcmp.lt.s32.totalorder %v1908_v46, 2  ;;  %vm1910_vm14 = vcmp.eq.s32.totalorder %v1908_v46, 0  ;;  %vm1913_vm11 = vcmp.eq.s32.totalorder %v1908_v46, 2  ;;  %4545 = vmatprep.subr.bf16.mxu1 %v4707_v25 }
 0x258   : > { %v2011_v24 = vand.u32 3, %v2007_v51  ;;  %vm3572_vm7 = vcmp.lt.s32.totalorder %v3571_v40, 2  ;;  %vm3573_vm12 = vcmp.eq.s32.totalorder %v3571_v40, 0  ;;  %vm3576_vm13 = vcmp.eq.s32.totalorder %v3571_v40, 2  ;;  %4546 = vmatpush3.bf16.msra.mxu1 %v4707_v25 }
 0x259   : > { %v3675_v61 = vand.u32 3, %v3674_v1  ;;  %v3575_v12 = vsel %vm3573_vm12, %v6471_v36, %v1911_v63  ;;  %v3578_v7 = vsel %vm3576_vm13, %v1914_v45, %v4778_v31  ;;  %v1912_v55 = vsel %vm1910_vm14, %v6471_v36, %v1911_v63 }
 0x25a   : > { %v1915_v48 = vsel %vm1913_vm11, %v1914_v45, %v4778_v31  ;;  %v3579_v27 = vsel %vm3572_vm7, %v3575_v12, %v3578_v7  ;;  %vm2013_vm4 = vcmp.eq.s32.totalorder %v2011_v24, 0  ;;  %vm2016_vm10 = vcmp.eq.s32.totalorder %v2011_v24, 2 }
 0x25b   : > { %vm3676_vm15 = vcmp.lt.s32.totalorder %v3675_v61, 2  ;;  %vm3677_vm1 = vcmp.eq.s32.totalorder %v3675_v61, 0  ;;  %vm3680_vm6 = vcmp.eq.s32.totalorder %v3675_v61, 2  ;;  %v3580_v38 = vsel %vm1907_vm3, nan, %v3579_v27 }
 0x25c   : > { %v3679_v59 = vsel %vm3677_vm1, %v6362_v26, %v2014_v6  ;;  %v3682_v17 = vsel %vm3680_vm6, %v2017_v16, %v6405_v33  ;;  %v1916_v22 = vsel %vm1909_vm0, %v1912_v55, %v1915_v48  ;;  %v2015_v36 = vsel %vm2013_vm4, %v6362_v26, %v2014_v6  ;;  %v4708_v26 = vld [vmem:[%s6705_s4 + $0x8] sm:$0xff]  }
 0x25d   : > { %v3683_v43 = vsel %vm3676_vm15, %v3679_v59, %v3682_v17  ;;  %v1917_v0 = vsel %vm1907_vm3, nan, %v1916_v22  ;;  %vm2012_vm8 = vcmp.lt.s32.totalorder %v2011_v24, 2  ;;  %v2018_v44 = vsel %vm2016_vm10, %v2017_v16, %v6405_v33  ;;  %4547 = vmatprep.subr.bf16.mxu1 %v4708_v26  ;;  %v4710_v33 = vld [vmem:[%s6705_s4 + $0x18] sm:$0xff]  }
 0x25e   : > { %v3684_v35 = vsel %vm2010_vm5, nan, %v3683_v43  ;;  %v2019_v56 = vsel %vm2012_vm8, %v2015_v36, %v2018_v44  ;;  %4548 = vmatpush3.bf16.msra.mxu1 %v4708_v26 }
 0x25f   : > { %v3700_v39 = vpack.c.bf16 %v3684_v35, %v3580_v38  ;;  %v2020_v10 = vsel %vm2010_vm5, nan, %v2019_v56  ;;  %4549 = vmatprep.subr.bf16.mxu1 %v4709_v41 }
 0x260   : > { %v3699_v52 = vpack.c.bf16 %v2020_v10, %v1917_v0 }
 0x261   : > { %3924 = vmatprep.mubr.bf16.mxu0 %v3700_v39 }
 0x262   : > { %3925 = vmatmul.mubr.bf16.gmra.mrb[28].mxu0 %v3699_v52  ;;  %4550 = vmatpush3.bf16.msra.mxu1 %v4709_v41 }
 0x263   : > { %4551 = vmatprep.subr.bf16.mxu1 %v4710_v33 }
 0x266   : > { %4552 = vmatpush3.bf16.msra.mxu1 %v4710_v33 }
 0x267   : > { %4553 = vmatprep.subr.bf16.mxu1 %v4711_v23 }
 0x26a   : > { %4554 = vmatpush3.bf16.msra.mxu1 %v4711_v23 }
 0x26b   : > { %4555 = vmatprep.subr.bf16.mxu1 %v4712_v53 }
 0x26e   : > { %4556 = vmatpush3.bf16.msra.mxu1 %v4712_v53 }
 0x26f   : > { %4557 = vmatprep.subr.bf16.mxu1 %v4713_v32 }
 0x272   : > { %4558 = vmatpush3.bf16.msra.mxu1 %v4713_v32 }
 0x273   : > { %4559 = vmatprep.subr.bf16.mxu1 %v4714_v60 }
 0x276   : > { %4560 = vmatpush3.bf16.msra.mxu1 %v4714_v60 }
 0x2d9   : > { %v4481_v49 = vpop.f32.mrb[0].mxu0 }
 0x2da   : > { %v4482_v58 = vpop.f32.mrb[1].mxu0 }
 0x2db   : > { %v4483_v37 = vadd.f32 %v4482_v58, %v4481_v49  ;;  %v4484_v8 = vpop.f32.mrb[2].mxu0 }
 0x2dc   : > { %v4485_v34 = vpop.f32.mrb[3].mxu0 }
 0x2dd   : > { %v3871_v9 = vadd.f32 %v4483_v37, %v6575_v28  ;;  %v4486_v47 = vadd.f32 %v4485_v34, %v4484_v8 }
 0x2df   : > { %v3933_v29 = vsub.f32 0.0, %v3871_v9  ;;  %v3874_v21 = vadd.f32 %v4486_v47, %v6575_v28 }
 0x2e1   : > { %v3949_v42 = vmul.f32 1.442695, %v3933_v29  ;;  %v3934_v57 = vsub.f32 0.0, %v3874_v21 }
 0x2e3   : > { %4779 = vpow2.f32 %v3949_v42  ;;  %v3951_v31 = vmul.f32 1.442695, %v3934_v57 }
 0x2e5   : > { %4781 = vpow2.f32 %v3951_v31 }
 0x2e8   : > { %v4487_v11 = vpop.f32.mrb[4].mxu0 }
 0x2e9   : > { %v4488_v54 = vpop.f32.mrb[5].mxu0 }
 0x2ea   : > { %v4489_v5 = vadd.f32 %v4488_v54, %v4487_v11  ;;  %v4490_v3 = vpop.f32.mrb[6].mxu0 }
 0x2eb   : > { %v4491_v2 = vpop.f32.mrb[7].mxu0 }
 0x2ec   : > { %v3879_v62 = vadd.f32 %v4489_v5, %v6575_v28  ;;  %v4492_v50 = vadd.f32 %v4491_v2, %v4490_v3 }
 0x2ed   : > { %v4780_v4 = vpop.eup %4779 }
 0x2ee   : > { %v3981_v20 = vadd.f32 1.0, %v4780_v4  ;;  %v3935_v30 = vsub.f32 0.0, %v3879_v62  ;;  %v3882_v15 = vadd.f32 %v4492_v50, %v6575_v28 }
 0x2ef   : > { %v4782_v19 = vpop.eup %4781 }
 0x2f0   : > { %4783 = vrcp.f32 %v3981_v20  ;;  %v3982_v63 = vadd.f32 1.0, %v4782_v19  ;;  %v3953_v14 = vmul.f32 1.442695, %v3935_v30  ;;  %v3936_v18 = vsub.f32 0.0, %v3882_v15 }
 0x2f2   : > { %4785 = vrcp.f32 %v3982_v63  ;;  %v3955_v13 = vmul.f32 1.442695, %v3936_v18 }
 0x2f3   : > { %4787 = vpow2.f32 %v3953_v14 }
 0x2f4   : > { %4789 = vpow2.f32 %v3955_v13 }
 0x2f5   : > { %v4493_v45 = vpop.f32.mrb[8].mxu0 }
 0x2f6   : > { %v4494_v51 = vpop.f32.mrb[9].mxu0 }
 0x2f7   : > { %v4495_v46 = vadd.f32 %v4494_v51, %v4493_v45  ;;  %v4496_v6 = vpop.f32.mrb[10].mxu0 }
 0x2f8   : > { %v4497_v16 = vpop.f32.mrb[11].mxu0 }
 0x2f9   : > { %v6582_v40 = vadd.f32 %v4495_v46, %v6575_v28  ;;  %v4498_v1 = vadd.f32 %v4497_v16, %v4496_v6 }
 0x2fa   : > { %v4784_v24 = vpop.eup %4783 }
 0x2fb   : > { %v3937_v61 = vsub.f32 0.0, %v6582_v40  ;;  %v6586_v12 = vadd.f32 %v4498_v1, %v6575_v28  ;;  %v4013_v38 = vmul.f32 %v4784_v24, %v3871_v9 }
 0x2fc   : > { %v4786_v7 = vpop.eup %4785 }
 0x2fd   : > { %v4788_v55 = vpop.eup %4787  ;;  %v3957_v48 = vmul.f32 1.442695, %v3937_v61  ;;  %v3938_v27 = vsub.f32 0.0, %v6586_v12  ;;  %v4014_v59 = vmul.f32 %v4786_v7, %v3874_v21 }
 0x2fe   : > { %v4790_v17 = vpop.eup %4789  ;;  %v3983_v22 = vadd.f32 1.0, %v4788_v55 }
 0x2ff   : > { %v3984_v43 = vadd.f32 1.0, %v4790_v17  ;;  %4791 = vpow2.f32 %v3957_v48  ;;  %v3959_v35 = vmul.f32 1.442695, %v3938_v27  ;;  %v4029_v36 = vpack.c.bf16 %v4014_v59, %v4013_v38 }
 0x300   : > { %4793 = vrcp.f32 %v3983_v22 }
 0x301   : > { %4795 = vrcp.f32 %v3984_v43  ;;  %4561 = vmatprep.mubr.bf16.mxu1 %v4029_v36 }
 0x302   : > { %4797 = vpow2.f32 %v3959_v35 }
 0x303   : > { %v4499_v39 = vpop.f32.mrb[12].mxu0 }
 0x304   : > { %v4500_v0 = vpop.f32.mrb[13].mxu0 }
 0x305   : > { %v4501_v44 = vadd.f32 %v4500_v0, %v4499_v39  ;;  %v4502_v56 = vpop.f32.mrb[14].mxu0 }
 0x306   : > { %v4503_v10 = vpop.f32.mrb[15].mxu0 }
 0x307   : > { %v6590_v52 = vadd.f32 %v4501_v44, %v6575_v28  ;;  %v4504_v25 = vadd.f32 %v4503_v10, %v4502_v56 }
 0x309   : > { %v3939_v26 = vsub.f32 0.0, %v6590_v52  ;;  %v6594_v41 = vadd.f32 %v4504_v25, %v6575_v28  ;;  %v4792_v33 = vpop.eup %4791 }
 0x30a   : > { %v4794_v23 = vpop.eup %4793  ;;  %v3985_v53 = vadd.f32 1.0, %v4792_v33 }
 0x30b   : > { %v3961_v32 = vmul.f32 1.442695, %v3939_v26  ;;  %v3940_v60 = vsub.f32 0.0, %v6594_v41  ;;  %v4796_v49 = vpop.eup %4795  ;;  %v4015_v37 = vmul.f32 %v4794_v23, %v3879_v62 }
 0x30c   : > { %v4798_v58 = vpop.eup %4797  ;;  %v4016_v8 = vmul.f32 %v4796_v49, %v3882_v15  ;;  %4799 = vrcp.f32 %v3985_v53 }
 0x30d   : > { %v3963_v34 = vmul.f32 1.442695, %v3940_v60  ;;  %v3986_v9 = vadd.f32 1.0, %v4798_v58  ;;  %4801 = vpow2.f32 %v3961_v32 }
 0x30e   : > { %v4030_v29 = vpack.c.bf16 %v4016_v8, %v4015_v37 }
 0x30f   : > { %4803 = vpow2.f32 %v3963_v34 }
 0x310   : > { %4805 = vrcp.f32 %v3986_v9  ;;  %4562 = vmatmul.mubr.bf16.vlgmr.msra.gmra.mrb[0].mxu1 %v4030_v29 }
 0x311   : > { %v4505_v47 = vpop.f32.mrb[16].mxu0 }
 0x312   : > { %v4506_v21 = vpop.f32.mrb[17].mxu0 }
 0x313   : > { %v4507_v42 = vadd.f32 %v4506_v21, %v4505_v47  ;;  %v4508_v57 = vpop.f32.mrb[18].mxu0 }
 0x314   : > { %v4509_v31 = vpop.f32.mrb[19].mxu0 }
 0x315   : > { %v6598_v11 = vadd.f32 %v4507_v42, %v6575_v28  ;;  %v4510_v54 = vadd.f32 %v4509_v31, %v4508_v57 }
 0x316   : > { %v4800_v2 = vpop.eup %4799 }
 0x317   : > { %v3941_v5 = vsub.f32 0.0, %v6598_v11  ;;  %v6602_v3 = vadd.f32 %v4510_v54, %v6575_v28  ;;  %v4802_v4 = vpop.eup %4801  ;;  %v4017_v18 = vmul.f32 %v4800_v2, %v6582_v40 }
 0x318   : > { %v3987_v30 = vadd.f32 1.0, %v4802_v4 }
 0x319   : > { %v3965_v62 = vmul.f32 1.442695, %v3941_v5  ;;  %v3942_v50 = vsub.f32 0.0, %v6602_v3  ;;  %v4804_v20 = vpop.eup %4803 }
 0x31a   : > { %v4806_v19 = vpop.eup %4805  ;;  %v3988_v63 = vadd.f32 1.0, %v4804_v20 }
 0x31b   : > { %4807 = vpow2.f32 %v3965_v62  ;;  %v3967_v15 = vmul.f32 1.442695, %v3942_v50  ;;  %v4018_v13 = vmul.f32 %v4806_v19, %v6586_v12 }
 0x31c   : > { %v4511_v14 = vpop.f32.mrb[20].mxu0  ;;  %4809 = vrcp.f32 %v3987_v30 }
 0x31d   : > { %v4512_v45 = vpop.f32.mrb[21].mxu0  ;;  %4811 = vrcp.f32 %v3988_v63  ;;  %v4031_v16 = vpack.c.bf16 %v4018_v13, %v4017_v18 }
 0x31e   : > { %v4513_v51 = vadd.f32 %v4512_v45, %v4511_v14  ;;  %v4514_v46 = vpop.f32.mrb[22].mxu0  ;;  %4813 = vpow2.f32 %v3967_v15 }
 0x31f   : > { %v4515_v6 = vpop.f32.mrb[23].mxu0  ;;  %4565 = vmatprep.mubr.bf16.mxu1 %v4031_v16 }
 0x320   : > { %v6608_v1 = vadd.f32 %v4513_v51, %v6575_v28  ;;  %v4516_v24 = vadd.f32 %v4515_v6, %v4514_v46 }
 0x322   : > { %v3943_v61 = vsub.f32 0.0, %v6608_v1  ;;  %v6612_v7 = vadd.f32 %v4516_v24, %v6575_v28 }
 0x324   : > { %v3969_v40 = vmul.f32 1.442695, %v3943_v61  ;;  %v3944_v12 = vsub.f32 0.0, %v6612_v7 }
 0x325   : > { %v4808_v55 = vpop.eup %4807 }
 0x326   : > { %v3989_v48 = vadd.f32 1.0, %v4808_v55  ;;  %4815 = vpow2.f32 %v3969_v40  ;;  %v3971_v27 = vmul.f32 1.442695, %v3944_v12  ;;  %v4810_v38 = vpop.eup %4809 }
 0x327   : > { %v4812_v59 = vpop.eup %4811  ;;  %v4019_v22 = vmul.f32 %v4810_v38, %v6590_v52 }
 0x328   : > { %v4814_v17 = vpop.eup %4813  ;;  %v4020_v43 = vmul.f32 %v4812_v59, %v6594_v41  ;;  %4817 = vpow2.f32 %v3971_v27  ;;  %v4450_v27 = vld [vmem:[%s6706_s5] ss:$0 sm:$0xff] }
 0x329   : > { %4819 = vrcp.f32 %v3989_v48  ;;  %v3990_v36 = vadd.f32 1.0, %v4814_v17 }
 0x32a   : > { %v4517_v35 = vpop.f32.mrb[24].mxu0  ;;  %v4032_v56 = vpack.c.bf16 %v4020_v43, %v4019_v22 }
 0x32b   : > { %v4518_v39 = vpop.f32.mrb[25].mxu0  ;;  %4821 = vrcp.f32 %v3990_v36 }
 0x32c   : > { %v4519_v0 = vadd.f32 %v4518_v39, %v4517_v35  ;;  %v4520_v44 = vpop.f32.mrb[26].mxu0  ;;  %4566 = vmatmul.mubr.bf16.gmra.mrb[4].mxu1 %v4032_v56 }
 0x32d   : > { %v4521_v10 = vpop.f32.mrb[27].mxu0 }
 0x32e   : > { %v3919_v25 = vadd.f32 %v4519_v0, %v6575_v28  ;;  %v4522_v26 = vadd.f32 %v4521_v10, %v4520_v44 }
 0x330   : > { %v3945_v33 = vsub.f32 0.0, %v3919_v25  ;;  %v3922_v23 = vadd.f32 %v4522_v26, %v6575_v28  ;;  %v4816_v52 = vpop.eup %4815 }
 0x331   : > { %v3991_v53 = vadd.f32 1.0, %v4816_v52 }
 0x332   : > { %v3973_v41 = vmul.f32 1.442695, %v3945_v33  ;;  %v3946_v32 = vsub.f32 0.0, %v3922_v23  ;;  %v4818_v60 = vpop.eup %4817 }
 0x333   : > { %4823 = vrcp.f32 %v3991_v53  ;;  %v4820_v58 = vpop.eup %4819  ;;  %v3992_v37 = vadd.f32 1.0, %v4818_v60 }
 0x334   : > { %v3975_v49 = vmul.f32 1.442695, %v3946_v32  ;;  %4825 = vpow2.f32 %v3973_v41  ;;  %v4021_v47 = vmul.f32 %v4820_v58, %v6598_v11 }
 0x335   : > { %v4523_v8 = vpop.f32.mrb[28].mxu0  ;;  %v4822_v34 = vpop.eup %4821 }
 0x336   : > { %4827 = vpow2.f32 %v3975_v49  ;;  %v4524_v9 = vpop.f32.mrb[29].mxu0  ;;  %v4022_v29 = vmul.f32 %v4822_v34, %v6602_v3 }
 0x337   : > { %4829 = vrcp.f32 %v3992_v37  ;;  %v4525_v21 = vadd.f32 %v4524_v9, %v4523_v8  ;;  %v4526_v42 = vpop.f32.mrb[30].mxu0 }
 0x338   : > { %v4527_v57 = vpop.f32.mrb[31].mxu0  ;;  %v4033_v5 = vpack.c.bf16 %v4022_v29, %v4021_v47 }
 0x339   : > { %v3927_v31 = vadd.f32 %v4525_v21, %v6575_v28  ;;  %v4528_v54 = vadd.f32 %v4527_v57, %v4526_v42 }
 0x33a   : > { %4569 = vmatprep.mubr.bf16.mxu1 %v4033_v5 }
 0x33b   : > { %v3947_v2 = vsub.f32 0.0, %v3927_v31  ;;  %v3930_v62 = vadd.f32 %v4528_v54, %v6575_v28 }
 0x33d   : > { %v4824_v50 = vpop.eup %4823  ;;  %v3977_v4 = vmul.f32 1.442695, %v3947_v2  ;;  %v3948_v20 = vsub.f32 0.0, %v3930_v62 }
 0x33e   : > { %v4826_v30 = vpop.eup %4825  ;;  %v4023_v14 = vmul.f32 %v4824_v50, %v6608_v1 }
 0x33f   : > { %v3993_v19 = vadd.f32 1.0, %v4826_v30  ;;  %4831 = vpow2.f32 %v3977_v4  ;;  %v3979_v11 = vmul.f32 1.442695, %v3948_v20 }
 0x340   : > { %v4828_v15 = vpop.eup %4827 }
 0x341   : > { %v4830_v3 = vpop.eup %4829  ;;  %v3994_v63 = vadd.f32 1.0, %v4828_v15  ;;  %4833 = vrcp.f32 %v3993_v19 }
 0x342   : > { %v4024_v18 = vmul.f32 %v4830_v3, %v6612_v7 }
 0x343   : > { %4835 = vrcp.f32 %v3994_v63 }
 0x344   : > { %4837 = vpow2.f32 %v3979_v11  ;;  %v4034_v13 = vpack.c.bf16 %v4024_v18, %v4023_v14 }
 0x346   : > { %4570 = vmatmul.mubr.bf16.gmra.mrb[8].mxu1 %v4034_v13 }
 0x349   : > { %v4832_v28 = vpop.eup %4831 }
 0x34a   : > { %v3995_v45 = vadd.f32 1.0, %v4832_v28 }
 0x34b   : > { %v4834_v51 = vpop.eup %4833 }
 0x34c   : > { %v4025_v16 = vmul.f32 %v4834_v51, %v3919_v25  ;;  %4839 = vrcp.f32 %v3995_v45 }
 0x34d   : > { %v4836_v46 = vpop.eup %4835 }
 0x34e   : > { %v4838_v6 = vpop.eup %4837  ;;  %v4026_v24 = vmul.f32 %v4836_v46, %v3922_v23 }
 0x34f   : > { %v3996_v61 = vadd.f32 1.0, %v4838_v6 }
 0x350   : > { %v4035_v40 = vpack.c.bf16 %v4026_v24, %v4025_v16 }
 0x351   : > { %4841 = vrcp.f32 %v3996_v61 }
 0x352   : > { %4573 = vmatprep.mubr.bf16.mxu1 %v4035_v40 }
 0x356   : > { %v4840_v1 = vpop.eup %4839 }
 0x357   : > { %v4027_v12 = vmul.f32 %v4840_v1, %v3927_v31 }
 0x35b   : > { %v4842_v7 = vpop.eup %4841 }
 0x35c   : > { %v4028_v55 = vmul.f32 %v4842_v7, %v3930_v62 }
 0x35e   : > { %v4036_v48 = vpack.c.bf16 %v4028_v55, %v4027_v12 }
 0x360   : > { %4574 = vmatmul.mubr.bf16.gmra.mrb[12].mxu1 %v4036_v48 }
 0x3e3   : > { %v4563_v38 = vpop.f32.mrb[0].mxu1 }
 0x3e4   : > { %v4151_v59 = vadd.f32 %v4563_v38, %v4450_v27  ;;  %v4142_v17 = vpop.f32.mrb[1].mxu1 }
 0x3e5   : > { %v4143_v22 = vadd.f32 %v4450_v27, %v4142_v17  ;;  %v4564_v43 = vpop.f32.mrb[2].mxu1 }
 0x3e6   : > { %4207 = vst [vmem:[%s6631_s12 + $0x10] sm:$0xff] %v4151_v59  ;;  %v4154_v35 = vadd.f32 %v4564_v43, %v4450_v27  ;;  %v4145_v36 = vpop.f32.mrb[3].mxu1 }
 0x3e7   : > { %4205 = vst [vmem:[%s6631_s12] sm:$0xff] %v4143_v22  ;;  %v4146_v39 = vadd.f32 %v4450_v27, %v4145_v36 }
 0x3e8   : > { %4208 = vst [vmem:[%s6631_s12 + $0x18] sm:$0xff] %v4154_v35 }
 0x3e9   : > { %4206 = vst [vmem:[%s6631_s12 + $0x8] sm:$0xff] %v4146_v39 }
 0x3ff   : > { %v4567_v0 = vpop.f32.mrb[4].mxu1 }
 0x400   : > { %v4167_v44 = vadd.f32 %v4567_v0, %v4450_v27  ;;  %v4158_v56 = vpop.f32.mrb[5].mxu1 }
 0x401   : > { %v4159_v10 = vadd.f32 %v4450_v27, %v4158_v56  ;;  %v4568_v25 = vpop.f32.mrb[6].mxu1 }
 0x402   : > { %4211 = vst [vmem:[%s6631_s12 + $0x30] sm:$0xff] %v4167_v44  ;;  %v4170_v26 = vadd.f32 %v4568_v25, %v4450_v27  ;;  %v4161_v33 = vpop.f32.mrb[7].mxu1 }
 0x403   : > { %4209 = vst [vmem:[%s6631_s12 + $0x20] sm:$0xff] %v4159_v10  ;;  %v4162_v23 = vadd.f32 %v4450_v27, %v4161_v33 }
 0x404   : > { %4212 = vst [vmem:[%s6631_s12 + $0x38] sm:$0xff] %v4170_v26 }
 0x405   : > { %4210 = vst [vmem:[%s6631_s12 + $0x28] sm:$0xff] %v4162_v23 }
 0x419   : > { %v4571_v52 = vpop.f32.mrb[8].mxu1 }
 0x41a   : > { %v4183_v53 = vadd.f32 %v4571_v52, %v4450_v27  ;;  %v4174_v41 = vpop.f32.mrb[9].mxu1 }
 0x41b   : > { %v4175_v32 = vadd.f32 %v4450_v27, %v4174_v41  ;;  %v4572_v60 = vpop.f32.mrb[10].mxu1 }
 0x41c   : > { %4215 = vst [vmem:[%s6631_s12 + $0x50] sm:$0xff] %v4183_v53  ;;  %v4186_v49 = vadd.f32 %v4572_v60, %v4450_v27  ;;  %v4177_v58 = vpop.f32.mrb[11].mxu1 }
 0x41d   : > { %4213 = vst [vmem:[%s6631_s12 + $0x40] sm:$0xff] %v4175_v32  ;;  %v4178_v37 = vadd.f32 %v4450_v27, %v4177_v58 }
 0x41e   : > { %4216 = vst [vmem:[%s6631_s12 + $0x58] sm:$0xff] %v4186_v49 }
 0x41f   : > { %4214 = vst [vmem:[%s6631_s12 + $0x48] sm:$0xff] %v4178_v37 }
 0x433   : > { %v4575_v8 = vpop.f32.mrb[12].mxu1 }
 0x434   : > { %v4199_v34 = vadd.f32 %v4575_v8, %v4450_v27  ;;  %v4190_v9 = vpop.f32.mrb[13].mxu1 }
 0x435   : > { %v4191_v47 = vadd.f32 %v4450_v27, %v4190_v9  ;;  %v4576_v29 = vpop.f32.mrb[14].mxu1 }
 0x436   : > { %4219 = vst [vmem:[%s6631_s12 + $0x70] sm:$0xff] %v4199_v34  ;;  %v4202_v21 = vadd.f32 %v4576_v29, %v4450_v27  ;;  %v4193_v42 = vpop.f32.mrb[15].mxu1 }
 0x437   : > { %4217 = vst [vmem:[%s6631_s12 + $0x60] sm:$0xff] %v4191_v47  ;;  %v4194_v57 = vadd.f32 %v4450_v27, %v4193_v42 }
 0x438   : > { %4220 = vst [vmem:[%s6631_s12 + $0x78] sm:$0xff] %v4202_v21 }
 0x439   : > { %4218 = vst [vmem:[%s6631_s12 + $0x68] sm:$0xff] %v4194_v57 }
 0x43a   : > { %4857 = shalt.err (!%p4854_p3)
}
 0x43b   : > { %s4858_s28 = scalar_lea.hbm %s6651_s17, 2048  ;;  %s4862_s10 = scalar_lea.hbm %s6707_s6, 4096 }
 0x43c   : > { %p4859_p4 = scmp.ne.s32.totalorder %s6651_s17, %s4858_s28  ;;  %p4863_p9 = scmp.lt.u32.totalorder %s6651_s17, %s6707_s6 }
 0x43d   : > { %p4864_p10 = scmp.lt.u32.totalorder %s4862_s10, %s4858_s28  ;;  %p4866_p12 = scmp.lt.u32.totalorder %s4858_s28, %s6651_s17 }
 0x43e   : > { %p4860_p7 = pnand %p4859_p4, %p4991_p5 }
 0x43f   : > { %p4865_p11 = por %p4864_p10, %p4863_p9 }
 0x440   : > { %p4861_p8 = pneg %p4860_p7 }
 0x441   : > { %p4867_p13 = por %p4866_p12, %p4865_p11 }
 0x443   : > { %p4868_p0 = pnand %p4867_p13, %p4861_p8 }
 0x445   : > { %4871 = shalt.err (!%p4868_p0)
}
 0x446   : > { %s4916_s13 = smov 128   ;;  %s4917_s15 = smov 8  }
 0x447   : > { %4641 = dma.vmem_to_hbm [thread:$0]  (%p4991_p5), %s6653_s14, 2048, %s6651_s17, %s6660_s25, %s4916_s13, %s4916_s13, %s4917_s15  }
 0x448 PF: > { %p4647_p1 = scmp.ge.s32.totalorder %s4906_s24, 2  ;;  %s4250_s16 = sand.u32 1, %s4894_s21  }
 0x449   : > { %s4251_s18 = scalar_lea.sflag [#allocation3], %s4250_s16 }
 0x44a   : > { %p4644_p2 = pnand %p4647_p1, %p4995_p6 }
 0x44c   : > { %4889 = dma.done.wait (!%p4644_p2), %s4251_s18, 2048  }
 0x44d   : > { %4891 = vsyncadd (!%p4644_p2), %s4251_s18, 4294965248  ;;  %p16_p3 = scmp.ge.s32.totalorder %s4978_s27, 4   ;;  %s6956_s21 = smov %s4898_s22 }
 0x44e   : > { %s6957_s22 = smov %s4902_s23  ;;  %s6958_s23 = smov %s4989_s30 }
 0x44f   : > { %s6959_s24 = smov %s4978_s27  ;;  %18 = sbr.rel (!%p16_p3) target bundleno = 3 (0x3), region = 79 }
 0x456   :  { %4256 = vsyncpa [#allocation3], 1 }
 0x457   :  { %4258 = vsyncpa [#allocation3 + $0x1], 1 }

</bundles_post_ra>
